<compile_context>
chip_gen: v7x
topology: tpu7x:2x2x1
jax: 0.10.0
libtpu: 0.0.40
codegen_flags: <defaults>
</compile_context>

<pallas_src>
import functools

import jax
import jax.numpy as jnp
import numpy as np
from jax.experimental import pallas as pl
from jax.experimental.pallas import tpu as pltpu  # noqa: F401  (TPU backend)


# ----------------------------------------------------------------------------
# Fused Pallas kernel: backbone -> fc1 -> fc2 -> LAME adjustment
# ----------------------------------------------------------------------------
def _fused_lame_kernel(*refs, alpha, batch, n_layers):
    n_in = 1 + 2 * n_layers + 4
    x_ref = refs[0]                                   # (B, C0, S)
    layer_refs = refs[1:1 + 2 * n_layers]             # (wT, bias) pairs
    fc1w_ref, fc1b_ref, fc2w_ref, fc2b_ref = refs[1 + 2 * n_layers:n_in]
    logits_ref, adj_ref = refs[n_in:n_in + 2]         # (B, ncls) each

    cf = fc1w_ref.shape[0]                            # final channel count

    def full_sum(a):                                  # (R, S) -> (1, 1)
        return jnp.sum(jnp.sum(a, axis=1, keepdims=True), axis=0, keepdims=True)

    feats = []        # per-batch (Cf, S) final feature slabs (VMEM/vregs)
    logit_rows = []   # per-batch (1, ncls)
    prob_rows = []    # per-batch (1, ncls)

    for bi in range(batch):
        h = x_ref[bi]                                 # (C0, S), lane-dense
        # ---- pointwise channel-mix backbone: relu(W^T @ h + b) ----
        for li in range(n_layers):
            wT = layer_refs[2 * li][...]              # (Cout, Cin)
            bb = layer_refs[2 * li + 1][...]          # (Cout, 1) -> lane bcast
            h = jnp.maximum(
                jnp.dot(wT, h, preferred_element_type=jnp.float32) + bb, 0.0)

        feats.append(h)                               # (Cf, S) == feat[b] view

        # ---- fc1: contract over feat (Cf*S), chunked by channel (K = S) ----
        acc = fc1b_ref[...]                           # (1, hidden)
        for c in range(cf):
            acc = acc + jnp.dot(h[c:c + 1, :], fc1w_ref[c],
                                preferred_element_type=jnp.float32)
        hidden = jnp.maximum(acc, 0.0)                # (1, hidden)

        # ---- fc2 ----
        logit = (jnp.dot(hidden, fc2w_ref[...],
                         preferred_element_type=jnp.float32) + fc2b_ref[...])
        logit_rows.append(logit)                      # (1, ncls)

        # ---- row softmax ----
        z = logit - jnp.max(logit, axis=1, keepdims=True)
        e = jnp.exp(z)
        prob_rows.append(e / jnp.sum(e, axis=1, keepdims=True))

    # ---- LAME Laplacian loss (VPU mults + reductions; no transposes) ----
    norms = []
    for bi in range(batch):
        nsq = full_sum(feats[bi] * feats[bi])
        norms.append(jnp.maximum(jnp.sqrt(nsq), 1e-12))   # F.normalize eps

    # A = relu(fn @ fn.T)  computed as  relu(<f_i, f_j> / (||f_i|| ||f_j||))
    A = [[None] * batch for _ in range(batch)]
    for i in range(batch):
        for j in range(i, batch):
            dotij = full_sum(feats[i] * feats[j])
            a = jnp.maximum(dotij / (norms[i] * norms[j]), 0.0)   # (1, 1)
            A[i][j] = a
            A[j][i] = a

    # trace(prob.T @ (D - A) @ prob) / B
    loss = jnp.zeros((1, 1), jnp.float32)
    for i in range(batch):
        deg = A[i][0]
        for j in range(1, batch):
            deg = deg + A[i][j]
        Ap = A[i][0] * prob_rows[0]
        for j in range(1, batch):
            Ap = Ap + A[i][j] * prob_rows[j]
        Lp_i = deg * prob_rows[i] - Ap                 # (1, ncls)
        loss = loss + jnp.sum(Lp_i * prob_rows[i], axis=1, keepdims=True)
    loss = loss / float(batch)

    # Note: like the PyTorch reference, a single scalar is subtracted from every
    # logit (softmax of adjusted logits is unchanged) -- semantics preserved.
    for bi in range(batch):
        logits_ref[bi:bi + 1, :] = logit_rows[bi].astype(logits_ref.dtype)
        adj_ref[bi:bi + 1, :] = (logit_rows[bi] - alpha * loss).astype(adj_ref.dtype)


# ----------------------------------------------------------------------------
# Wrapper
# ----------------------------------------------------------------------------
def _prepare_weights(params, spatial):
    """Host-side, free-ish weight relayout for the (C, H*W) kernel layout."""
    prep = []
    for w, b in params["layers"]:
        prep.append(jnp.asarray(w, jnp.float32).T)                 # (Cout, Cin)
        prep.append(jnp.asarray(b, jnp.float32).reshape(-1, 1))    # (Cout, 1)
    cf = params["layers"][-1][0].shape[1]
    hid = params["fc1_w"].shape[1]
    prep.append(jnp.asarray(params["fc1_w"], jnp.float32)
                .reshape(cf, spatial, hid))                        # (Cf, S, hid)
    prep.append(jnp.asarray(params["fc1_b"], jnp.float32).reshape(1, -1))
    prep.append(jnp.asarray(params["fc2_w"], jnp.float32))         # (hid, ncls)
    prep.append(jnp.asarray(params["fc2_b"], jnp.float32).reshape(1, -1))
    return prep


@functools.partial(jax.jit, static_argnames=("alpha",))
def lame_fused(x, params, alpha=0.5):
    """Returns (logits, logits_adjusted) from one fused Pallas kernel."""
    B, C, H, W = x.shape
    S = H * W
    n_layers = len(params["layers"])
    ncls = params["fc2_w"].shape[1]
    prep = _prepare_weights(params, S)
    x3 = x.reshape(B, C, S)                          # free reshape (row-major)

    kernel = functools.partial(_fused_lame_kernel, alpha=float(alpha),
                               batch=B, n_layers=n_layers)
    logits, adjusted = pl.pallas_call(
        kernel,
        out_shape=(jax.ShapeDtypeStruct((B, ncls), jnp.float32),
                   jax.ShapeDtypeStruct((B, ncls), jnp.float32)),
    )(x3, *prep)
    return logits, adjusted


def lame_forward(x, params):
    """LAMEWrapper.forward: plain inference through the (synthetic) model."""
    return lame_fused(x, params, alpha=0.5)[0]


def lame_update(x, params, alpha=0.5):
    """LAMEWrapper.update: parameter-free test-time adaptation."""
    return lame_fused(x, params, alpha=alpha)[1]


# ----------------------------------------------------------------------------
# Pure-JAX reference (matches the PyTorch module semantics)
# ----------------------------------------------------------------------------
def _ref_forward_update(x, params, alpha=0.5):
    B = x.shape[0]
    h = x
    for w, b in params["layers"]:
        Bc, Cc, Hc, Wc = h.shape
        h2 = jnp.transpose(h, (0, 2, 3, 1)).reshape(Bc * Hc * Wc, Cc)
        h2 = jnp.maximum(h2 @ w + b, 0.0)
        h = jnp.transpose(h2.reshape(Bc, Hc, Wc, w.shape[1]), (0, 3, 1, 2))
    feat = h.reshape(B, -1)
    hid = jnp.maximum(feat @ params["fc1_w"] + params["fc1_b"], 0.0)
    logits = hid @ params["fc2_w"] + params["fc2_b"]
    fn = feat / jnp.maximum(jnp.linalg.norm(feat, axis=1, keepdims=True), 1e-12)
    A = jnp.maximum(fn @ fn.T, 0.0)
    L = jnp.diag(jnp.sum(A, axis=1)) - A
    prob = jax.nn.softmax(logits, axis=1)
    loss = jnp.trace(prob.T @ (L @ prob)) / B
    return logits, logits - alpha * loss


# ----------------------------------------------------------------------------
def make_params(key):
    chans = [4, 8, 8, 16, 16]       # layer1..layer4 channel widths
    H = W = 16
    feat_dim = chans[-1] * H * W    # 4096
    hidden, num_classes = 32, 8
    keys = jax.random.split(key, 2 * len(chans) + 4)
    layers = []
    ki = 0
    for cin, cout in zip(chans[:-1], chans[1:]):
        w = jax.random.normal(keys[ki], (cin, cout), jnp.float32) * (1.0 / np.sqrt(cin))
        b = jax.random.normal(keys[ki + 1], (cout,), jnp.float32) * 0.01
        layers.append((w, b))
        ki += 2
    fc1_w = jax.random.normal(keys[ki], (feat_dim, hidden), jnp.float32) * (
        1.0 / np.sqrt(feat_dim))
    fc1_b = jax.random.normal(keys[ki + 1], (hidden,), jnp.float32) * 0.01
    fc2_w = jax.random.normal(keys[ki + 2], (hidden, num_classes), jnp.float32) * (
        1.0 / np.sqrt(hidden))
    fc2_b = jax.random.normal(keys[ki + 3], (num_classes,), jnp.float32) * 0.01
    return {"layers": layers, "fc1_w": fc1_w, "fc1_b": fc1_b,
            "fc2_w": fc2_w, "fc2_b": fc2_b}


if __name__ == "__main__":
    key = jax.random.PRNGKey(0)
    k_x, k_p = jax.random.split(key)
    x = jax.random.normal(k_x, (2, 4, 16, 16), jnp.float32)   # NCHW, like PyTorch
    params = make_params(k_p)

    logits = lame_forward(x, params)                 # forward() path
    adjusted = lame_update(x, params, alpha=0.5)     # update() path
    jax.block_until_ready((logits, adjusted))

    ref_logits, ref_adj = _ref_forward_update(x, params, alpha=0.5)
    np.testing.assert_allclose(np.asarray(logits), np.asarray(ref_logits),
                               rtol=1e-4, atol=1e-4)
    np.testing.assert_allclose(np.asarray(adjusted), np.asarray(ref_adj),
                               rtol=1e-4, atol=1e-4)
    print("KERNEL_OK")
</pallas_src>

<mosaic_0001>
module attributes {stable_mosaic.version = 11 : i64} {
  func.func @_fused_lame_kernel(%arg0: memref<2x4x256xf32, #tpu.memory_space<vmem>>, %arg1: memref<8x4xf32, #tpu.memory_space<vmem>>, %arg2: memref<8x1xf32, #tpu.memory_space<vmem>>, %arg3: memref<8x8xf32, #tpu.memory_space<vmem>>, %arg4: memref<8x1xf32, #tpu.memory_space<vmem>>, %arg5: memref<16x8xf32, #tpu.memory_space<vmem>>, %arg6: memref<16x1xf32, #tpu.memory_space<vmem>>, %arg7: memref<16x16xf32, #tpu.memory_space<vmem>>, %arg8: memref<16x1xf32, #tpu.memory_space<vmem>>, %arg9: memref<16x256x32xf32, #tpu.memory_space<vmem>>, %arg10: memref<1x32xf32, #tpu.memory_space<vmem>>, %arg11: memref<32x8xf32, #tpu.memory_space<vmem>>, %arg12: memref<1x8xf32, #tpu.memory_space<vmem>>, %arg13: memref<2x8xf32, #tpu.memory_space<vmem>>, %arg14: memref<2x8xf32, #tpu.memory_space<vmem>>) attributes {dimension_semantics = [], scalar_prefetch = 0 : i64, scratch_operands = 0 : i64, tpu.core_type = #tpu.core_type<tc>} {
    %c0 = arith.constant 0 : index
    %c0_0 = arith.constant 0 : index
    %c0_1 = arith.constant 0 : index
    %0 = vector.load %arg0[%c0, %c0_0, %c0_1] : memref<2x4x256xf32, #tpu.memory_space<vmem>>, vector<1x4x256xf32>
    %1 = vector.shape_cast %0 : vector<1x4x256xf32> to vector<4x256xf32>
    %c0_2 = arith.constant 0 : index
    %c0_3 = arith.constant 0 : index
    %2 = vector.load %arg1[%c0_2, %c0_3] : memref<8x4xf32, #tpu.memory_space<vmem>>, vector<8x4xf32>
    %c0_4 = arith.constant 0 : index
    %c0_5 = arith.constant 0 : index
    %3 = vector.load %arg2[%c0_4, %c0_5] : memref<8x1xf32, #tpu.memory_space<vmem>>, vector<8x1xf32>
    %cst = arith.constant dense<0.000000e+00> : vector<8x256xf32>
    %4 = tpu.matmul %2, %1, %cst {dimension_numbers = #tpu.dot_dimension_numbers<[1], [0], [0], [1], [0, 0, 1, 1], [], []>} : vector<8x4xf32>, vector<4x256xf32>, vector<8x256xf32> -> vector<8x256xf32>
    %5 = vector.broadcast %3 : vector<8x1xf32> to vector<8x256xf32>
    %6 = arith.addf %4, %5 : vector<8x256xf32>
    %cst_6 = arith.constant 0.000000e+00 : f32
    %7 = vector.broadcast %cst_6 : f32 to vector<8x256xf32>
    %8 = arith.maximumf %6, %7 : vector<8x256xf32>
    %c0_7 = arith.constant 0 : index
    %c0_8 = arith.constant 0 : index
    %9 = vector.load %arg3[%c0_7, %c0_8] : memref<8x8xf32, #tpu.memory_space<vmem>>, vector<8x8xf32>
    %c0_9 = arith.constant 0 : index
    %c0_10 = arith.constant 0 : index
    %10 = vector.load %arg4[%c0_9, %c0_10] : memref<8x1xf32, #tpu.memory_space<vmem>>, vector<8x1xf32>
    %cst_11 = arith.constant dense<0.000000e+00> : vector<8x256xf32>
    %11 = tpu.matmul %9, %8, %cst_11 {dimension_numbers = #tpu.dot_dimension_numbers<[1], [0], [0], [1], [0, 0, 1, 1], [], []>} : vector<8x8xf32>, vector<8x256xf32>, vector<8x256xf32> -> vector<8x256xf32>
    %12 = vector.broadcast %10 : vector<8x1xf32> to vector<8x256xf32>
    %13 = arith.addf %11, %12 : vector<8x256xf32>
    %cst_12 = arith.constant 0.000000e+00 : f32
    %14 = vector.broadcast %cst_12 : f32 to vector<8x256xf32>
    %15 = arith.maximumf %13, %14 : vector<8x256xf32>
    %c0_13 = arith.constant 0 : index
    %c0_14 = arith.constant 0 : index
    %16 = vector.load %arg5[%c0_13, %c0_14] : memref<16x8xf32, #tpu.memory_space<vmem>>, vector<16x8xf32>
    %c0_15 = arith.constant 0 : index
    %c0_16 = arith.constant 0 : index
    %17 = vector.load %arg6[%c0_15, %c0_16] : memref<16x1xf32, #tpu.memory_space<vmem>>, vector<16x1xf32>
    %cst_17 = arith.constant dense<0.000000e+00> : vector<16x256xf32>
    %18 = tpu.matmul %16, %15, %cst_17 {dimension_numbers = #tpu.dot_dimension_numbers<[1], [0], [0], [1], [0, 0, 1, 1], [], []>} : vector<16x8xf32>, vector<8x256xf32>, vector<16x256xf32> -> vector<16x256xf32>
    %19 = vector.broadcast %17 : vector<16x1xf32> to vector<16x256xf32>
    %20 = arith.addf %18, %19 : vector<16x256xf32>
    %cst_18 = arith.constant 0.000000e+00 : f32
    %21 = vector.broadcast %cst_18 : f32 to vector<16x256xf32>
    %22 = arith.maximumf %20, %21 : vector<16x256xf32>
    %c0_19 = arith.constant 0 : index
    %c0_20 = arith.constant 0 : index
    %23 = vector.load %arg7[%c0_19, %c0_20] : memref<16x16xf32, #tpu.memory_space<vmem>>, vector<16x16xf32>
    %c0_21 = arith.constant 0 : index
    %c0_22 = arith.constant 0 : index
    %24 = vector.load %arg8[%c0_21, %c0_22] : memref<16x1xf32, #tpu.memory_space<vmem>>, vector<16x1xf32>
    %cst_23 = arith.constant dense<0.000000e+00> : vector<16x256xf32>
    %25 = tpu.matmul %23, %22, %cst_23 {dimension_numbers = #tpu.dot_dimension_numbers<[1], [0], [0], [1], [0, 0, 1, 1], [], []>} : vector<16x16xf32>, vector<16x256xf32>, vector<16x256xf32> -> vector<16x256xf32>
    %26 = vector.broadcast %24 : vector<16x1xf32> to vector<16x256xf32>
    %27 = arith.addf %25, %26 : vector<16x256xf32>
    %cst_24 = arith.constant 0.000000e+00 : f32
    %28 = vector.broadcast %cst_24 : f32 to vector<16x256xf32>
    %29 = arith.maximumf %27, %28 : vector<16x256xf32>
    %c0_25 = arith.constant 0 : index
    %c0_26 = arith.constant 0 : index
    %30 = vector.load %arg10[%c0_25, %c0_26] : memref<1x32xf32, #tpu.memory_space<vmem>>, vector<1x32xf32>
    %31 = vector.extract_strided_slice %29 {offsets = [0, 0], sizes = [1, 256], strides = [1, 1]} : vector<16x256xf32> to vector<1x256xf32>
    %c0_27 = arith.constant 0 : index
    %c0_28 = arith.constant 0 : index
    %c0_29 = arith.constant 0 : index
    %32 = vector.load %arg9[%c0_27, %c0_28, %c0_29] : memref<16x256x32xf32, #tpu.memory_space<vmem>>, vector<1x256x32xf32>
    %33 = vector.shape_cast %32 : vector<1x256x32xf32> to vector<256x32xf32>
    %cst_30 = arith.constant dense<0.000000e+00> : vector<1x32xf32>
    %34 = tpu.matmul %31, %33, %cst_30 {dimension_numbers = #tpu.dot_dimension_numbers<[1], [0], [0], [1], [0, 0, 1, 1], [], []>} : vector<1x256xf32>, vector<256x32xf32>, vector<1x32xf32> -> vector<1x32xf32>
    %35 = arith.addf %30, %34 : vector<1x32xf32>
    %36 = vector.extract_strided_slice %29 {offsets = [1, 0], sizes = [1, 256], strides = [1, 1]} : vector<16x256xf32> to vector<1x256xf32>
    %c1 = arith.constant 1 : index
    %c0_31 = arith.constant 0 : index
    %c0_32 = arith.constant 0 : index
    %37 = vector.load %arg9[%c1, %c0_31, %c0_32] : memref<16x256x32xf32, #tpu.memory_space<vmem>>, vector<1x256x32xf32>
    %38 = vector.shape_cast %37 : vector<1x256x32xf32> to vector<256x32xf32>
    %cst_33 = arith.constant dense<0.000000e+00> : vector<1x32xf32>
    %39 = tpu.matmul %36, %38, %cst_33 {dimension_numbers = #tpu.dot_dimension_numbers<[1], [0], [0], [1], [0, 0, 1, 1], [], []>} : vector<1x256xf32>, vector<256x32xf32>, vector<1x32xf32> -> vector<1x32xf32>
    %40 = arith.addf %35, %39 : vector<1x32xf32>
    %41 = vector.extract_strided_slice %29 {offsets = [2, 0], sizes = [1, 256], strides = [1, 1]} : vector<16x256xf32> to vector<1x256xf32>
    %c2 = arith.constant 2 : index
    %c0_34 = arith.constant 0 : index
    %c0_35 = arith.constant 0 : index
    %42 = vector.load %arg9[%c2, %c0_34, %c0_35] : memref<16x256x32xf32, #tpu.memory_space<vmem>>, vector<1x256x32xf32>
    %43 = vector.shape_cast %42 : vector<1x256x32xf32> to vector<256x32xf32>
    %cst_36 = arith.constant dense<0.000000e+00> : vector<1x32xf32>
    %44 = tpu.matmul %41, %43, %cst_36 {dimension_numbers = #tpu.dot_dimension_numbers<[1], [0], [0], [1], [0, 0, 1, 1], [], []>} : vector<1x256xf32>, vector<256x32xf32>, vector<1x32xf32> -> vector<1x32xf32>
    %45 = arith.addf %40, %44 : vector<1x32xf32>
    %46 = vector.extract_strided_slice %29 {offsets = [3, 0], sizes = [1, 256], strides = [1, 1]} : vector<16x256xf32> to vector<1x256xf32>
    %c3 = arith.constant 3 : index
    %c0_37 = arith.constant 0 : index
    %c0_38 = arith.constant 0 : index
    %47 = vector.load %arg9[%c3, %c0_37, %c0_38] : memref<16x256x32xf32, #tpu.memory_space<vmem>>, vector<1x256x32xf32>
    %48 = vector.shape_cast %47 : vector<1x256x32xf32> to vector<256x32xf32>
    %cst_39 = arith.constant dense<0.000000e+00> : vector<1x32xf32>
    %49 = tpu.matmul %46, %48, %cst_39 {dimension_numbers = #tpu.dot_dimension_numbers<[1], [0], [0], [1], [0, 0, 1, 1], [], []>} : vector<1x256xf32>, vector<256x32xf32>, vector<1x32xf32> -> vector<1x32xf32>
    %50 = arith.addf %45, %49 : vector<1x32xf32>
    %51 = vector.extract_strided_slice %29 {offsets = [4, 0], sizes = [1, 256], strides = [1, 1]} : vector<16x256xf32> to vector<1x256xf32>
    %c4 = arith.constant 4 : index
    %c0_40 = arith.constant 0 : index
    %c0_41 = arith.constant 0 : index
    %52 = vector.load %arg9[%c4, %c0_40, %c0_41] : memref<16x256x32xf32, #tpu.memory_space<vmem>>, vector<1x256x32xf32>
    %53 = vector.shape_cast %52 : vector<1x256x32xf32> to vector<256x32xf32>
    %cst_42 = arith.constant dense<0.000000e+00> : vector<1x32xf32>
    %54 = tpu.matmul %51, %53, %cst_42 {dimension_numbers = #tpu.dot_dimension_numbers<[1], [0], [0], [1], [0, 0, 1, 1], [], []>} : vector<1x256xf32>, vector<256x32xf32>, vector<1x32xf32> -> vector<1x32xf32>
    %55 = arith.addf %50, %54 : vector<1x32xf32>
    %56 = vector.extract_strided_slice %29 {offsets = [5, 0], sizes = [1, 256], strides = [1, 1]} : vector<16x256xf32> to vector<1x256xf32>
    %c5 = arith.constant 5 : index
    %c0_43 = arith.constant 0 : index
    %c0_44 = arith.constant 0 : index
    %57 = vector.load %arg9[%c5, %c0_43, %c0_44] : memref<16x256x32xf32, #tpu.memory_space<vmem>>, vector<1x256x32xf32>
    %58 = vector.shape_cast %57 : vector<1x256x32xf32> to vector<256x32xf32>
    %cst_45 = arith.constant dense<0.000000e+00> : vector<1x32xf32>
    %59 = tpu.matmul %56, %58, %cst_45 {dimension_numbers = #tpu.dot_dimension_numbers<[1], [0], [0], [1], [0, 0, 1, 1], [], []>} : vector<1x256xf32>, vector<256x32xf32>, vector<1x32xf32> -> vector<1x32xf32>
    %60 = arith.addf %55, %59 : vector<1x32xf32>
    %61 = vector.extract_strided_slice %29 {offsets = [6, 0], sizes = [1, 256], strides = [1, 1]} : vector<16x256xf32> to vector<1x256xf32>
    %c6 = arith.constant 6 : index
    %c0_46 = arith.constant 0 : index
    %c0_47 = arith.constant 0 : index
    %62 = vector.load %arg9[%c6, %c0_46, %c0_47] : memref<16x256x32xf32, #tpu.memory_space<vmem>>, vector<1x256x32xf32>
    %63 = vector.shape_cast %62 : vector<1x256x32xf32> to vector<256x32xf32>
    %cst_48 = arith.constant dense<0.000000e+00> : vector<1x32xf32>
    %64 = tpu.matmul %61, %63, %cst_48 {dimension_numbers = #tpu.dot_dimension_numbers<[1], [0], [0], [1], [0, 0, 1, 1], [], []>} : vector<1x256xf32>, vector<256x32xf32>, vector<1x32xf32> -> vector<1x32xf32>
    %65 = arith.addf %60, %64 : vector<1x32xf32>
    %66 = vector.extract_strided_slice %29 {offsets = [7, 0], sizes = [1, 256], strides = [1, 1]} : vector<16x256xf32> to vector<1x256xf32>
    %c7 = arith.constant 7 : index
    %c0_49 = arith.constant 0 : index
    %c0_50 = arith.constant 0 : index
    %67 = vector.load %arg9[%c7, %c0_49, %c0_50] : memref<16x256x32xf32, #tpu.memory_space<vmem>>, vector<1x256x32xf32>
    %68 = vector.shape_cast %67 : vector<1x256x32xf32> to vector<256x32xf32>
    %cst_51 = arith.constant dense<0.000000e+00> : vector<1x32xf32>
    %69 = tpu.matmul %66, %68, %cst_51 {dimension_numbers = #tpu.dot_dimension_numbers<[1], [0], [0], [1], [0, 0, 1, 1], [], []>} : vector<1x256xf32>, vector<256x32xf32>, vector<1x32xf32> -> vector<1x32xf32>
    %70 = arith.addf %65, %69 : vector<1x32xf32>
    %71 = vector.extract_strided_slice %29 {offsets = [8, 0], sizes = [1, 256], strides = [1, 1]} : vector<16x256xf32> to vector<1x256xf32>
    %c8 = arith.constant 8 : index
    %c0_52 = arith.constant 0 : index
    %c0_53 = arith.constant 0 : index
    %72 = vector.load %arg9[%c8, %c0_52, %c0_53] : memref<16x256x32xf32, #tpu.memory_space<vmem>>, vector<1x256x32xf32>
    %73 = vector.shape_cast %72 : vector<1x256x32xf32> to vector<256x32xf32>
    %cst_54 = arith.constant dense<0.000000e+00> : vector<1x32xf32>
    %74 = tpu.matmul %71, %73, %cst_54 {dimension_numbers = #tpu.dot_dimension_numbers<[1], [0], [0], [1], [0, 0, 1, 1], [], []>} : vector<1x256xf32>, vector<256x32xf32>, vector<1x32xf32> -> vector<1x32xf32>
    %75 = arith.addf %70, %74 : vector<1x32xf32>
    %76 = vector.extract_strided_slice %29 {offsets = [9, 0], sizes = [1, 256], strides = [1, 1]} : vector<16x256xf32> to vector<1x256xf32>
    %c9 = arith.constant 9 : index
    %c0_55 = arith.constant 0 : index
    %c0_56 = arith.constant 0 : index
    %77 = vector.load %arg9[%c9, %c0_55, %c0_56] : memref<16x256x32xf32, #tpu.memory_space<vmem>>, vector<1x256x32xf32>
    %78 = vector.shape_cast %77 : vector<1x256x32xf32> to vector<256x32xf32>
    %cst_57 = arith.constant dense<0.000000e+00> : vector<1x32xf32>
    %79 = tpu.matmul %76, %78, %cst_57 {dimension_numbers = #tpu.dot_dimension_numbers<[1], [0], [0], [1], [0, 0, 1, 1], [], []>} : vector<1x256xf32>, vector<256x32xf32>, vector<1x32xf32> -> vector<1x32xf32>
    %80 = arith.addf %75, %79 : vector<1x32xf32>
    %81 = vector.extract_strided_slice %29 {offsets = [10, 0], sizes = [1, 256], strides = [1, 1]} : vector<16x256xf32> to vector<1x256xf32>
    %c10 = arith.constant 10 : index
    %c0_58 = arith.constant 0 : index
    %c0_59 = arith.constant 0 : index
    %82 = vector.load %arg9[%c10, %c0_58, %c0_59] : memref<16x256x32xf32, #tpu.memory_space<vmem>>, vector<1x256x32xf32>
    %83 = vector.shape_cast %82 : vector<1x256x32xf32> to vector<256x32xf32>
    %cst_60 = arith.constant dense<0.000000e+00> : vector<1x32xf32>
    %84 = tpu.matmul %81, %83, %cst_60 {dimension_numbers = #tpu.dot_dimension_numbers<[1], [0], [0], [1], [0, 0, 1, 1], [], []>} : vector<1x256xf32>, vector<256x32xf32>, vector<1x32xf32> -> vector<1x32xf32>
    %85 = arith.addf %80, %84 : vector<1x32xf32>
    %86 = vector.extract_strided_slice %29 {offsets = [11, 0], sizes = [1, 256], strides = [1, 1]} : vector<16x256xf32> to vector<1x256xf32>
    %c11 = arith.constant 11 : index
    %c0_61 = arith.constant 0 : index
    %c0_62 = arith.constant 0 : index
    %87 = vector.load %arg9[%c11, %c0_61, %c0_62] : memref<16x256x32xf32, #tpu.memory_space<vmem>>, vector<1x256x32xf32>
    %88 = vector.shape_cast %87 : vector<1x256x32xf32> to vector<256x32xf32>
    %cst_63 = arith.constant dense<0.000000e+00> : vector<1x32xf32>
    %89 = tpu.matmul %86, %88, %cst_63 {dimension_numbers = #tpu.dot_dimension_numbers<[1], [0], [0], [1], [0, 0, 1, 1], [], []>} : vector<1x256xf32>, vector<256x32xf32>, vector<1x32xf32> -> vector<1x32xf32>
    %90 = arith.addf %85, %89 : vector<1x32xf32>
    %91 = vector.extract_strided_slice %29 {offsets = [12, 0], sizes = [1, 256], strides = [1, 1]} : vector<16x256xf32> to vector<1x256xf32>
    %c12 = arith.constant 12 : index
    %c0_64 = arith.constant 0 : index
    %c0_65 = arith.constant 0 : index
    %92 = vector.load %arg9[%c12, %c0_64, %c0_65] : memref<16x256x32xf32, #tpu.memory_space<vmem>>, vector<1x256x32xf32>
    %93 = vector.shape_cast %92 : vector<1x256x32xf32> to vector<256x32xf32>
    %cst_66 = arith.constant dense<0.000000e+00> : vector<1x32xf32>
    %94 = tpu.matmul %91, %93, %cst_66 {dimension_numbers = #tpu.dot_dimension_numbers<[1], [0], [0], [1], [0, 0, 1, 1], [], []>} : vector<1x256xf32>, vector<256x32xf32>, vector<1x32xf32> -> vector<1x32xf32>
    %95 = arith.addf %90, %94 : vector<1x32xf32>
    %96 = vector.extract_strided_slice %29 {offsets = [13, 0], sizes = [1, 256], strides = [1, 1]} : vector<16x256xf32> to vector<1x256xf32>
    %c13 = arith.constant 13 : index
    %c0_67 = arith.constant 0 : index
    %c0_68 = arith.constant 0 : index
    %97 = vector.load %arg9[%c13, %c0_67, %c0_68] : memref<16x256x32xf32, #tpu.memory_space<vmem>>, vector<1x256x32xf32>
    %98 = vector.shape_cast %97 : vector<1x256x32xf32> to vector<256x32xf32>
    %cst_69 = arith.constant dense<0.000000e+00> : vector<1x32xf32>
    %99 = tpu.matmul %96, %98, %cst_69 {dimension_numbers = #tpu.dot_dimension_numbers<[1], [0], [0], [1], [0, 0, 1, 1], [], []>} : vector<1x256xf32>, vector<256x32xf32>, vector<1x32xf32> -> vector<1x32xf32>
    %100 = arith.addf %95, %99 : vector<1x32xf32>
    %101 = vector.extract_strided_slice %29 {offsets = [14, 0], sizes = [1, 256], strides = [1, 1]} : vector<16x256xf32> to vector<1x256xf32>
    %c14 = arith.constant 14 : index
    %c0_70 = arith.constant 0 : index
    %c0_71 = arith.constant 0 : index
    %102 = vector.load %arg9[%c14, %c0_70, %c0_71] : memref<16x256x32xf32, #tpu.memory_space<vmem>>, vector<1x256x32xf32>
    %103 = vector.shape_cast %102 : vector<1x256x32xf32> to vector<256x32xf32>
    %cst_72 = arith.constant dense<0.000000e+00> : vector<1x32xf32>
    %104 = tpu.matmul %101, %103, %cst_72 {dimension_numbers = #tpu.dot_dimension_numbers<[1], [0], [0], [1], [0, 0, 1, 1], [], []>} : vector<1x256xf32>, vector<256x32xf32>, vector<1x32xf32> -> vector<1x32xf32>
    %105 = arith.addf %100, %104 : vector<1x32xf32>
    %106 = vector.extract_strided_slice %29 {offsets = [15, 0], sizes = [1, 256], strides = [1, 1]} : vector<16x256xf32> to vector<1x256xf32>
    %c15 = arith.constant 15 : index
    %c0_73 = arith.constant 0 : index
    %c0_74 = arith.constant 0 : index
    %107 = vector.load %arg9[%c15, %c0_73, %c0_74] : memref<16x256x32xf32, #tpu.memory_space<vmem>>, vector<1x256x32xf32>
    %108 = vector.shape_cast %107 : vector<1x256x32xf32> to vector<256x32xf32>
    %cst_75 = arith.constant dense<0.000000e+00> : vector<1x32xf32>
    %109 = tpu.matmul %106, %108, %cst_75 {dimension_numbers = #tpu.dot_dimension_numbers<[1], [0], [0], [1], [0, 0, 1, 1], [], []>} : vector<1x256xf32>, vector<256x32xf32>, vector<1x32xf32> -> vector<1x32xf32>
    %110 = arith.addf %105, %109 : vector<1x32xf32>
    %cst_76 = arith.constant 0.000000e+00 : f32
    %111 = vector.broadcast %cst_76 : f32 to vector<1x32xf32>
    %112 = arith.maximumf %110, %111 : vector<1x32xf32>
    %c0_77 = arith.constant 0 : index
    %c0_78 = arith.constant 0 : index
    %113 = vector.load %arg11[%c0_77, %c0_78] : memref<32x8xf32, #tpu.memory_space<vmem>>, vector<32x8xf32>
    %cst_79 = arith.constant dense<0.000000e+00> : vector<1x8xf32>
    %114 = tpu.matmul %112, %113, %cst_79 {dimension_numbers = #tpu.dot_dimension_numbers<[1], [0], [0], [1], [0, 0, 1, 1], [], []>} : vector<1x32xf32>, vector<32x8xf32>, vector<1x8xf32> -> vector<1x8xf32>
    %c0_80 = arith.constant 0 : index
    %c0_81 = arith.constant 0 : index
    %115 = vector.load %arg12[%c0_80, %c0_81] : memref<1x8xf32, #tpu.memory_space<vmem>>, vector<1x8xf32>
    %116 = arith.addf %114, %115 : vector<1x8xf32>
    %cst_82 = arith.constant dense<0xFF800000> : vector<1xf32>
    %117 = vector.multi_reduction <maximumf>, %116, %cst_82 [1] : vector<1x8xf32> to vector<1xf32>
    %118 = vector.shape_cast %117 : vector<1xf32> to vector<1x1xf32>
    %119 = vector.broadcast %118 : vector<1x1xf32> to vector<1x8xf32>
    %120 = arith.subf %116, %119 : vector<1x8xf32>
    %121 = math.exp %120 : vector<1x8xf32>
    %cst_83 = arith.constant dense<0.000000e+00> : vector<1xf32>
    %122 = vector.multi_reduction <add>, %121, %cst_83 [1] : vector<1x8xf32> to vector<1xf32>
    %123 = vector.shape_cast %122 : vector<1xf32> to vector<1x1xf32>
    %124 = vector.broadcast %123 : vector<1x1xf32> to vector<1x8xf32>
    %125 = arith.divf %121, %124 : vector<1x8xf32>
    %c1_84 = arith.constant 1 : index
    %c0_85 = arith.constant 0 : index
    %c0_86 = arith.constant 0 : index
    %126 = vector.load %arg0[%c1_84, %c0_85, %c0_86] : memref<2x4x256xf32, #tpu.memory_space<vmem>>, vector<1x4x256xf32>
    %127 = vector.shape_cast %126 : vector<1x4x256xf32> to vector<4x256xf32>
    %c0_87 = arith.constant 0 : index
    %c0_88 = arith.constant 0 : index
    %128 = vector.load %arg1[%c0_87, %c0_88] : memref<8x4xf32, #tpu.memory_space<vmem>>, vector<8x4xf32>
    %c0_89 = arith.constant 0 : index
    %c0_90 = arith.constant 0 : index
    %129 = vector.load %arg2[%c0_89, %c0_90] : memref<8x1xf32, #tpu.memory_space<vmem>>, vector<8x1xf32>
    %cst_91 = arith.constant dense<0.000000e+00> : vector<8x256xf32>
    %130 = tpu.matmul %128, %127, %cst_91 {dimension_numbers = #tpu.dot_dimension_numbers<[1], [0], [0], [1], [0, 0, 1, 1], [], []>} : vector<8x4xf32>, vector<4x256xf32>, vector<8x256xf32> -> vector<8x256xf32>
    %131 = vector.broadcast %129 : vector<8x1xf32> to vector<8x256xf32>
    %132 = arith.addf %130, %131 : vector<8x256xf32>
    %cst_92 = arith.constant 0.000000e+00 : f32
    %133 = vector.broadcast %cst_92 : f32 to vector<8x256xf32>
    %134 = arith.maximumf %132, %133 : vector<8x256xf32>
    %c0_93 = arith.constant 0 : index
    %c0_94 = arith.constant 0 : index
    %135 = vector.load %arg3[%c0_93, %c0_94] : memref<8x8xf32, #tpu.memory_space<vmem>>, vector<8x8xf32>
    %c0_95 = arith.constant 0 : index
    %c0_96 = arith.constant 0 : index
    %136 = vector.load %arg4[%c0_95, %c0_96] : memref<8x1xf32, #tpu.memory_space<vmem>>, vector<8x1xf32>
    %cst_97 = arith.constant dense<0.000000e+00> : vector<8x256xf32>
    %137 = tpu.matmul %135, %134, %cst_97 {dimension_numbers = #tpu.dot_dimension_numbers<[1], [0], [0], [1], [0, 0, 1, 1], [], []>} : vector<8x8xf32>, vector<8x256xf32>, vector<8x256xf32> -> vector<8x256xf32>
    %138 = vector.broadcast %136 : vector<8x1xf32> to vector<8x256xf32>
    %139 = arith.addf %137, %138 : vector<8x256xf32>
    %cst_98 = arith.constant 0.000000e+00 : f32
    %140 = vector.broadcast %cst_98 : f32 to vector<8x256xf32>
    %141 = arith.maximumf %139, %140 : vector<8x256xf32>
    %c0_99 = arith.constant 0 : index
    %c0_100 = arith.constant 0 : index
    %142 = vector.load %arg5[%c0_99, %c0_100] : memref<16x8xf32, #tpu.memory_space<vmem>>, vector<16x8xf32>
    %c0_101 = arith.constant 0 : index
    %c0_102 = arith.constant 0 : index
    %143 = vector.load %arg6[%c0_101, %c0_102] : memref<16x1xf32, #tpu.memory_space<vmem>>, vector<16x1xf32>
    %cst_103 = arith.constant dense<0.000000e+00> : vector<16x256xf32>
    %144 = tpu.matmul %142, %141, %cst_103 {dimension_numbers = #tpu.dot_dimension_numbers<[1], [0], [0], [1], [0, 0, 1, 1], [], []>} : vector<16x8xf32>, vector<8x256xf32>, vector<16x256xf32> -> vector<16x256xf32>
    %145 = vector.broadcast %143 : vector<16x1xf32> to vector<16x256xf32>
    %146 = arith.addf %144, %145 : vector<16x256xf32>
    %cst_104 = arith.constant 0.000000e+00 : f32
    %147 = vector.broadcast %cst_104 : f32 to vector<16x256xf32>
    %148 = arith.maximumf %146, %147 : vector<16x256xf32>
    %c0_105 = arith.constant 0 : index
    %c0_106 = arith.constant 0 : index
    %149 = vector.load %arg7[%c0_105, %c0_106] : memref<16x16xf32, #tpu.memory_space<vmem>>, vector<16x16xf32>
    %c0_107 = arith.constant 0 : index
    %c0_108 = arith.constant 0 : index
    %150 = vector.load %arg8[%c0_107, %c0_108] : memref<16x1xf32, #tpu.memory_space<vmem>>, vector<16x1xf32>
    %cst_109 = arith.constant dense<0.000000e+00> : vector<16x256xf32>
    %151 = tpu.matmul %149, %148, %cst_109 {dimension_numbers = #tpu.dot_dimension_numbers<[1], [0], [0], [1], [0, 0, 1, 1], [], []>} : vector<16x16xf32>, vector<16x256xf32>, vector<16x256xf32> -> vector<16x256xf32>
    %152 = vector.broadcast %150 : vector<16x1xf32> to vector<16x256xf32>
    %153 = arith.addf %151, %152 : vector<16x256xf32>
    %cst_110 = arith.constant 0.000000e+00 : f32
    %154 = vector.broadcast %cst_110 : f32 to vector<16x256xf32>
    %155 = arith.maximumf %153, %154 : vector<16x256xf32>
    %c0_111 = arith.constant 0 : index
    %c0_112 = arith.constant 0 : index
    %156 = vector.load %arg10[%c0_111, %c0_112] : memref<1x32xf32, #tpu.memory_space<vmem>>, vector<1x32xf32>
    %157 = vector.extract_strided_slice %155 {offsets = [0, 0], sizes = [1, 256], strides = [1, 1]} : vector<16x256xf32> to vector<1x256xf32>
    %c0_113 = arith.constant 0 : index
    %c0_114 = arith.constant 0 : index
    %c0_115 = arith.constant 0 : index
    %158 = vector.load %arg9[%c0_113, %c0_114, %c0_115] : memref<16x256x32xf32, #tpu.memory_space<vmem>>, vector<1x256x32xf32>
    %159 = vector.shape_cast %158 : vector<1x256x32xf32> to vector<256x32xf32>
    %cst_116 = arith.constant dense<0.000000e+00> : vector<1x32xf32>
    %160 = tpu.matmul %157, %159, %cst_116 {dimension_numbers = #tpu.dot_dimension_numbers<[1], [0], [0], [1], [0, 0, 1, 1], [], []>} : vector<1x256xf32>, vector<256x32xf32>, vector<1x32xf32> -> vector<1x32xf32>
    %161 = arith.addf %156, %160 : vector<1x32xf32>
    %162 = vector.extract_strided_slice %155 {offsets = [1, 0], sizes = [1, 256], strides = [1, 1]} : vector<16x256xf32> to vector<1x256xf32>
    %c1_117 = arith.constant 1 : index
    %c0_118 = arith.constant 0 : index
    %c0_119 = arith.constant 0 : index
    %163 = vector.load %arg9[%c1_117, %c0_118, %c0_119] : memref<16x256x32xf32, #tpu.memory_space<vmem>>, vector<1x256x32xf32>
    %164 = vector.shape_cast %163 : vector<1x256x32xf32> to vector<256x32xf32>
    %cst_120 = arith.constant dense<0.000000e+00> : vector<1x32xf32>
    %165 = tpu.matmul %162, %164, %cst_120 {dimension_numbers = #tpu.dot_dimension_numbers<[1], [0], [0], [1], [0, 0, 1, 1], [], []>} : vector<1x256xf32>, vector<256x32xf32>, vector<1x32xf32> -> vector<1x32xf32>
    %166 = arith.addf %161, %165 : vector<1x32xf32>
    %167 = vector.extract_strided_slice %155 {offsets = [2, 0], sizes = [1, 256], strides = [1, 1]} : vector<16x256xf32> to vector<1x256xf32>
    %c2_121 = arith.constant 2 : index
    %c0_122 = arith.constant 0 : index
    %c0_123 = arith.constant 0 : index
    %168 = vector.load %arg9[%c2_121, %c0_122, %c0_123] : memref<16x256x32xf32, #tpu.memory_space<vmem>>, vector<1x256x32xf32>
    %169 = vector.shape_cast %168 : vector<1x256x32xf32> to vector<256x32xf32>
    %cst_124 = arith.constant dense<0.000000e+00> : vector<1x32xf32>
    %170 = tpu.matmul %167, %169, %cst_124 {dimension_numbers = #tpu.dot_dimension_numbers<[1], [0], [0], [1], [0, 0, 1, 1], [], []>} : vector<1x256xf32>, vector<256x32xf32>, vector<1x32xf32> -> vector<1x32xf32>
    %171 = arith.addf %166, %170 : vector<1x32xf32>
    %172 = vector.extract_strided_slice %155 {offsets = [3, 0], sizes = [1, 256], strides = [1, 1]} : vector<16x256xf32> to vector<1x256xf32>
    %c3_125 = arith.constant 3 : index
    %c0_126 = arith.constant 0 : index
    %c0_127 = arith.constant 0 : index
    %173 = vector.load %arg9[%c3_125, %c0_126, %c0_127] : memref<16x256x32xf32, #tpu.memory_space<vmem>>, vector<1x256x32xf32>
    %174 = vector.shape_cast %173 : vector<1x256x32xf32> to vector<256x32xf32>
    %cst_128 = arith.constant dense<0.000000e+00> : vector<1x32xf32>
    %175 = tpu.matmul %172, %174, %cst_128 {dimension_numbers = #tpu.dot_dimension_numbers<[1], [0], [0], [1], [0, 0, 1, 1], [], []>} : vector<1x256xf32>, vector<256x32xf32>, vector<1x32xf32> -> vector<1x32xf32>
    %176 = arith.addf %171, %175 : vector<1x32xf32>
    %177 = vector.extract_strided_slice %155 {offsets = [4, 0], sizes = [1, 256], strides = [1, 1]} : vector<16x256xf32> to vector<1x256xf32>
    %c4_129 = arith.constant 4 : index
    %c0_130 = arith.constant 0 : index
    %c0_131 = arith.constant 0 : index
    %178 = vector.load %arg9[%c4_129, %c0_130, %c0_131] : memref<16x256x32xf32, #tpu.memory_space<vmem>>, vector<1x256x32xf32>
    %179 = vector.shape_cast %178 : vector<1x256x32xf32> to vector<256x32xf32>
    %cst_132 = arith.constant dense<0.000000e+00> : vector<1x32xf32>
    %180 = tpu.matmul %177, %179, %cst_132 {dimension_numbers = #tpu.dot_dimension_numbers<[1], [0], [0], [1], [0, 0, 1, 1], [], []>} : vector<1x256xf32>, vector<256x32xf32>, vector<1x32xf32> -> vector<1x32xf32>
    %181 = arith.addf %176, %180 : vector<1x32xf32>
    %182 = vector.extract_strided_slice %155 {offsets = [5, 0], sizes = [1, 256], strides = [1, 1]} : vector<16x256xf32> to vector<1x256xf32>
    %c5_133 = arith.constant 5 : index
    %c0_134 = arith.constant 0 : index
    %c0_135 = arith.constant 0 : index
    %183 = vector.load %arg9[%c5_133, %c0_134, %c0_135] : memref<16x256x32xf32, #tpu.memory_space<vmem>>, vector<1x256x32xf32>
    %184 = vector.shape_cast %183 : vector<1x256x32xf32> to vector<256x32xf32>
    %cst_136 = arith.constant dense<0.000000e+00> : vector<1x32xf32>
    %185 = tpu.matmul %182, %184, %cst_136 {dimension_numbers = #tpu.dot_dimension_numbers<[1], [0], [0], [1], [0, 0, 1, 1], [], []>} : vector<1x256xf32>, vector<256x32xf32>, vector<1x32xf32> -> vector<1x32xf32>
    %186 = arith.addf %181, %185 : vector<1x32xf32>
    %187 = vector.extract_strided_slice %155 {offsets = [6, 0], sizes = [1, 256], strides = [1, 1]} : vector<16x256xf32> to vector<1x256xf32>
    %c6_137 = arith.constant 6 : index
    %c0_138 = arith.constant 0 : index
    %c0_139 = arith.constant 0 : index
    %188 = vector.load %arg9[%c6_137, %c0_138, %c0_139] : memref<16x256x32xf32, #tpu.memory_space<vmem>>, vector<1x256x32xf32>
    %189 = vector.shape_cast %188 : vector<1x256x32xf32> to vector<256x32xf32>
    %cst_140 = arith.constant dense<0.000000e+00> : vector<1x32xf32>
    %190 = tpu.matmul %187, %189, %cst_140 {dimension_numbers = #tpu.dot_dimension_numbers<[1], [0], [0], [1], [0, 0, 1, 1], [], []>} : vector<1x256xf32>, vector<256x32xf32>, vector<1x32xf32> -> vector<1x32xf32>
    %191 = arith.addf %186, %190 : vector<1x32xf32>
    %192 = vector.extract_strided_slice %155 {offsets = [7, 0], sizes = [1, 256], strides = [1, 1]} : vector<16x256xf32> to vector<1x256xf32>
    %c7_141 = arith.constant 7 : index
    %c0_142 = arith.constant 0 : index
    %c0_143 = arith.constant 0 : index
    %193 = vector.load %arg9[%c7_141, %c0_142, %c0_143] : memref<16x256x32xf32, #tpu.memory_space<vmem>>, vector<1x256x32xf32>
    %194 = vector.shape_cast %193 : vector<1x256x32xf32> to vector<256x32xf32>
    %cst_144 = arith.constant dense<0.000000e+00> : vector<1x32xf32>
    %195 = tpu.matmul %192, %194, %cst_144 {dimension_numbers = #tpu.dot_dimension_numbers<[1], [0], [0], [1], [0, 0, 1, 1], [], []>} : vector<1x256xf32>, vector<256x32xf32>, vector<1x32xf32> -> vector<1x32xf32>
    %196 = arith.addf %191, %195 : vector<1x32xf32>
    %197 = vector.extract_strided_slice %155 {offsets = [8, 0], sizes = [1, 256], strides = [1, 1]} : vector<16x256xf32> to vector<1x256xf32>
    %c8_145 = arith.constant 8 : index
    %c0_146 = arith.constant 0 : index
    %c0_147 = arith.constant 0 : index
    %198 = vector.load %arg9[%c8_145, %c0_146, %c0_147] : memref<16x256x32xf32, #tpu.memory_space<vmem>>, vector<1x256x32xf32>
    %199 = vector.shape_cast %198 : vector<1x256x32xf32> to vector<256x32xf32>
    %cst_148 = arith.constant dense<0.000000e+00> : vector<1x32xf32>
    %200 = tpu.matmul %197, %199, %cst_148 {dimension_numbers = #tpu.dot_dimension_numbers<[1], [0], [0], [1], [0, 0, 1, 1], [], []>} : vector<1x256xf32>, vector<256x32xf32>, vector<1x32xf32> -> vector<1x32xf32>
    %201 = arith.addf %196, %200 : vector<1x32xf32>
    %202 = vector.extract_strided_slice %155 {offsets = [9, 0], sizes = [1, 256], strides = [1, 1]} : vector<16x256xf32> to vector<1x256xf32>
    %c9_149 = arith.constant 9 : index
    %c0_150 = arith.constant 0 : index
    %c0_151 = arith.constant 0 : index
    %203 = vector.load %arg9[%c9_149, %c0_150, %c0_151] : memref<16x256x32xf32, #tpu.memory_space<vmem>>, vector<1x256x32xf32>
    %204 = vector.shape_cast %203 : vector<1x256x32xf32> to vector<256x32xf32>
    %cst_152 = arith.constant dense<0.000000e+00> : vector<1x32xf32>
    %205 = tpu.matmul %202, %204, %cst_152 {dimension_numbers = #tpu.dot_dimension_numbers<[1], [0], [0], [1], [0, 0, 1, 1], [], []>} : vector<1x256xf32>, vector<256x32xf32>, vector<1x32xf32> -> vector<1x32xf32>
    %206 = arith.addf %201, %205 : vector<1x32xf32>
    %207 = vector.extract_strided_slice %155 {offsets = [10, 0], sizes = [1, 256], strides = [1, 1]} : vector<16x256xf32> to vector<1x256xf32>
    %c10_153 = arith.constant 10 : index
    %c0_154 = arith.constant 0 : index
    %c0_155 = arith.constant 0 : index
    %208 = vector.load %arg9[%c10_153, %c0_154, %c0_155] : memref<16x256x32xf32, #tpu.memory_space<vmem>>, vector<1x256x32xf32>
    %209 = vector.shape_cast %208 : vector<1x256x32xf32> to vector<256x32xf32>
    %cst_156 = arith.constant dense<0.000000e+00> : vector<1x32xf32>
    %210 = tpu.matmul %207, %209, %cst_156 {dimension_numbers = #tpu.dot_dimension_numbers<[1], [0], [0], [1], [0, 0, 1, 1], [], []>} : vector<1x256xf32>, vector<256x32xf32>, vector<1x32xf32> -> vector<1x32xf32>
    %211 = arith.addf %206, %210 : vector<1x32xf32>
    %212 = vector.extract_strided_slice %155 {offsets = [11, 0], sizes = [1, 256], strides = [1, 1]} : vector<16x256xf32> to vector<1x256xf32>
    %c11_157 = arith.constant 11 : index
    %c0_158 = arith.constant 0 : index
    %c0_159 = arith.constant 0 : index
    %213 = vector.load %arg9[%c11_157, %c0_158, %c0_159] : memref<16x256x32xf32, #tpu.memory_space<vmem>>, vector<1x256x32xf32>
    %214 = vector.shape_cast %213 : vector<1x256x32xf32> to vector<256x32xf32>
    %cst_160 = arith.constant dense<0.000000e+00> : vector<1x32xf32>
    %215 = tpu.matmul %212, %214, %cst_160 {dimension_numbers = #tpu.dot_dimension_numbers<[1], [0], [0], [1], [0, 0, 1, 1], [], []>} : vector<1x256xf32>, vector<256x32xf32>, vector<1x32xf32> -> vector<1x32xf32>
    %216 = arith.addf %211, %215 : vector<1x32xf32>
    %217 = vector.extract_strided_slice %155 {offsets = [12, 0], sizes = [1, 256], strides = [1, 1]} : vector<16x256xf32> to vector<1x256xf32>
    %c12_161 = arith.constant 12 : index
    %c0_162 = arith.constant 0 : index
    %c0_163 = arith.constant 0 : index
    %218 = vector.load %arg9[%c12_161, %c0_162, %c0_163] : memref<16x256x32xf32, #tpu.memory_space<vmem>>, vector<1x256x32xf32>
    %219 = vector.shape_cast %218 : vector<1x256x32xf32> to vector<256x32xf32>
    %cst_164 = arith.constant dense<0.000000e+00> : vector<1x32xf32>
    %220 = tpu.matmul %217, %219, %cst_164 {dimension_numbers = #tpu.dot_dimension_numbers<[1], [0], [0], [1], [0, 0, 1, 1], [], []>} : vector<1x256xf32>, vector<256x32xf32>, vector<1x32xf32> -> vector<1x32xf32>
    %221 = arith.addf %216, %220 : vector<1x32xf32>
    %222 = vector.extract_strided_slice %155 {offsets = [13, 0], sizes = [1, 256], strides = [1, 1]} : vector<16x256xf32> to vector<1x256xf32>
    %c13_165 = arith.constant 13 : index
    %c0_166 = arith.constant 0 : index
    %c0_167 = arith.constant 0 : index
    %223 = vector.load %arg9[%c13_165, %c0_166, %c0_167] : memref<16x256x32xf32, #tpu.memory_space<vmem>>, vector<1x256x32xf32>
    %224 = vector.shape_cast %223 : vector<1x256x32xf32> to vector<256x32xf32>
    %cst_168 = arith.constant dense<0.000000e+00> : vector<1x32xf32>
    %225 = tpu.matmul %222, %224, %cst_168 {dimension_numbers = #tpu.dot_dimension_numbers<[1], [0], [0], [1], [0, 0, 1, 1], [], []>} : vector<1x256xf32>, vector<256x32xf32>, vector<1x32xf32> -> vector<1x32xf32>
    %226 = arith.addf %221, %225 : vector<1x32xf32>
    %227 = vector.extract_strided_slice %155 {offsets = [14, 0], sizes = [1, 256], strides = [1, 1]} : vector<16x256xf32> to vector<1x256xf32>
    %c14_169 = arith.constant 14 : index
    %c0_170 = arith.constant 0 : index
    %c0_171 = arith.constant 0 : index
    %228 = vector.load %arg9[%c14_169, %c0_170, %c0_171] : memref<16x256x32xf32, #tpu.memory_space<vmem>>, vector<1x256x32xf32>
    %229 = vector.shape_cast %228 : vector<1x256x32xf32> to vector<256x32xf32>
    %cst_172 = arith.constant dense<0.000000e+00> : vector<1x32xf32>
    %230 = tpu.matmul %227, %229, %cst_172 {dimension_numbers = #tpu.dot_dimension_numbers<[1], [0], [0], [1], [0, 0, 1, 1], [], []>} : vector<1x256xf32>, vector<256x32xf32>, vector<1x32xf32> -> vector<1x32xf32>
    %231 = arith.addf %226, %230 : vector<1x32xf32>
    %232 = vector.extract_strided_slice %155 {offsets = [15, 0], sizes = [1, 256], strides = [1, 1]} : vector<16x256xf32> to vector<1x256xf32>
    %c15_173 = arith.constant 15 : index
    %c0_174 = arith.constant 0 : index
    %c0_175 = arith.constant 0 : index
    %233 = vector.load %arg9[%c15_173, %c0_174, %c0_175] : memref<16x256x32xf32, #tpu.memory_space<vmem>>, vector<1x256x32xf32>
    %234 = vector.shape_cast %233 : vector<1x256x32xf32> to vector<256x32xf32>
    %cst_176 = arith.constant dense<0.000000e+00> : vector<1x32xf32>
    %235 = tpu.matmul %232, %234, %cst_176 {dimension_numbers = #tpu.dot_dimension_numbers<[1], [0], [0], [1], [0, 0, 1, 1], [], []>} : vector<1x256xf32>, vector<256x32xf32>, vector<1x32xf32> -> vector<1x32xf32>
    %236 = arith.addf %231, %235 : vector<1x32xf32>
    %cst_177 = arith.constant 0.000000e+00 : f32
    %237 = vector.broadcast %cst_177 : f32 to vector<1x32xf32>
    %238 = arith.maximumf %236, %237 : vector<1x32xf32>
    %c0_178 = arith.constant 0 : index
    %c0_179 = arith.constant 0 : index
    %239 = vector.load %arg11[%c0_178, %c0_179] : memref<32x8xf32, #tpu.memory_space<vmem>>, vector<32x8xf32>
    %cst_180 = arith.constant dense<0.000000e+00> : vector<1x8xf32>
    %240 = tpu.matmul %238, %239, %cst_180 {dimension_numbers = #tpu.dot_dimension_numbers<[1], [0], [0], [1], [0, 0, 1, 1], [], []>} : vector<1x32xf32>, vector<32x8xf32>, vector<1x8xf32> -> vector<1x8xf32>
    %c0_181 = arith.constant 0 : index
    %c0_182 = arith.constant 0 : index
    %241 = vector.load %arg12[%c0_181, %c0_182] : memref<1x8xf32, #tpu.memory_space<vmem>>, vector<1x8xf32>
    %242 = arith.addf %240, %241 : vector<1x8xf32>
    %cst_183 = arith.constant dense<0xFF800000> : vector<1xf32>
    %243 = vector.multi_reduction <maximumf>, %242, %cst_183 [1] : vector<1x8xf32> to vector<1xf32>
    %244 = vector.shape_cast %243 : vector<1xf32> to vector<1x1xf32>
    %245 = vector.broadcast %244 : vector<1x1xf32> to vector<1x8xf32>
    %246 = arith.subf %242, %245 : vector<1x8xf32>
    %247 = math.exp %246 : vector<1x8xf32>
    %cst_184 = arith.constant dense<0.000000e+00> : vector<1xf32>
    %248 = vector.multi_reduction <add>, %247, %cst_184 [1] : vector<1x8xf32> to vector<1xf32>
    %249 = vector.shape_cast %248 : vector<1xf32> to vector<1x1xf32>
    %250 = vector.broadcast %249 : vector<1x1xf32> to vector<1x8xf32>
    %251 = arith.divf %247, %250 : vector<1x8xf32>
    %252 = arith.mulf %29, %29 : vector<16x256xf32>
    %cst_185 = arith.constant dense<0.000000e+00> : vector<16xf32>
    %253 = vector.multi_reduction <add>, %252, %cst_185 [1] : vector<16x256xf32> to vector<16xf32>
    %254 = vector.shape_cast %253 : vector<16xf32> to vector<16x1xf32>
    %cst_186 = arith.constant dense<0.000000e+00> : vector<1xf32>
    %255 = vector.multi_reduction <add>, %254, %cst_186 [0] : vector<16x1xf32> to vector<1xf32>
    %256 = vector.shape_cast %255 : vector<1xf32> to vector<1x1xf32>
    %257 = math.sqrt %256 : vector<1x1xf32>
    %cst_187 = arith.constant 9.99999996E-13 : f32
    %258 = vector.broadcast %cst_187 : f32 to vector<1x1xf32>
    %259 = arith.maximumf %257, %258 : vector<1x1xf32>
    %260 = arith.mulf %155, %155 : vector<16x256xf32>
    %cst_188 = arith.constant dense<0.000000e+00> : vector<16xf32>
    %261 = vector.multi_reduction <add>, %260, %cst_188 [1] : vector<16x256xf32> to vector<16xf32>
    %262 = vector.shape_cast %261 : vector<16xf32> to vector<16x1xf32>
    %cst_189 = arith.constant dense<0.000000e+00> : vector<1xf32>
    %263 = vector.multi_reduction <add>, %262, %cst_189 [0] : vector<16x1xf32> to vector<1xf32>
    %264 = vector.shape_cast %263 : vector<1xf32> to vector<1x1xf32>
    %265 = math.sqrt %264 : vector<1x1xf32>
    %cst_190 = arith.constant 9.99999996E-13 : f32
    %266 = vector.broadcast %cst_190 : f32 to vector<1x1xf32>
    %267 = arith.maximumf %265, %266 : vector<1x1xf32>
    %268 = arith.mulf %29, %29 : vector<16x256xf32>
    %cst_191 = arith.constant dense<0.000000e+00> : vector<16xf32>
    %269 = vector.multi_reduction <add>, %268, %cst_191 [1] : vector<16x256xf32> to vector<16xf32>
    %270 = vector.shape_cast %269 : vector<16xf32> to vector<16x1xf32>
    %cst_192 = arith.constant dense<0.000000e+00> : vector<1xf32>
    %271 = vector.multi_reduction <add>, %270, %cst_192 [0] : vector<16x1xf32> to vector<1xf32>
    %272 = vector.shape_cast %271 : vector<1xf32> to vector<1x1xf32>
    %273 = arith.mulf %259, %259 : vector<1x1xf32>
    %274 = arith.divf %272, %273 : vector<1x1xf32>
    %cst_193 = arith.constant 0.000000e+00 : f32
    %275 = vector.broadcast %cst_193 : f32 to vector<1x1xf32>
    %276 = arith.maximumf %274, %275 : vector<1x1xf32>
    %277 = arith.mulf %29, %155 : vector<16x256xf32>
    %cst_194 = arith.constant dense<0.000000e+00> : vector<16xf32>
    %278 = vector.multi_reduction <add>, %277, %cst_194 [1] : vector<16x256xf32> to vector<16xf32>
    %279 = vector.shape_cast %278 : vector<16xf32> to vector<16x1xf32>
    %cst_195 = arith.constant dense<0.000000e+00> : vector<1xf32>
    %280 = vector.multi_reduction <add>, %279, %cst_195 [0] : vector<16x1xf32> to vector<1xf32>
    %281 = vector.shape_cast %280 : vector<1xf32> to vector<1x1xf32>
    %282 = arith.mulf %259, %267 : vector<1x1xf32>
    %283 = arith.divf %281, %282 : vector<1x1xf32>
    %cst_196 = arith.constant 0.000000e+00 : f32
    %284 = vector.broadcast %cst_196 : f32 to vector<1x1xf32>
    %285 = arith.maximumf %283, %284 : vector<1x1xf32>
    %286 = arith.mulf %155, %155 : vector<16x256xf32>
    %cst_197 = arith.constant dense<0.000000e+00> : vector<16xf32>
    %287 = vector.multi_reduction <add>, %286, %cst_197 [1] : vector<16x256xf32> to vector<16xf32>
    %288 = vector.shape_cast %287 : vector<16xf32> to vector<16x1xf32>
    %cst_198 = arith.constant dense<0.000000e+00> : vector<1xf32>
    %289 = vector.multi_reduction <add>, %288, %cst_198 [0] : vector<16x1xf32> to vector<1xf32>
    %290 = vector.shape_cast %289 : vector<1xf32> to vector<1x1xf32>
    %291 = arith.mulf %267, %267 : vector<1x1xf32>
    %292 = arith.divf %290, %291 : vector<1x1xf32>
    %cst_199 = arith.constant 0.000000e+00 : f32
    %293 = vector.broadcast %cst_199 : f32 to vector<1x1xf32>
    %294 = arith.maximumf %292, %293 : vector<1x1xf32>
    %cst_200 = arith.constant 0.000000e+00 : f32
    %295 = vector.broadcast %cst_200 : f32 to vector<1x1xf32>
    %296 = arith.addf %276, %285 : vector<1x1xf32>
    %297 = vector.broadcast %276 : vector<1x1xf32> to vector<1x8xf32>
    %298 = arith.mulf %297, %125 : vector<1x8xf32>
    %299 = vector.broadcast %285 : vector<1x1xf32> to vector<1x8xf32>
    %300 = arith.mulf %299, %251 : vector<1x8xf32>
    %301 = arith.addf %298, %300 : vector<1x8xf32>
    %302 = vector.broadcast %296 : vector<1x1xf32> to vector<1x8xf32>
    %303 = arith.mulf %302, %125 : vector<1x8xf32>
    %304 = arith.subf %303, %301 : vector<1x8xf32>
    %305 = arith.mulf %304, %125 : vector<1x8xf32>
    %cst_201 = arith.constant dense<0.000000e+00> : vector<1xf32>
    %306 = vector.multi_reduction <add>, %305, %cst_201 [1] : vector<1x8xf32> to vector<1xf32>
    %307 = vector.shape_cast %306 : vector<1xf32> to vector<1x1xf32>
    %308 = arith.addf %295, %307 : vector<1x1xf32>
    %309 = arith.addf %285, %294 : vector<1x1xf32>
    %310 = vector.broadcast %285 : vector<1x1xf32> to vector<1x8xf32>
    %311 = arith.mulf %310, %125 : vector<1x8xf32>
    %312 = vector.broadcast %294 : vector<1x1xf32> to vector<1x8xf32>
    %313 = arith.mulf %312, %251 : vector<1x8xf32>
    %314 = arith.addf %311, %313 : vector<1x8xf32>
    %315 = vector.broadcast %309 : vector<1x1xf32> to vector<1x8xf32>
    %316 = arith.mulf %315, %251 : vector<1x8xf32>
    %317 = arith.subf %316, %314 : vector<1x8xf32>
    %318 = arith.mulf %317, %251 : vector<1x8xf32>
    %cst_202 = arith.constant dense<0.000000e+00> : vector<1xf32>
    %319 = vector.multi_reduction <add>, %318, %cst_202 [1] : vector<1x8xf32> to vector<1xf32>
    %320 = vector.shape_cast %319 : vector<1xf32> to vector<1x1xf32>
    %321 = arith.addf %308, %320 : vector<1x1xf32>
    %cst_203 = arith.constant 2.000000e+00 : f32
    %322 = vector.broadcast %cst_203 : f32 to vector<1x1xf32>
    %323 = arith.divf %321, %322 : vector<1x1xf32>
    %c0_204 = arith.constant 0 : index
    %c0_205 = arith.constant 0 : index
    %324 = vector.load %arg13[%c0_204, %c0_205] : memref<2x8xf32, #tpu.memory_space<vmem>>, vector<1x8xf32>
    tpu.vector_store %arg13[%c0_204, %c0_205], %116 {strides = array<i32>} : memref<2x8xf32, #tpu.memory_space<vmem>>, vector<1x8xf32>,
    %cst_206 = arith.constant 5.000000e-01 : f32
    %325 = vector.broadcast %cst_206 : f32 to vector<1x1xf32>
    %326 = arith.mulf %325, %323 : vector<1x1xf32>
    %327 = vector.broadcast %326 : vector<1x1xf32> to vector<1x8xf32>
    %328 = arith.subf %116, %327 : vector<1x8xf32>
    %c0_207 = arith.constant 0 : index
    %c0_208 = arith.constant 0 : index
    %329 = vector.load %arg14[%c0_207, %c0_208] : memref<2x8xf32, #tpu.memory_space<vmem>>, vector<1x8xf32>
    tpu.vector_store %arg14[%c0_207, %c0_208], %328 {strides = array<i32>} : memref<2x8xf32, #tpu.memory_space<vmem>>, vector<1x8xf32>,
    %c1_209 = arith.constant 1 : index
    %c0_210 = arith.constant 0 : index
    %330 = vector.load %arg13[%c1_209, %c0_210] : memref<2x8xf32, #tpu.memory_space<vmem>>, vector<1x8xf32>
    tpu.vector_store %arg13[%c1_209, %c0_210], %242 {strides = array<i32>} : memref<2x8xf32, #tpu.memory_space<vmem>>, vector<1x8xf32>,
    %cst_211 = arith.constant 5.000000e-01 : f32
    %331 = vector.broadcast %cst_211 : f32 to vector<1x1xf32>
    %332 = arith.mulf %331, %323 : vector<1x1xf32>
    %333 = vector.broadcast %332 : vector<1x1xf32> to vector<1x8xf32>
    %334 = arith.subf %242, %333 : vector<1x8xf32>
    %c1_212 = arith.constant 1 : index
    %c0_213 = arith.constant 0 : index
    %335 = vector.load %arg14[%c1_212, %c0_213] : memref<2x8xf32, #tpu.memory_space<vmem>>, vector<1x8xf32>
    tpu.vector_store %arg14[%c1_212, %c0_213], %334 {strides = array<i32>} : memref<2x8xf32, #tpu.memory_space<vmem>>, vector<1x8xf32>,
    return
  }
}

</mosaic_0001>

<bundles_post_ra>
// kernel: lame_fused.1
= control target key start
LH: loop header
LB: loop body
LE: loop exit
PB: predicated region body
PF: predicated region fallthrough
CT: control target
= control target key end

     0   :  { %20 = vsyncpa [#allocation3], 0  ;;  %vm62_vm0 = vcmask 1043456   ;;  %v9749_v2 = vmov 0.0   ;;  %v6756_v3 = vmov 0   ;;  %vm58_vm1 = vcmask 31744   ;;  %s9734_s0 = inlined_call_operand.vmem [shape: f32[2,4,256], index: 0, kind: input, shape index: {}]   ;;  %s9735_s1 = inlined_call_operand.vmem [shape: f32[8,4], index: 1, kind: input, shape index: {}]   ;;  %s9736_s2 = inlined_call_operand.vmem [shape: f32[8,1], index: 2, kind: input, shape index: {}]   ;;  %s9737_s3 = inlined_call_operand.vmem [shape: f32[8,8], index: 3, kind: input, shape index: {}]   ;;  %s9738_s4 = inlined_call_operand.vmem [shape: f32[8,1], index: 4, kind: input, shape index: {}]   ;;  %s9739_s5 = inlined_call_operand.vmem [shape: f32[16,8], index: 5, kind: input, shape index: {}]   ;;  %s9740_s6 = inlined_call_operand.vmem [shape: f32[16,1], index: 6, kind: input, shape index: {}]   ;;  %s9741_s7 = inlined_call_operand.vmem [shape: f32[16,16], index: 7, kind: input, shape index: {}]   ;;  %s9742_s8 = inlined_call_operand.vmem [shape: f32[16,1], index: 8, kind: input, shape index: {}]   ;;  %s9743_s9 = inlined_call_operand.vmem [shape: f32[16,256,32], index: 9, kind: input, shape index: {}]   ;;  %s9744_s10 = inlined_call_operand.vmem [shape: f32[1,32], index: 10, kind: input, shape index: {}]   ;;  %s9745_s11 = inlined_call_operand.vmem [shape: f32[32,8], index: 11, kind: input, shape index: {}]   ;;  %s9746_s12 = inlined_call_operand.vmem [shape: f32[1,8], index: 12, kind: input, shape index: {}]   ;;  %s9747_s13 = inlined_call_operand.hbm [shape: f32[2,8], index: 13, kind: output, shape index: {0}]   ;;  %s9748_s14 = inlined_call_operand.hbm [shape: f32[2,8], index: 14, kind: output, shape index: {1}]  }
   0x1   :  { %v48_v0 = vld [vmem:[%s9734_s0] sm:$0xff]  ;;  %131 = vmatprep.mubr.f32.mxu1 %v9749_v2  ;;  %6679 = vset.pattern.permute.xlu0 %v6756_v3 }
   0x2   :  { %v57_v1 = vcombine.high %v48_v0, %v48_v0  ;;  %v50_v4 = vld [vmem:[%s9736_s2] sm:$0xff]  ;;  %308 = vmatprep.mubr.f32.mxu0 %v9749_v2 }
   0x3   :  { %v49_v5 = vld [vmem:[%s9735_s1] sm:$0xff]  ;;  %53 = vperm.xlu0 %6679, %v50_v4  }
   0x4   :  { %21 = vsyncpa [#allocation5], 0  ;;  %3978 = vmatprep.subr.msk.mxu1 %vm62_vm0, %v57_v1  ;;  %v141_v6 = vld [vmem:[%s9738_s4] sm:$0xff]  ;;  %6680 = vset.pattern.permute.xlu1 %v6756_v3  ;;  %vm147_vm2 = vcmask 64512   ;;  %v227_v17 = vld [vmem:[%s9740_s6 + $0x8] sm:$0xff]  ;;  %vm339_vm3 = vcmask 130048  }
   0x5   :  { %3979 = vmatpush1.msk.msra.mxu1 %vm62_vm0, %v48_v0  ;;  %v327_v7 = vld [vmem:[%s9742_s8] sm:$0xff]  ;;  %v328_v18 = vld [vmem:[%s9742_s8 + $0x8] sm:$0xff]  ;;  %v446_v34 = vld [vmem:[%s9743_s9 + $0x90] sm:$0xff]  ;;  %vm6758_vm4 = vmmov 0   ;;  %vm2157_vm5 = vcmask 261120   ;;  %vm2231_vm6 = vcmask 57344  }
   0x6   :  { %3980 = vmatmul.mubr.msk.f32.vlgmr.msra.gmra.mrb[0].mxu1 %vm58_vm1, %v49_v5  ;;  %v140_v15 = vld [vmem:[%s9737_s3] sm:$0xff]  ;;  %v225_v27 = vld [vmem:[%s9739_s5 + $0x8] sm:$0xff]  ;;  %v447_v35 = vld [vmem:[%s9743_s9 + $0x98] sm:$0xff] }
   0x7   :  { %144 = vperm.xlu0 %6679, %v141_v6   ;;  %215 = vmatprep.mubr.f32.mxu1 %v9749_v2  ;;  %v226_v16 = vld [vmem:[%s9740_s6] sm:$0xff]  ;;  %v445_v29 = vld [vmem:[%s9743_s9 + $0x88] sm:$0xff]  ;;  %v430_v36 = vld [vmem:[%s9743_s9 + $0x10] sm:$0xff]  ;;  %v6918_v38 = vpack.c.bf16 %v447_v35, %v446_v34 }
   0x8   :  { %230 = vperm.xlu1 %6680, %v226_v16   ;;  %v224_v26 = vld [vmem:[%s9739_s5] sm:$0xff]  ;;  %v429_v32 = vld [vmem:[%s9743_s9 + $0x8] sm:$0xff]  ;;  %v431_v37 = vld [vmem:[%s9743_s9 + $0x18] sm:$0xff] }
   0x9   :  { %v444_v28 = vld [vmem:[%s9743_s9 + $0x80] sm:$0xff]  ;;  %v6920_v39 = vpack.c.bf16 %v431_v37, %v430_v36  ;;  %v449_v41 = vld [vmem:[%s9743_s9 + $0xa8] sm:$0xff]  ;;  %v450_v46 = vld [vmem:[%s9743_s9 + $0xb0] sm:$0xff] }
   0xa   :  { %v428_v30 = vld [vmem:[%s9743_s9] sm:$0xff]  ;;  %v6897_v31 = vpack.c.bf16 %v445_v29, %v444_v28  ;;  %v433_v44 = vld [vmem:[%s9743_s9 + $0x28] sm:$0xff]  ;;  %v451_v47 = vld [vmem:[%s9743_s9 + $0xb8] sm:$0xff] }
   0xb   :  { %331 = vperm.xlu0 %6679, %v327_v7   ;;  %v6902_v33 = vpack.c.bf16 %v429_v32, %v428_v30  ;;  %v448_v40 = vld [vmem:[%s9743_s9 + $0xa0] sm:$0xff]  ;;  %v6947_v48 = vpack.c.bf16 %v451_v47, %v450_v46  ;;  %v434_v49 = vld [vmem:[%s9743_s9 + $0x30] sm:$0xff]  ;;  %v435_v50 = vld [vmem:[%s9743_s9 + $0x38] sm:$0xff] }
   0xc   :  { %235 = vperm.xlu1 %6680, %v227_v17   ;;  %v6929_v42 = vpack.c.bf16 %v449_v41, %v448_v40  ;;  %v432_v43 = vld [vmem:[%s9743_s9 + $0x20] sm:$0xff]  ;;  %v453_v52 = vld [vmem:[%s9743_s9 + $0xc8] sm:$0xff]  ;;  %v6962_v53 = vpack.c.bf16 %v435_v50, %v434_v49  ;;  %v454_v57 = vld [vmem:[%s9743_s9 + $0xd0] sm:$0xff] }
   0xd   :  { %v6938_v45 = vpack.c.bf16 %v433_v44, %v432_v43  ;;  %v452_v51 = vld [vmem:[%s9743_s9 + $0xc0] sm:$0xff]  ;;  %v437_v56 = vld [vmem:[%s9743_s9 + $0x48] sm:$0xff]  ;;  %v455_v58 = vld [vmem:[%s9743_s9 + $0xd8] sm:$0xff] }
   0xe   :  { %v6965_v54 = vpack.c.bf16 %v453_v52, %v452_v51  ;;  %v436_v55 = vld [vmem:[%s9743_s9 + $0x40] sm:$0xff]  ;;  %v6983_v60 = vpack.c.bf16 %v455_v58, %v454_v57  ;;  %v438_v61 = vld [vmem:[%s9743_s9 + $0x50] sm:$0xff]  ;;  %v439_v62 = vld [vmem:[%s9743_s9 + $0x58] sm:$0xff] }
   0xf   :  { %v6980_v59 = vpack.c.bf16 %v437_v56, %v436_v55  ;;  %v456_v63 = vld [vmem:[%s9743_s9 + $0xe0] sm:$0xff]  ;;  %v457_v0 = vld [vmem:[%s9743_s9 + $0xe8] sm:$0xff]  ;;  %v6998_v1 = vpack.c.bf16 %v439_v62, %v438_v61  ;;  %v4004_v30 = vld [vmem:[%s9743_s9 + $0x190] sm:$0xff] }
  0x10   :  { %336 = vperm.xlu1 %6680, %v328_v18   ;;  %v7001_v3 = vpack.c.bf16 %v457_v0, %v456_v63  ;;  %v440_v4 = vld [vmem:[%s9743_s9 + $0x60] sm:$0xff]  ;;  %v441_v5 = vld [vmem:[%s9743_s9 + $0x68] sm:$0xff]  ;;  %v4005_v32 = vld [vmem:[%s9743_s9 + $0x198] sm:$0xff] }
  0x11   :  { %v7010_v6 = vpack.c.bf16 %v441_v5, %v440_v4  ;;  %v3986_v28 = vld [vmem:[%s9743_s9 + $0x100] sm:$0xff]  ;;  %v3987_v29 = vld [vmem:[%s9743_s9 + $0x108] sm:$0xff]  ;;  %v7048_v36 = vpack.c.bf16 %v4005_v32, %v4004_v30  ;;  %v3988_v37 = vld [vmem:[%s9743_s9 + $0x110] sm:$0xff] }
  0x12   :  { %v325_v34 = vld [vmem:[%s9741_s7] sm:$0xff]  ;;  %v7045_v35 = vpack.c.bf16 %v3987_v29, %v3986_v28  ;;  %v3989_v40 = vld [vmem:[%s9743_s9 + $0x118] sm:$0xff]  ;;  %v4007_v43 = vld [vmem:[%s9743_s9 + $0x1a8] sm:$0xff] }
  0x13   :  { %v4006_v41 = vld [vmem:[%s9743_s9 + $0x1a0] sm:$0xff]  ;;  %v326_v44 = vld [vmem:[%s9741_s7 + $0x8] sm:$0xff]  ;;  %v7068_v46 = vpack.c.bf16 %v3989_v40, %v3988_v37  ;;  %v4008_v51 = vld [vmem:[%s9743_s9 + $0x1b0] sm:$0xff] }
  0x14   :  { %v7071_v47 = vpack.c.bf16 %v4007_v43, %v4006_v41  ;;  %v3990_v49 = vld [vmem:[%s9743_s9 + $0x120] sm:$0xff]  ;;  %v3991_v50 = vld [vmem:[%s9743_s9 + $0x128] sm:$0xff]  ;;  %v4009_v52 = vld [vmem:[%s9743_s9 + $0x1b8] sm:$0xff] }
  0x15   :  { %v7087_v55 = vpack.c.bf16 %v3991_v50, %v3990_v49  ;;  %v7090_v56 = vpack.c.bf16 %v4009_v52, %v4008_v51  ;;  %v3992_v57 = vld [vmem:[%s9743_s9 + $0x130] sm:$0xff]  ;;  %v3993_v58 = vld [vmem:[%s9743_s9 + $0x138] sm:$0xff]  ;;  %v4010_v61 = vld [vmem:[%s9743_s9 + $0x1c0] sm:$0xff] }
  0x16   :  { %v4011_v62 = vld [vmem:[%s9743_s9 + $0x1c8] sm:$0xff]  ;;  %v7105_v63 = vpack.c.bf16 %v3993_v58, %v3992_v57  ;;  %v3994_v4 = vld [vmem:[%s9743_s9 + $0x140] sm:$0xff]  ;;  %v442_v28 = vld [vmem:[%s9743_s9 + $0x70] sm:$0xff] }
  0x17   :  { %v7108_v0 = vpack.c.bf16 %v4011_v62, %v4010_v61  ;;  %v3995_v5 = vld [vmem:[%s9743_s9 + $0x148] sm:$0xff]  ;;  %v443_v29 = vld [vmem:[%s9743_s9 + $0x78] sm:$0xff]  ;;  %v4016_v32 = vld [vmem:[%s9743_s9 + $0x1f0] sm:$0xff] }
  0x18   :  { %v7171_v30 = vpack.c.bf16 %v443_v29, %v442_v28  ;;  %v4000_v40 = vld [vmem:[%s9743_s9 + $0x170] sm:$0xff]  ;;  %v4001_v41 = vld [vmem:[%s9743_s9 + $0x178] sm:$0xff]  ;;  %v4035_v49 = vld [vmem:[%s9743_s9 + $0x288] sm:$0xff] }
  0x19   :  { %v7189_v43 = vpack.c.bf16 %v4001_v41, %v4000_v40  ;;  %v4066_v51 = vld [vmem:[%s9743_s9 + $0x380] sm:$0xff]  ;;  %v4067_v52 = vld [vmem:[%s9743_s9 + $0x388] sm:$0xff]  ;;  %v4068_v28 = vld [vmem:[%s9743_s9 + $0x390] sm:$0xff] }
  0x1a   :  { %v7208_v57 = vpack.c.bf16 %v4067_v52, %v4066_v51  ;;  %v4069_v29 = vld [vmem:[%s9743_s9 + $0x398] sm:$0xff]  ;;  %v4038_v52 = vld [vmem:[%s9743_s9 + $0x2a0] sm:$0xff] }
  0x1b   :  { %9986 = vst [vmem:[#allocation9_spill] sm:$0xff] %v7189_v43  ;;  %v4021_v40 = vld [vmem:[%s9743_s9 + $0x218] sm:$0xff] }
  0x1c   :  { %9987 = vst [vmem:[#allocation10_spill] sm:$0xff] %v7208_v57 }
  0x82   :  { %v6857_v8 = vpop.permute.xlu0 %53 }
  0x86   :  { %v6875_v19 = vpop.permute.xlu0 %144 }
  0x87   :  { %v7014_v7 = vpop.permute.xlu1 %230 }
  0x8a   :  { %v7211_v58 = vpop.permute.xlu0 %331 }
  0x8b   :  { %9988 = vst [vmem:[#allocation11_spill] sm:$0xff] %v7211_v58 }
  0xd9   :  { %v133_v9 = vpop.f32.mrb[0].mxu1 }
  0xda   :  { %v134_v10 = vadd.f32 %v133_v9, %v6857_v8  ;;  %v135_v11 = vpop.f32.mrb[1].mxu1 }
  0xdb   :  { %v136_v12 = vadd.f32 %v135_v11, %v6857_v8 }
  0xdc   :  { %v138_v14 = vmax.f32 %v134_v10, 0.0 }
  0xdd   :  { %v139_v13 = vmax.f32 %v136_v12, 0.0  ;;  %v7017_v12 = vpop.permute.xlu1 %235 }
  0xdf   :  { %151 = vmatprep.subr.mxu1 %v139_v13 }
  0xe0   :  { %152 = vmatpush1.msra.mxu1 %v138_v14 }
  0xe1   :  { %3981 = vmatmul.mubr.msk.f32.vlgmr.msra.gmra.mrb[2].mxu1 %vm147_vm2, %v140_v15 }
  0xe2   :  { %410 = vmatprep.mubr.f32.mxu1 %v9749_v2 }
 0x1b4   :  { %v217_v20 = vpop.f32.mrb[2].mxu1 }
 0x1b5   :  { %v218_v21 = vadd.f32 %v217_v20, %v6875_v19  ;;  %v219_v22 = vpop.f32.mrb[3].mxu1 }
 0x1b6   :  { %v220_v23 = vadd.f32 %v219_v22, %v6875_v19  ;;  %v4003_v22 = vld [vmem:[%s9743_s9 + $0x188] sm:$0xff] }
 0x1b7   :  { %v222_v25 = vmax.f32 %v218_v21, 0.0  ;;  %v4002_v21 = vld [vmem:[%s9743_s9 + $0x180] sm:$0xff] }
 0x1b8   :  { %v223_v24 = vmax.f32 %v220_v23, 0.0 }
 0x1ba   :  { %244 = vmatprep.subr.mxu0 %v223_v24 }
 0x1bb   :  { %245 = vmatpush1.msra.mxu0 %v222_v25 }
 0x1bc   :  { %3982 = vmatmul.mubr.msk.f32.vlgmr.msra.gmra.mrb[0].mxu0 %vm147_vm2, %v224_v26  ;;  %5634 = vmatprep.subr.bf16.mxu0 %v6897_v31 }
 0x1bd   :  { %314 = vmatprep.mubr.f32.mxu0 %v9749_v2  ;;  %5636 = vmatpush3.bf16.msra.mxu0 %v6902_v33 }
 0x1be   :  { %5638 = vmatprep.subr.bf16.mxu0 %v6918_v38 }
 0x1c0   :  { %3983 = vmatmul.mubr.msk.f32.gmra.mrb[2].mxu0 %vm147_vm2, %v225_v27  ;;  %v7028_v27 = vpack.c.bf16 %v4003_v22, %v4002_v21  ;;  %v3998_v21 = vld [vmem:[%s9743_s9 + $0x160] sm:$0xff]  ;;  %v3999_v22 = vld [vmem:[%s9743_s9 + $0x168] sm:$0xff] }
 0x1c1   :  { %5640 = vmatpush3.bf16.msra.mxu0 %v6920_v39 }
 0x1c2   :  { %5642 = vmatprep.subr.bf16.mxu0 %v6929_v42 }
 0x1c5   :  { %5644 = vmatpush3.bf16.msra.mxu0 %v6938_v45 }
 0x1c6   :  { %5646 = vmatprep.subr.bf16.mxu0 %v6947_v48 }
 0x1c9   :  { %5648 = vmatpush3.bf16.msra.mxu0 %v6962_v53 }
 0x1ca   :  { %5650 = vmatprep.subr.bf16.mxu0 %v6965_v54 }
 0x1cd   :  { %5652 = vmatpush3.bf16.msra.mxu0 %v6980_v59 }
 0x1ce   :  { %5654 = vmatprep.subr.bf16.mxu0 %v6983_v60 }
 0x1d1   :  { %5656 = vmatpush3.bf16.msra.mxu0 %v6998_v1 }
 0x1d2   :  { %5658 = vmatprep.subr.bf16.mxu0 %v7001_v3 }
 0x1d5   :  { %5660 = vmatpush3.bf16.msra.mxu0 %v7010_v6 }
 0x28f   :  { %v310_v9 = vpop.f32.mrb[0].mxu0 }
 0x290   :  { %v312_v10 = vpop.f32.mrb[1].mxu0  ;;  %v311_v11 = vadd.f32 %v310_v9, %v7014_v7  ;;  %v4012_v9 = vld [vmem:[%s9743_s9 + $0x1d0] sm:$0xff] }
 0x291   :  { %v313_v13 = vadd.f32 %v312_v10, %v7014_v7  ;;  %v4013_v10 = vld [vmem:[%s9743_s9 + $0x1d8] sm:$0xff] }
 0x292   :  { %v321_v18 = vmax.f32 %v311_v11, 0.0  ;;  %v7123_v11 = vpack.c.bf16 %v3995_v5, %v3994_v4  ;;  %v4018_v5 = vld [vmem:[%s9743_s9 + $0x200] sm:$0xff] }
 0x293   :  { %v316_v14 = vpop.f32.mrb[2].mxu0  ;;  %v322_v23 = vmax.f32 %v313_v13, 0.0  ;;  %v7126_v13 = vpack.c.bf16 %v4013_v10, %v4012_v9  ;;  %v4019_v9 = vld [vmem:[%s9743_s9 + $0x208] sm:$0xff] }
 0x294   :  { %v317_v15 = vadd.f32 %v316_v14, %v7017_v12  ;;  %v318_v16 = vpop.f32.mrb[3].mxu0  ;;  %v3996_v14 = vld [vmem:[%s9743_s9 + $0x150] sm:$0xff] }
 0x295   :  { %v319_v17 = vadd.f32 %v318_v16, %v7017_v12 }
 0x296   :  { %v323_v20 = vmax.f32 %v317_v15, 0.0  ;;  %v3997_v15 = vld [vmem:[%s9743_s9 + $0x158] sm:$0xff] }
 0x297   :  { %v324_v24 = vmax.f32 %v319_v17, 0.0  ;;  %v7135_v16 = vpack.c.bf16 %v3997_v15, %v3996_v14  ;;  %v4014_v17 = vld [vmem:[%s9743_s9 + $0x1e0] sm:$0xff] }
 0x298   :  { %v5631_v25 = vpack.c.bf16 %v323_v20, %v321_v18  ;;  %v4015_v18 = vld [vmem:[%s9743_s9 + $0x1e8] sm:$0xff]  ;;  %v4050_v14 = vld [vmem:[%s9743_s9 + $0x300] sm:$0xff] }
 0x299   :  { %v5629_v26 = vpack.c.bf16 %v324_v24, %v322_v23  ;;  %v7145_v20 = vpack.c.bf16 %v4015_v18, %v4014_v17  ;;  %v7153_v23 = vpack.c.bf16 %v3999_v22, %v3998_v21  ;;  %v458_v24 = vld [vmem:[%s9743_s9 + $0xf0] sm:$0xff]  ;;  %v4051_v17 = vld [vmem:[%s9743_s9 + $0x308] sm:$0xff]  ;;  %v4037_v21 = vld [vmem:[%s9743_s9 + $0x298] sm:$0xff] }
 0x29a   :  { %v4036_v18 = vld [vmem:[%s9743_s9 + $0x290] sm:$0xff] }
 0x29b   :  { %5630 = vmatprep.subr.bf16.mxu1 %v5629_v26  ;;  %v7260_v51 = vpack.c.bf16 %v4037_v21, %v4036_v18 }
 0x29c   :  { %5632 = vmatpush1.bf16.msra.mxu1 %v5631_v25  ;;  %v459_v25 = vld [vmem:[%s9743_s9 + $0xf8] sm:$0xff] }
 0x29d   :  { %5666 = vmatprep.subr.bf16.mxu1 %v7028_v27  ;;  %v7162_v26 = vpack.c.bf16 %v459_v25, %v458_v24  ;;  %v7239_v25 = vpack.c.bf16 %v4019_v9, %v4018_v5  ;;  %9991 = vst [vmem:[#allocation14_spill] sm:$0xff] %v7260_v51  ;;  %v4052_v5 = vld [vmem:[%s9743_s9 + $0x310] sm:$0xff]  ;;  %v4053_v9 = vld [vmem:[%s9743_s9 + $0x318] sm:$0xff] }
 0x29f   :  { %3984 = vmatmul.mubr.msk.f32.vlgmr.msra.gmra.mrb[4].mxu1 %vm339_vm3, %v325_v34  ;;  %v4017_v34 = vld [vmem:[%s9743_s9 + $0x1f8] sm:$0xff]  ;;  %5662 = vmatprep.subr.bf16.mxu0 %v7162_v26  ;;  %9989 = vst [vmem:[#allocation12_spill] sm:$0xff] %v7239_v25 }
 0x2a0   :  { %416 = vmatprep.mubr.f32.mxu1 %v9749_v2  ;;  %5668 = vmatpush3.bf16.msra.mxu1 %v7045_v35  ;;  %v7180_v37 = vpack.c.bf16 %v4017_v34, %v4016_v32  ;;  %v4020_v34 = vld [vmem:[%s9743_s9 + $0x210] sm:$0xff] }
 0x2a1   :  { %5670 = vmatprep.subr.bf16.mxu1 %v7048_v36  ;;  %5664 = vmatpush3.bf16.msra.mxu0 %v7171_v30  ;;  %v4056_v2 = vld [vmem:[%s9743_s9 + $0x330] sm:$0xff] }
 0x2a2   :  { %9985 = vst [vmem:[#allocation8_spill] sm:$0xff] %v7180_v37 }
 0x2a3   :  { %3985 = vmatmul.mubr.msk.f32.gmra.mrb[6].mxu1 %vm339_vm3, %v326_v44  ;;  %v4034_v44 = vld [vmem:[%s9743_s9 + $0x280] sm:$0xff] }
 0x2a4   :  { %5672 = vmatpush3.bf16.msra.mxu1 %v7068_v46  ;;  %v7198_v50 = vpack.c.bf16 %v4035_v49, %v4034_v44  ;;  %v7258_v49 = vpack.c.bf16 %v4051_v17, %v4050_v14  ;;  %v4070_v14 = vld [vmem:[%s9743_s9 + $0x3a0] sm:$0xff]  ;;  %v4071_v17 = vld [vmem:[%s9743_s9 + $0x3a8] sm:$0xff] }
 0x2a5   :  { %5674 = vmatprep.subr.bf16.mxu1 %v7071_v47 }
 0x2a6   :  { %5698 = vmatprep.subr.bf16.mxu0 %v7198_v50  ;;  %9990 = vst [vmem:[#allocation13_spill] sm:$0xff] %v7258_v49 }
 0x2a8   :  { %5676 = vmatpush3.bf16.msra.mxu1 %v7087_v55 }
 0x2a9   :  { %5678 = vmatprep.subr.bf16.mxu1 %v7090_v56 }
 0x2ac   :  { %5680 = vmatpush3.bf16.msra.mxu1 %v7105_v63 }
 0x2ad   :  { %5682 = vmatprep.subr.bf16.mxu1 %v7108_v0 }
 0x2b0   :  { %5684 = vmatpush3.bf16.msra.mxu1 %v7123_v11 }
 0x2b1   :  { %5686 = vmatprep.subr.bf16.mxu1 %v7126_v13 }
 0x2b4   :  { %5688 = vmatpush3.bf16.msra.mxu1 %v7135_v16 }
 0x2b5   :  { %5690 = vmatprep.subr.bf16.mxu1 %v7145_v20 }
 0x2b8   :  { %5692 = vmatpush3.bf16.msra.mxu1 %v7153_v23 }
 0x2b9   :  { %5694 = vmatprep.subr.bf16.mxu1 %v7180_v37 }
 0x2bc   :  { %5696 = vmatpush3.bf16.msra.mxu1 %v7189_v43 }
 0x2bd   :  { %5730 = vmatprep.subr.bf16.mxu1 %v7208_v57 }
 0x372   :  { %v412_v61 = vpop.f32.mrb[4].mxu1 }
 0x373   :  { %v413_v62 = vadd.f32 %v412_v61, %v7211_v58  ;;  %v414_v4 = vpop.f32.mrb[5].mxu1  ;;  %v4039_v61 = vld [vmem:[%s9743_s9 + $0x2a8] sm:$0xff] }
 0x374   :  { %v415_v10 = vadd.f32 %v414_v4, %v7211_v58  ;;  %v7270_v4 = vpack.c.bf16 %v4069_v29, %v4068_v28  ;;  %v7288_v21 = vpack.c.bf16 %v4039_v61, %v4038_v52  ;;  %v4022_v28 = vld [vmem:[%s9743_s9 + $0x220] sm:$0xff]  ;;  %v4023_v29 = vld [vmem:[%s9743_s9 + $0x228] sm:$0xff] }
 0x375   :  { %v7224_v15 = vmax.f32 %v413_v62, 0.0  ;;  %v4054_v52 = vld [vmem:[%s9743_s9 + $0x320] sm:$0xff]  ;;  %v4055_v61 = vld [vmem:[%s9743_s9 + $0x328] sm:$0xff] }
 0x376   :  { %v7235_v22 = vmax.f32 %v415_v10, 0.0  ;;  %v7237_v24 = vpop.f32.mrb[6].mxu1  ;;  %9992 = vst [vmem:[#allocation15_spill] sm:$0xff] %v7270_v4  ;;  %v7279_v10 = vpack.c.bf16 %v4021_v40, %v4020_v34  ;;  %9994 = vst [vmem:[#allocation17_spill] sm:$0xff] %v7288_v21  ;;  %v7298_v34 = vpack.c.bf16 %v4053_v9, %v4052_v5  ;;  %v4040_v40 = vld [vmem:[%s9743_s9 + $0x2b0] sm:$0xff]  ;;  %v4073_v9 = vld [vmem:[%s9743_s9 + $0x3b8] sm:$0xff] }
 0x377   :  { %v7247_v32 = vpop.f32.mrb[7].mxu1  ;;  %v566_v62 = vrot.slane %v7224_v15, 1  ;;  %v4072_v5 = vld [vmem:[%s9743_s9 + $0x3b0] sm:$0xff] }
 0x378   :  { %524 = vmatprep.mubr.f32.mxu0 %v7235_v22  ;;  %v567_v41 = vrot.slane %v7235_v22, 1  ;;  %v675_v44 = vrot.slane %v7235_v22, 2  ;;  %9993 = vst [vmem:[#allocation16_spill] sm:$0xff] %v7279_v10  ;;  %v783_v18 = vrot.slane %v7235_v22, 3  ;;  %9995 = vst [vmem:[#allocation18_spill] sm:$0xff] %v7298_v34 }
 0x379   :  { %525 = vmatmul.mubr.f32.vlgmr.msra.gmra.mrb[4].mxu0 %v7224_v15 }
 0x37a   :  { %5700 = vmatpush3.bf16.msra.mxu0 %v7239_v25  ;;  %634 = vmatprep.mubr.f32.mxu1 %v567_v41  ;;  %v4041_v41 = vld [vmem:[%s9743_s9 + $0x2b8] sm:$0xff] }
 0x37b   :  { %742 = vmatprep.mubr.f32.mxu0 %v675_v44  ;;  %635 = vmatmul.mubr.f32.vlgmr.msra.gmra.mrb[8].mxu1 %v566_v62  ;;  %v7307_v44 = vpack.c.bf16 %v4071_v17, %v4070_v14  ;;  %v7316_v62 = vpack.c.bf16 %v4023_v29, %v4022_v28  ;;  %v7325_v14 = vpack.c.bf16 %v4041_v41, %v4040_v40  ;;  %v4024_v17 = vld [vmem:[%s9743_s9 + $0x230] sm:$0xff]  ;;  %v4042_v29 = vld [vmem:[%s9743_s9 + $0x2c0] sm:$0xff]  ;;  %v4043_v40 = vld [vmem:[%s9743_s9 + $0x2c8] sm:$0xff] }
 0x37c   :  { %5732 = vmatpush3.bf16.msra.mxu1 %v7258_v49  ;;  %5702 = vmatprep.subr.bf16.mxu0 %v7260_v51  ;;  %v7334_v28 = vpack.c.bf16 %v4055_v61, %v4054_v52  ;;  %v7343_v41 = vpack.c.bf16 %v4073_v9, %v4072_v5  ;;  %v4057_v52 = vld [vmem:[%s9743_s9 + $0x338] sm:$0xff]  ;;  %v4075_v5 = vld [vmem:[%s9743_s9 + $0x3c8] sm:$0xff]  ;;  %v7361_v9 = vpack.c.bf16 %v4043_v40, %v4042_v29 }
 0x37d   :  { %850 = vmatprep.mubr.f32.mxu1 %v783_v18  ;;  %5734 = vmatprep.subr.bf16.mxu1 %v7270_v4  ;;  %9996 = vst [vmem:[#allocation19_spill] sm:$0xff] %v7307_v44  ;;  %9997 = vst [vmem:[#allocation20_spill] sm:$0xff] %v7316_v62  ;;  %v4025_v18 = vld [vmem:[%s9743_s9 + $0x238] sm:$0xff] }
 0x37e   :  { %5704 = vmatpush3.bf16.msra.mxu0 %v7279_v10  ;;  %9998 = vst [vmem:[#allocation21_spill] sm:$0xff] %v7325_v14  ;;  %9999 = vst [vmem:[#allocation22_spill] sm:$0xff] %v7334_v28  ;;  %v7352_v61 = vpack.c.bf16 %v4025_v18, %v4024_v17  ;;  %v4027_v17 = vld [vmem:[%s9743_s9 + $0x248] sm:$0xff]  ;;  %v7370_v18 = vpack.c.bf16 %v4057_v52, %v4056_v2  ;;  %v4045_v29 = vld [vmem:[%s9743_s9 + $0x2d8] sm:$0xff] }
 0x37f   :  { %5706 = vmatprep.subr.bf16.mxu0 %v7288_v21  ;;  %10000 = vst [vmem:[#allocation23_spill] sm:$0xff] %v7343_v41  ;;  %10002 = vst [vmem:[#allocation25_spill] sm:$0xff] %v7361_v9  ;;  %v4059_v2 = vld [vmem:[%s9743_s9 + $0x348] sm:$0xff] }
 0x380   :  { %5736 = vmatpush3.bf16.msra.mxu1 %v7298_v34  ;;  %10001 = vst [vmem:[#allocation24_spill] sm:$0xff] %v7352_v61  ;;  %v4074_v34 = vld [vmem:[%s9743_s9 + $0x3c0] sm:$0xff]  ;;  %10003 = vst [vmem:[#allocation26_spill] sm:$0xff] %v7370_v18 }
 0x381   :  { %5738 = vmatprep.subr.bf16.mxu1 %v7307_v44  ;;  %v4026_v44 = vld [vmem:[%s9743_s9 + $0x240] sm:$0xff]  ;;  %v7379_v40 = vpack.c.bf16 %v4075_v5, %v4074_v34  ;;  %v4077_v34 = vld [vmem:[%s9743_s9 + $0x3d8] sm:$0xff] }
 0x382   :  { %5708 = vmatpush3.bf16.msra.mxu0 %v7316_v62  ;;  %v4044_v62 = vld [vmem:[%s9743_s9 + $0x2d0] sm:$0xff]  ;;  %v7388_v52 = vpack.c.bf16 %v4027_v17, %v4026_v44  ;;  %v4029_v44 = vld [vmem:[%s9743_s9 + $0x258] sm:$0xff] }
 0x383   :  { %5710 = vmatprep.subr.bf16.mxu0 %v7325_v14  ;;  %10004 = vst [vmem:[#allocation27_spill] sm:$0xff] %v7379_v40  ;;  %v4058_v14 = vld [vmem:[%s9743_s9 + $0x340] sm:$0xff]  ;;  %v7397_v5 = vpack.c.bf16 %v4045_v29, %v4044_v62  ;;  %v4047_v62 = vld [vmem:[%s9743_s9 + $0x2e8] sm:$0xff] }
 0x384   :  { %5740 = vmatpush3.bf16.msra.mxu1 %v7334_v28  ;;  %10005 = vst [vmem:[#allocation28_spill] sm:$0xff] %v7388_v52  ;;  %v4076_v28 = vld [vmem:[%s9743_s9 + $0x3d0] sm:$0xff]  ;;  %v7406_v17 = vpack.c.bf16 %v4059_v2, %v4058_v14  ;;  %v4061_v14 = vld [vmem:[%s9743_s9 + $0x358] sm:$0xff] }
 0x385   :  { %5742 = vmatprep.subr.bf16.mxu1 %v7343_v41  ;;  %10006 = vst [vmem:[#allocation29_spill] sm:$0xff] %v7397_v5  ;;  %v4028_v41 = vld [vmem:[%s9743_s9 + $0x250] sm:$0xff]  ;;  %v7415_v29 = vpack.c.bf16 %v4077_v34, %v4076_v28  ;;  %v4079_v28 = vld [vmem:[%s9743_s9 + $0x3e8] sm:$0xff] }
 0x386   :  { %5712 = vmatpush3.bf16.msra.mxu0 %v7352_v61  ;;  %10007 = vst [vmem:[#allocation30_spill] sm:$0xff] %v7406_v17  ;;  %v4046_v61 = vld [vmem:[%s9743_s9 + $0x2e0] sm:$0xff]  ;;  %v7424_v2 = vpack.c.bf16 %v4029_v44, %v4028_v41  ;;  %v4031_v41 = vld [vmem:[%s9743_s9 + $0x268] sm:$0xff] }
 0x387   :  { %5714 = vmatprep.subr.bf16.mxu0 %v7361_v9  ;;  %10008 = vst [vmem:[#allocation31_spill] sm:$0xff] %v7415_v29  ;;  %v4060_v9 = vld [vmem:[%s9743_s9 + $0x350] sm:$0xff]  ;;  %v7433_v34 = vpack.c.bf16 %v4047_v62, %v4046_v61  ;;  %v4049_v61 = vld [vmem:[%s9743_s9 + $0x2f8] sm:$0xff] }
 0x388   :  { %5744 = vmatpush3.bf16.msra.mxu1 %v7370_v18  ;;  %10009 = vst [vmem:[#allocation32_spill] sm:$0xff] %v7424_v2  ;;  %v4078_v18 = vld [vmem:[%s9743_s9 + $0x3e0] sm:$0xff]  ;;  %v7442_v44 = vpack.c.bf16 %v4061_v14, %v4060_v9  ;;  %v4063_v9 = vld [vmem:[%s9743_s9 + $0x368] sm:$0xff] }
 0x389   :  { %5746 = vmatprep.subr.bf16.mxu1 %v7379_v40  ;;  %10010 = vst [vmem:[#allocation33_spill] sm:$0xff] %v7433_v34  ;;  %v4030_v40 = vld [vmem:[%s9743_s9 + $0x260] sm:$0xff]  ;;  %v7451_v62 = vpack.c.bf16 %v4079_v28, %v4078_v18  ;;  %v4081_v18 = vld [vmem:[%s9743_s9 + $0x3f8] sm:$0xff] }
 0x38a   :  { %5716 = vmatpush3.bf16.msra.mxu0 %v7388_v52  ;;  %10011 = vst [vmem:[#allocation34_spill] sm:$0xff] %v7442_v44  ;;  %v4048_v52 = vld [vmem:[%s9743_s9 + $0x2f0] sm:$0xff]  ;;  %v7460_v14 = vpack.c.bf16 %v4031_v41, %v4030_v40  ;;  %v4033_v40 = vld [vmem:[%s9743_s9 + $0x278] sm:$0xff] }
 0x38b   :  { %5718 = vmatprep.subr.bf16.mxu0 %v7397_v5  ;;  %10012 = vst [vmem:[#allocation35_spill] sm:$0xff] %v7451_v62  ;;  %v4062_v5 = vld [vmem:[%s9743_s9 + $0x360] sm:$0xff]  ;;  %v7469_v28 = vpack.c.bf16 %v4049_v61, %v4048_v52  ;;  %v4099_v52 = vld [vmem:[%s9743_s9 + $0x488] sm:$0xff] }
 0x38c   :  { %5748 = vmatpush3.bf16.msra.mxu1 %v7406_v17  ;;  %10013 = vst [vmem:[#allocation36_spill] sm:$0xff] %v7460_v14  ;;  %v4080_v17 = vld [vmem:[%s9743_s9 + $0x3f0] sm:$0xff]  ;;  %v7478_v41 = vpack.c.bf16 %v4063_v9, %v4062_v5  ;;  %v4065_v5 = vld [vmem:[%s9743_s9 + $0x378] sm:$0xff] }
 0x38d   :  { %5750 = vmatprep.subr.bf16.mxu1 %v7415_v29  ;;  %10014 = vst [vmem:[#allocation37_spill] sm:$0xff] %v7469_v28  ;;  %v4032_v29 = vld [vmem:[%s9743_s9 + $0x270] sm:$0xff]  ;;  %v7487_v61 = vpack.c.bf16 %v4081_v18, %v4080_v17  ;;  %v4131_v17 = vld [vmem:[%s9743_s9 + $0x588] sm:$0xff] }
 0x38e   :  { %5720 = vmatpush3.bf16.msra.mxu0 %v7424_v2  ;;  %10015 = vst [vmem:[#allocation38_spill] sm:$0xff] %v7478_v41  ;;  %v4098_v2 = vld [vmem:[%s9743_s9 + $0x480] sm:$0xff]  ;;  %v7496_v9 = vpack.c.bf16 %v4033_v40, %v4032_v29  ;;  %v4083_v29 = vld [vmem:[%s9743_s9 + $0x408] sm:$0xff] }
 0x38f   :  { %5722 = vmatprep.subr.bf16.mxu0 %v7433_v34  ;;  %10016 = vst [vmem:[#allocation39_spill] sm:$0xff] %v7487_v61  ;;  %v4064_v34 = vld [vmem:[%s9743_s9 + $0x370] sm:$0xff]  ;;  %v7505_v18 = vpack.c.bf16 %v4099_v52, %v4098_v2  ;;  %v4101_v2 = vld [vmem:[%s9743_s9 + $0x498] sm:$0xff] }
 0x390   :  { %5752 = vmatpush3.bf16.msra.mxu1 %v7442_v44  ;;  %10017 = vst [vmem:[#allocation40_spill] sm:$0xff] %v7496_v9  ;;  %v4130_v44 = vld [vmem:[%s9743_s9 + $0x580] sm:$0xff]  ;;  %v7514_v40 = vpack.c.bf16 %v4065_v5, %v4064_v34  ;;  %v4115_v34 = vld [vmem:[%s9743_s9 + $0x508] sm:$0xff] }
 0x391   :  { %5754 = vmatprep.subr.bf16.mxu1 %v7451_v62  ;;  %10018 = vst [vmem:[#allocation41_spill] sm:$0xff] %v7505_v18  ;;  %v4082_v62 = vld [vmem:[%s9743_s9 + $0x400] sm:$0xff]  ;;  %v7523_v52 = vpack.c.bf16 %v4131_v17, %v4130_v44  ;;  %v4133_v44 = vld [vmem:[%s9743_s9 + $0x598] sm:$0xff]  ;;  %v674_v17 = vrot.slane %v7224_v15, 2 }
 0x392   :  { %5724 = vmatpush3.bf16.msra.mxu0 %v7460_v14  ;;  %10019 = vst [vmem:[#allocation42_spill] sm:$0xff] %v7514_v40  ;;  %v4100_v14 = vld [vmem:[%s9743_s9 + $0x490] sm:$0xff]  ;;  %v7532_v5 = vpack.c.bf16 %v4083_v29, %v4082_v62  ;;  %v4085_v62 = vld [vmem:[%s9743_s9 + $0x418] sm:$0xff]  ;;  %v891_v29 = vrot.slane %v7235_v22, 4 }
 0x393   :  { %5726 = vmatprep.subr.bf16.mxu0 %v7469_v28  ;;  %10020 = vst [vmem:[#allocation43_spill] sm:$0xff] %v7523_v52  ;;  %v4114_v28 = vld [vmem:[%s9743_s9 + $0x500] sm:$0xff] }
 0x394   :  { %5756 = vmatpush3.bf16.msra.mxu1 %v7478_v41  ;;  %10021 = vst [vmem:[#allocation44_spill] sm:$0xff] %v7532_v5  ;;  %v4132_v41 = vld [vmem:[%s9743_s9 + $0x590] sm:$0xff]  ;;  %v7552_v21 = vpack.c.bf16 %v4115_v34, %v4114_v28  ;;  %v4117_v34 = vld [vmem:[%s9743_s9 + $0x518] sm:$0xff] }
 0x395   :  { %5758 = vmatprep.subr.bf16.mxu1 %v7487_v61  ;;  %v7542_v61 = vpack.c.bf16 %v4101_v2, %v4100_v14  ;;  %v4103_v14 = vld [vmem:[%s9743_s9 + $0x4a8] sm:$0xff]  ;;  %v782_v2 = vrot.slane %v7224_v15, 3  ;;  %v7562_v10 = vpack.c.bf16 %v4133_v44, %v4132_v41  ;;  %v4116_v28 = vld [vmem:[%s9743_s9 + $0x510] sm:$0xff]  ;;  %v4134_v41 = vld [vmem:[%s9743_s9 + $0x5a0] sm:$0xff] }
 0x396   :  { %5728 = vmatpush3.bf16.msra.mxu0 %v7496_v9  ;;  %v4084_v9 = vld [vmem:[%s9743_s9 + $0x410] sm:$0xff]  ;;  %10023 = vst [vmem:[#allocation46_spill] sm:$0xff] %v7552_v21  ;;  %v4135_v44 = vld [vmem:[%s9743_s9 + $0x5a8] sm:$0xff] }
 0x397   :  { %5762 = vmatprep.subr.bf16.mxu0 %v7505_v18  ;;  %10022 = vst [vmem:[#allocation45_spill] sm:$0xff] %v7542_v61  ;;  %v4102_v18 = vld [vmem:[%s9743_s9 + $0x4a0] sm:$0xff]  ;;  %10024 = vst [vmem:[#allocation47_spill] sm:$0xff] %v7562_v10 }
 0x398   :  { %5760 = vmatpush3.bf16.msra.mxu1 %v7514_v40  ;;  %v999_v40 = vrot.slane %v7235_v22, 5 }
 0x399   :  { %743 = vmatmul.mubr.f32.vlgmr.msra.gmra.mrb[6].mxu0 %v674_v17  ;;  %5794 = vmatprep.subr.bf16.mxu1 %v7523_v52  ;;  %v7572_v17 = vpack.c.bf16 %v4085_v62, %v4084_v9  ;;  %v7581_v52 = vpack.c.bf16 %v4103_v14, %v4102_v18  ;;  %v4087_v9 = vld [vmem:[%s9743_s9 + $0x428] sm:$0xff]  ;;  %v7590_v62 = vpack.c.bf16 %v4117_v34, %v4116_v28  ;;  %v4105_v18 = vld [vmem:[%s9743_s9 + $0x4b8] sm:$0xff]  ;;  %v4136_v34 = vld [vmem:[%s9743_s9 + $0x5b0] sm:$0xff] }
 0x39a   :  { %5764 = vmatpush3.bf16.msra.mxu0 %v7532_v5  ;;  %958 = vmatprep.mubr.f32.mxu0 %v891_v29  ;;  %v4086_v29 = vld [vmem:[%s9743_s9 + $0x420] sm:$0xff]  ;;  %v7599_v14 = vpack.c.bf16 %v4135_v44, %v4134_v41  ;;  %v4137_v41 = vld [vmem:[%s9743_s9 + $0x5b8] sm:$0xff] }
 0x39b   :  { %10025 = vst [vmem:[#allocation48_spill] sm:$0xff] %v7572_v17  ;;  %851 = vmatmul.mubr.f32.vlgmr.msra.gmra.mrb[10].mxu1 %v782_v2  ;;  %5766 = vmatprep.subr.bf16.mxu0 %v7542_v61  ;;  %10026 = vst [vmem:[#allocation49_spill] sm:$0xff] %v7581_v52  ;;  %v4104_v2 = vld [vmem:[%s9743_s9 + $0x4b0] sm:$0xff]  ;;  %v4118_v61 = vld [vmem:[%s9743_s9 + $0x520] sm:$0xff]  ;;  %v7608_v28 = vpack.c.bf16 %v4087_v9, %v4086_v29 }
 0x39c   :  { %5796 = vmatpush3.bf16.msra.mxu1 %v7552_v21  ;;  %1066 = vmatprep.mubr.f32.mxu1 %v999_v40  ;;  %10027 = vst [vmem:[#allocation50_spill] sm:$0xff] %v7590_v62  ;;  %10028 = vst [vmem:[#allocation51_spill] sm:$0xff] %v7599_v14  ;;  %v4119_v40 = vld [vmem:[%s9743_s9 + $0x528] sm:$0xff]  ;;  %v7617_v44 = vpack.c.bf16 %v4105_v18, %v4104_v2  ;;  %v4089_v29 = vld [vmem:[%s9743_s9 + $0x438] sm:$0xff]  ;;  %v7635_v18 = vpack.c.bf16 %v4137_v41, %v4136_v34 }
 0x39d   :  { %5798 = vmatprep.subr.bf16.mxu1 %v7562_v10  ;;  %10029 = vst [vmem:[#allocation52_spill] sm:$0xff] %v7608_v28  ;;  %v4088_v10 = vld [vmem:[%s9743_s9 + $0x430] sm:$0xff]  ;;  %v7626_v9 = vpack.c.bf16 %v4119_v40, %v4118_v61  ;;  %v4107_v2 = vld [vmem:[%s9743_s9 + $0x4c8] sm:$0xff]  ;;  %v4121_v61 = vld [vmem:[%s9743_s9 + $0x538] sm:$0xff] }
 0x39e   :  { %5768 = vmatpush3.bf16.msra.mxu0 %v7572_v17  ;;  %10030 = vst [vmem:[#allocation53_spill] sm:$0xff] %v7617_v44  ;;  %v4106_v17 = vld [vmem:[%s9743_s9 + $0x4c0] sm:$0xff]  ;;  %10032 = vst [vmem:[#allocation55_spill] sm:$0xff] %v7635_v18  ;;  %v7644_v40 = vpack.c.bf16 %v4089_v29, %v4088_v10  ;;  %v4139_v34 = vld [vmem:[%s9743_s9 + $0x5c8] sm:$0xff] }
 0x39f   :  { %5770 = vmatprep.subr.bf16.mxu0 %v7581_v52  ;;  %10031 = vst [vmem:[#allocation54_spill] sm:$0xff] %v7626_v9  ;;  %v4120_v52 = vld [vmem:[%s9743_s9 + $0x530] sm:$0xff]  ;;  %v7653_v41 = vpack.c.bf16 %v4107_v2, %v4106_v17  ;;  %v4091_v10 = vld [vmem:[%s9743_s9 + $0x448] sm:$0xff]  ;;  %v4109_v17 = vld [vmem:[%s9743_s9 + $0x4d8] sm:$0xff] }
 0x3a0   :  { %5800 = vmatpush3.bf16.msra.mxu1 %v7590_v62  ;;  %10033 = vst [vmem:[#allocation56_spill] sm:$0xff] %v7644_v40  ;;  %v4138_v62 = vld [vmem:[%s9743_s9 + $0x5c0] sm:$0xff]  ;;  %v7662_v29 = vpack.c.bf16 %v4121_v61, %v4120_v52  ;;  %v4123_v52 = vld [vmem:[%s9743_s9 + $0x548] sm:$0xff] }
 0x3a1   :  { %5802 = vmatprep.subr.bf16.mxu1 %v7599_v14  ;;  %10034 = vst [vmem:[#allocation57_spill] sm:$0xff] %v7653_v41  ;;  %v4090_v14 = vld [vmem:[%s9743_s9 + $0x440] sm:$0xff]  ;;  %v7671_v2 = vpack.c.bf16 %v4139_v34, %v4138_v62  ;;  %v4141_v62 = vld [vmem:[%s9743_s9 + $0x5d8] sm:$0xff] }
 0x3a2   :  { %5772 = vmatpush3.bf16.msra.mxu0 %v7608_v28  ;;  %10035 = vst [vmem:[#allocation58_spill] sm:$0xff] %v7662_v29  ;;  %v4108_v28 = vld [vmem:[%s9743_s9 + $0x4d0] sm:$0xff]  ;;  %v7680_v61 = vpack.c.bf16 %v4091_v10, %v4090_v14  ;;  %v4093_v14 = vld [vmem:[%s9743_s9 + $0x458] sm:$0xff] }
 0x3a3   :  { %5774 = vmatprep.subr.bf16.mxu0 %v7617_v44  ;;  %10036 = vst [vmem:[#allocation59_spill] sm:$0xff] %v7671_v2  ;;  %v4122_v44 = vld [vmem:[%s9743_s9 + $0x540] sm:$0xff]  ;;  %v7689_v34 = vpack.c.bf16 %v4109_v17, %v4108_v28  ;;  %v4111_v28 = vld [vmem:[%s9743_s9 + $0x4e8] sm:$0xff] }
 0x3a4   :  { %5804 = vmatpush3.bf16.msra.mxu1 %v7626_v9  ;;  %10037 = vst [vmem:[#allocation60_spill] sm:$0xff] %v7680_v61  ;;  %v4140_v9 = vld [vmem:[%s9743_s9 + $0x5d0] sm:$0xff]  ;;  %v7698_v10 = vpack.c.bf16 %v4123_v52, %v4122_v44  ;;  %v4125_v44 = vld [vmem:[%s9743_s9 + $0x558] sm:$0xff] }
 0x3a5   :  { %5806 = vmatprep.subr.bf16.mxu1 %v7635_v18  ;;  %10038 = vst [vmem:[#allocation61_spill] sm:$0xff] %v7689_v34  ;;  %v4092_v18 = vld [vmem:[%s9743_s9 + $0x450] sm:$0xff]  ;;  %v7707_v17 = vpack.c.bf16 %v4141_v62, %v4140_v9  ;;  %v4143_v9 = vld [vmem:[%s9743_s9 + $0x5e8] sm:$0xff] }
 0x3a6   :  { %5776 = vmatpush3.bf16.msra.mxu0 %v7644_v40  ;;  %10039 = vst [vmem:[#allocation62_spill] sm:$0xff] %v7698_v10  ;;  %v4110_v40 = vld [vmem:[%s9743_s9 + $0x4e0] sm:$0xff]  ;;  %v7716_v52 = vpack.c.bf16 %v4093_v14, %v4092_v18  ;;  %v4095_v18 = vld [vmem:[%s9743_s9 + $0x468] sm:$0xff] }
 0x3a7   :  { %5778 = vmatprep.subr.bf16.mxu0 %v7653_v41  ;;  %10040 = vst [vmem:[#allocation63_spill] sm:$0xff] %v7707_v17  ;;  %v4124_v41 = vld [vmem:[%s9743_s9 + $0x550] sm:$0xff]  ;;  %v7725_v62 = vpack.c.bf16 %v4111_v28, %v4110_v40  ;;  %v4113_v40 = vld [vmem:[%s9743_s9 + $0x4f8] sm:$0xff] }
 0x3a8   :  { %5808 = vmatpush3.bf16.msra.mxu1 %v7662_v29  ;;  %10041 = vst [vmem:[#allocation64_spill] sm:$0xff] %v7716_v52  ;;  %v4142_v29 = vld [vmem:[%s9743_s9 + $0x5e0] sm:$0xff]  ;;  %v7734_v14 = vpack.c.bf16 %v4125_v44, %v4124_v41  ;;  %v4127_v41 = vld [vmem:[%s9743_s9 + $0x568] sm:$0xff] }
 0x3a9   :  { %5810 = vmatprep.subr.bf16.mxu1 %v7671_v2  ;;  %10042 = vst [vmem:[#allocation65_spill] sm:$0xff] %v7725_v62  ;;  %v4094_v2 = vld [vmem:[%s9743_s9 + $0x460] sm:$0xff]  ;;  %v7743_v28 = vpack.c.bf16 %v4143_v9, %v4142_v29  ;;  %v4145_v29 = vld [vmem:[%s9743_s9 + $0x5f8] sm:$0xff] }
 0x3aa   :  { %5780 = vmatpush3.bf16.msra.mxu0 %v7680_v61  ;;  %10043 = vst [vmem:[#allocation66_spill] sm:$0xff] %v7734_v14  ;;  %v4112_v61 = vld [vmem:[%s9743_s9 + $0x4f0] sm:$0xff]  ;;  %v7752_v44 = vpack.c.bf16 %v4095_v18, %v4094_v2  ;;  %v4097_v2 = vld [vmem:[%s9743_s9 + $0x478] sm:$0xff] }
 0x3ab   :  { %5782 = vmatprep.subr.bf16.mxu0 %v7689_v34  ;;  %10044 = vst [vmem:[#allocation67_spill] sm:$0xff] %v7743_v28  ;;  %v4126_v34 = vld [vmem:[%s9743_s9 + $0x560] sm:$0xff]  ;;  %v7761_v9 = vpack.c.bf16 %v4113_v40, %v4112_v61  ;;  %v4163_v61 = vld [vmem:[%s9743_s9 + $0x688] sm:$0xff] }
 0x3ac   :  { %5812 = vmatpush3.bf16.msra.mxu1 %v7698_v10  ;;  %10045 = vst [vmem:[#allocation68_spill] sm:$0xff] %v7752_v44  ;;  %v4144_v10 = vld [vmem:[%s9743_s9 + $0x5f0] sm:$0xff]  ;;  %v7770_v18 = vpack.c.bf16 %v4127_v41, %v4126_v34  ;;  %v4129_v34 = vld [vmem:[%s9743_s9 + $0x578] sm:$0xff] }
 0x3ad   :  { %5814 = vmatprep.subr.bf16.mxu1 %v7707_v17  ;;  %10046 = vst [vmem:[#allocation69_spill] sm:$0xff] %v7761_v9  ;;  %v4096_v17 = vld [vmem:[%s9743_s9 + $0x470] sm:$0xff]  ;;  %v7779_v40 = vpack.c.bf16 %v4145_v29, %v4144_v10  ;;  %v4195_v10 = vld [vmem:[%s9743_s9 + $0x788] sm:$0xff] }
 0x3ae   :  { %5784 = vmatpush3.bf16.msra.mxu0 %v7716_v52  ;;  %10047 = vst [vmem:[#allocation70_spill] sm:$0xff] %v7770_v18  ;;  %v4162_v52 = vld [vmem:[%s9743_s9 + $0x680] sm:$0xff]  ;;  %v7788_v41 = vpack.c.bf16 %v4097_v2, %v4096_v17  ;;  %v4147_v17 = vld [vmem:[%s9743_s9 + $0x608] sm:$0xff] }
 0x3af   :  { %5786 = vmatprep.subr.bf16.mxu0 %v7725_v62  ;;  %10048 = vst [vmem:[#allocation71_spill] sm:$0xff] %v7779_v40  ;;  %v4128_v62 = vld [vmem:[%s9743_s9 + $0x570] sm:$0xff]  ;;  %v7797_v29 = vpack.c.bf16 %v4163_v61, %v4162_v52  ;;  %v4165_v52 = vld [vmem:[%s9743_s9 + $0x698] sm:$0xff] }
 0x3b0   :  { %5816 = vmatpush3.bf16.msra.mxu1 %v7734_v14  ;;  %10049 = vst [vmem:[#allocation72_spill] sm:$0xff] %v7788_v41  ;;  %v4194_v14 = vld [vmem:[%s9743_s9 + $0x780] sm:$0xff]  ;;  %v7806_v2 = vpack.c.bf16 %v4129_v34, %v4128_v62  ;;  %v4179_v62 = vld [vmem:[%s9743_s9 + $0x708] sm:$0xff] }
 0x3b1   :  { %5818 = vmatprep.subr.bf16.mxu1 %v7743_v28  ;;  %10050 = vst [vmem:[#allocation73_spill] sm:$0xff] %v7797_v29  ;;  %v4146_v28 = vld [vmem:[%s9743_s9 + $0x600] sm:$0xff]  ;;  %v7815_v61 = vpack.c.bf16 %v4195_v10, %v4194_v14  ;;  %v4197_v14 = vld [vmem:[%s9743_s9 + $0x798] sm:$0xff]  ;;  %v890_v10 = vrot.slane %v7224_v15, 4 }
 0x3b2   :  { %5788 = vmatpush3.bf16.msra.mxu0 %v7752_v44  ;;  %10051 = vst [vmem:[#allocation74_spill] sm:$0xff] %v7806_v2  ;;  %v4164_v44 = vld [vmem:[%s9743_s9 + $0x690] sm:$0xff]  ;;  %v7824_v34 = vpack.c.bf16 %v4147_v17, %v4146_v28  ;;  %v4149_v28 = vld [vmem:[%s9743_s9 + $0x618] sm:$0xff]  ;;  %v1107_v17 = vrot.slane %v7235_v22, 6 }
 0x3b3   :  { %5790 = vmatprep.subr.bf16.mxu0 %v7761_v9  ;;  %10052 = vst [vmem:[#allocation75_spill] sm:$0xff] %v7815_v61  ;;  %v4178_v9 = vld [vmem:[%s9743_s9 + $0x700] sm:$0xff] }
 0x3b4   :  { %5820 = vmatpush3.bf16.msra.mxu1 %v7770_v18  ;;  %10053 = vst [vmem:[#allocation76_spill] sm:$0xff] %v7824_v34  ;;  %v4196_v18 = vld [vmem:[%s9743_s9 + $0x790] sm:$0xff]  ;;  %v7844_v21 = vpack.c.bf16 %v4179_v62, %v4178_v9  ;;  %v4181_v62 = vld [vmem:[%s9743_s9 + $0x718] sm:$0xff] }
 0x3b5   :  { %5822 = vmatprep.subr.bf16.mxu1 %v7779_v40  ;;  %v7834_v40 = vpack.c.bf16 %v4165_v52, %v4164_v44  ;;  %v4167_v44 = vld [vmem:[%s9743_s9 + $0x6a8] sm:$0xff]  ;;  %v998_v52 = vrot.slane %v7224_v15, 5  ;;  %v7854_v5 = vpack.c.bf16 %v4197_v14, %v4196_v18  ;;  %v4180_v9 = vld [vmem:[%s9743_s9 + $0x710] sm:$0xff]  ;;  %v4198_v18 = vld [vmem:[%s9743_s9 + $0x7a0] sm:$0xff] }
 0x3b6   :  { %5792 = vmatpush3.bf16.msra.mxu0 %v7788_v41  ;;  %v4148_v41 = vld [vmem:[%s9743_s9 + $0x610] sm:$0xff]  ;;  %10055 = vst [vmem:[#allocation78_spill] sm:$0xff] %v7844_v21  ;;  %v4199_v14 = vld [vmem:[%s9743_s9 + $0x7a8] sm:$0xff] }
 0x3b7   :  { %5826 = vmatprep.subr.bf16.mxu0 %v7797_v29  ;;  %10054 = vst [vmem:[#allocation77_spill] sm:$0xff] %v7834_v40  ;;  %v4166_v29 = vld [vmem:[%s9743_s9 + $0x6a0] sm:$0xff]  ;;  %10056 = vst [vmem:[#allocation79_spill] sm:$0xff] %v7854_v5 }
 0x3b8   :  { %5824 = vmatpush3.bf16.msra.mxu1 %v7806_v2  ;;  %v1215_v2 = vrot.slane %v7235_v22, 7 }
 0x3b9   :  { %959 = vmatmul.mubr.f32.vlgmr.msra.gmra.mrb[8].mxu0 %v890_v10  ;;  %5858 = vmatprep.subr.bf16.mxu1 %v7815_v61  ;;  %v7864_v10 = vpack.c.bf16 %v4149_v28, %v4148_v41  ;;  %v7873_v61 = vpack.c.bf16 %v4167_v44, %v4166_v29  ;;  %v4151_v41 = vld [vmem:[%s9743_s9 + $0x628] sm:$0xff]  ;;  %v7882_v28 = vpack.c.bf16 %v4181_v62, %v4180_v9  ;;  %v4169_v29 = vld [vmem:[%s9743_s9 + $0x6b8] sm:$0xff]  ;;  %v4200_v62 = vld [vmem:[%s9743_s9 + $0x7b0] sm:$0xff] }
 0x3ba   :  { %5828 = vmatpush3.bf16.msra.mxu0 %v7824_v34  ;;  %1174 = vmatprep.mubr.f32.mxu0 %v1107_v17  ;;  %v4150_v17 = vld [vmem:[%s9743_s9 + $0x620] sm:$0xff]  ;;  %v7891_v44 = vpack.c.bf16 %v4199_v14, %v4198_v18  ;;  %v4201_v18 = vld [vmem:[%s9743_s9 + $0x7b8] sm:$0xff] }
 0x3bb   :  { %10057 = vst [vmem:[#allocation80_spill] sm:$0xff] %v7864_v10  ;;  %1067 = vmatmul.mubr.f32.vlgmr.msra.gmra.mrb[12].mxu1 %v998_v52  ;;  %5830 = vmatprep.subr.bf16.mxu0 %v7834_v40  ;;  %10058 = vst [vmem:[#allocation81_spill] sm:$0xff] %v7873_v61  ;;  %v4168_v52 = vld [vmem:[%s9743_s9 + $0x6b0] sm:$0xff]  ;;  %v4182_v40 = vld [vmem:[%s9743_s9 + $0x720] sm:$0xff]  ;;  %v7900_v9 = vpack.c.bf16 %v4151_v41, %v4150_v17 }
 0x3bc   :  { %5860 = vmatpush3.bf16.msra.mxu1 %v7844_v21  ;;  %1282 = vmatprep.mubr.f32.mxu1 %v1215_v2  ;;  %10059 = vst [vmem:[#allocation82_spill] sm:$0xff] %v7882_v28  ;;  %10060 = vst [vmem:[#allocation83_spill] sm:$0xff] %v7891_v44  ;;  %v4183_v2 = vld [vmem:[%s9743_s9 + $0x728] sm:$0xff]  ;;  %v7909_v14 = vpack.c.bf16 %v4169_v29, %v4168_v52  ;;  %v4153_v17 = vld [vmem:[%s9743_s9 + $0x638] sm:$0xff]  ;;  %v7927_v29 = vpack.c.bf16 %v4201_v18, %v4200_v62 }
 0x3bd   :  { %5862 = vmatprep.subr.bf16.mxu1 %v7854_v5  ;;  %10061 = vst [vmem:[#allocation84_spill] sm:$0xff] %v7900_v9  ;;  %v4152_v5 = vld [vmem:[%s9743_s9 + $0x630] sm:$0xff]  ;;  %v7918_v41 = vpack.c.bf16 %v4183_v2, %v4182_v40  ;;  %v4171_v52 = vld [vmem:[%s9743_s9 + $0x6c8] sm:$0xff]  ;;  %v4185_v40 = vld [vmem:[%s9743_s9 + $0x738] sm:$0xff] }
 0x3be   :  { %5832 = vmatpush3.bf16.msra.mxu0 %v7864_v10  ;;  %10062 = vst [vmem:[#allocation85_spill] sm:$0xff] %v7909_v14  ;;  %v4170_v10 = vld [vmem:[%s9743_s9 + $0x6c0] sm:$0xff]  ;;  %10064 = vst [vmem:[#allocation87_spill] sm:$0xff] %v7927_v29  ;;  %v7936_v2 = vpack.c.bf16 %v4153_v17, %v4152_v5  ;;  %v4203_v62 = vld [vmem:[%s9743_s9 + $0x7c8] sm:$0xff] }
 0x3bf   :  { %5834 = vmatprep.subr.bf16.mxu0 %v7873_v61  ;;  %10063 = vst [vmem:[#allocation86_spill] sm:$0xff] %v7918_v41  ;;  %v4184_v61 = vld [vmem:[%s9743_s9 + $0x730] sm:$0xff]  ;;  %v7945_v18 = vpack.c.bf16 %v4171_v52, %v4170_v10  ;;  %v4155_v5 = vld [vmem:[%s9743_s9 + $0x648] sm:$0xff]  ;;  %v4173_v10 = vld [vmem:[%s9743_s9 + $0x6d8] sm:$0xff] }
 0x3c0   :  { %5864 = vmatpush3.bf16.msra.mxu1 %v7882_v28  ;;  %10065 = vst [vmem:[#allocation88_spill] sm:$0xff] %v7936_v2  ;;  %v4202_v28 = vld [vmem:[%s9743_s9 + $0x7c0] sm:$0xff]  ;;  %v7954_v17 = vpack.c.bf16 %v4185_v40, %v4184_v61  ;;  %v4187_v61 = vld [vmem:[%s9743_s9 + $0x748] sm:$0xff] }
 0x3c1   :  { %5866 = vmatprep.subr.bf16.mxu1 %v7891_v44  ;;  %10066 = vst [vmem:[#allocation89_spill] sm:$0xff] %v7945_v18  ;;  %v4154_v44 = vld [vmem:[%s9743_s9 + $0x640] sm:$0xff]  ;;  %v7963_v52 = vpack.c.bf16 %v4203_v62, %v4202_v28  ;;  %v4205_v28 = vld [vmem:[%s9743_s9 + $0x7d8] sm:$0xff] }
 0x3c2   :  { %5836 = vmatpush3.bf16.msra.mxu0 %v7900_v9  ;;  %10067 = vst [vmem:[#allocation90_spill] sm:$0xff] %v7954_v17  ;;  %v4172_v9 = vld [vmem:[%s9743_s9 + $0x6d0] sm:$0xff]  ;;  %v7972_v40 = vpack.c.bf16 %v4155_v5, %v4154_v44  ;;  %v4157_v44 = vld [vmem:[%s9743_s9 + $0x658] sm:$0xff] }
 0x3c3   :  { %5838 = vmatprep.subr.bf16.mxu0 %v7909_v14  ;;  %10068 = vst [vmem:[#allocation91_spill] sm:$0xff] %v7963_v52  ;;  %v4186_v14 = vld [vmem:[%s9743_s9 + $0x740] sm:$0xff]  ;;  %v7981_v62 = vpack.c.bf16 %v4173_v10, %v4172_v9  ;;  %v4175_v9 = vld [vmem:[%s9743_s9 + $0x6e8] sm:$0xff] }
 0x3c4   :  { %5868 = vmatpush3.bf16.msra.mxu1 %v7918_v41  ;;  %10069 = vst [vmem:[#allocation92_spill] sm:$0xff] %v7972_v40  ;;  %v4204_v41 = vld [vmem:[%s9743_s9 + $0x7d0] sm:$0xff]  ;;  %v7990_v5 = vpack.c.bf16 %v4187_v61, %v4186_v14  ;;  %v4189_v14 = vld [vmem:[%s9743_s9 + $0x758] sm:$0xff] }
 0x3c5   :  { %5870 = vmatprep.subr.bf16.mxu1 %v7927_v29  ;;  %10070 = vst [vmem:[#allocation93_spill] sm:$0xff] %v7981_v62  ;;  %v4156_v29 = vld [vmem:[%s9743_s9 + $0x650] sm:$0xff]  ;;  %v7999_v10 = vpack.c.bf16 %v4205_v28, %v4204_v41  ;;  %v4207_v41 = vld [vmem:[%s9743_s9 + $0x7e8] sm:$0xff] }
 0x3c6   :  { %5840 = vmatpush3.bf16.msra.mxu0 %v7936_v2  ;;  %10071 = vst [vmem:[#allocation94_spill] sm:$0xff] %v7990_v5  ;;  %v4174_v2 = vld [vmem:[%s9743_s9 + $0x6e0] sm:$0xff]  ;;  %v8008_v61 = vpack.c.bf16 %v4157_v44, %v4156_v29  ;;  %v4159_v29 = vld [vmem:[%s9743_s9 + $0x668] sm:$0xff] }
 0x3c7   :  { %5842 = vmatprep.subr.bf16.mxu0 %v7945_v18  ;;  %10072 = vst [vmem:[#allocation95_spill] sm:$0xff] %v7999_v10  ;;  %v4188_v18 = vld [vmem:[%s9743_s9 + $0x750] sm:$0xff]  ;;  %v8017_v28 = vpack.c.bf16 %v4175_v9, %v4174_v2  ;;  %v4177_v2 = vld [vmem:[%s9743_s9 + $0x6f8] sm:$0xff] }
 0x3c8   :  { %5872 = vmatpush3.bf16.msra.mxu1 %v7954_v17  ;;  %10073 = vst [vmem:[#allocation96_spill] sm:$0xff] %v8008_v61  ;;  %v4206_v17 = vld [vmem:[%s9743_s9 + $0x7e0] sm:$0xff]  ;;  %v8026_v44 = vpack.c.bf16 %v4189_v14, %v4188_v18  ;;  %v4191_v18 = vld [vmem:[%s9743_s9 + $0x768] sm:$0xff] }
 0x3c9   :  { %5874 = vmatprep.subr.bf16.mxu1 %v7963_v52  ;;  %10074 = vst [vmem:[#allocation97_spill] sm:$0xff] %v8017_v28  ;;  %v4158_v52 = vld [vmem:[%s9743_s9 + $0x660] sm:$0xff]  ;;  %v8035_v9 = vpack.c.bf16 %v4207_v41, %v4206_v17  ;;  %v4209_v17 = vld [vmem:[%s9743_s9 + $0x7f8] sm:$0xff] }
 0x3ca   :  { %5844 = vmatpush3.bf16.msra.mxu0 %v7972_v40  ;;  %10075 = vst [vmem:[#allocation98_spill] sm:$0xff] %v8026_v44  ;;  %v4176_v40 = vld [vmem:[%s9743_s9 + $0x6f0] sm:$0xff]  ;;  %v8044_v14 = vpack.c.bf16 %v4159_v29, %v4158_v52  ;;  %v4161_v52 = vld [vmem:[%s9743_s9 + $0x678] sm:$0xff] }
 0x3cb   :  { %5846 = vmatprep.subr.bf16.mxu0 %v7981_v62  ;;  %10076 = vst [vmem:[#allocation99_spill] sm:$0xff] %v8035_v9  ;;  %v4190_v62 = vld [vmem:[%s9743_s9 + $0x760] sm:$0xff]  ;;  %v8053_v41 = vpack.c.bf16 %v4177_v2, %v4176_v40  ;;  %v4227_v40 = vld [vmem:[%s9743_s9 + $0x888] sm:$0xff]  ;;  %v8070_v2 = vpop.permute.xlu1 %336 }
 0x3cc   :  { %5876 = vmatpush3.bf16.msra.mxu1 %v7990_v5  ;;  %10077 = vst [vmem:[#allocation100_spill] sm:$0xff] %v8044_v14  ;;  %v4208_v5 = vld [vmem:[%s9743_s9 + $0x7f0] sm:$0xff]  ;;  %v8062_v29 = vpack.c.bf16 %v4191_v18, %v4190_v62  ;;  %10080 = vst [vmem:[#allocation103_spill] sm:$0xff] %v8070_v2  ;;  %v4193_v62 = vld [vmem:[%s9743_s9 + $0x778] sm:$0xff]  ;;  %v421_v18 = vadd.f32 %v7247_v32, %v8070_v2 }
 0x3cd   :  { %5878 = vmatprep.subr.bf16.mxu1 %v7999_v10  ;;  %10078 = vst [vmem:[#allocation101_spill] sm:$0xff] %v8053_v41  ;;  %v4160_v10 = vld [vmem:[%s9743_s9 + $0x670] sm:$0xff]  ;;  %v4210_v32 = vld [vmem:[%s9743_s9 + $0x800] sm:$0xff] }
 0x3ce   :  { %5848 = vmatpush3.bf16.msra.mxu0 %v8008_v61  ;;  %10079 = vst [vmem:[#allocation102_spill] sm:$0xff] %v8062_v29  ;;  %v4226_v61 = vld [vmem:[%s9743_s9 + $0x880] sm:$0xff]  ;;  %v8084_v21 = vpack.c.bf16 %v4161_v52, %v4160_v10  ;;  %v4211_v10 = vld [vmem:[%s9743_s9 + $0x808] sm:$0xff] }
 0x3cf   :  { %5850 = vmatprep.subr.bf16.mxu0 %v8017_v28  ;;  %v8073_v28 = vpack.c.bf16 %v4209_v17, %v4208_v5  ;;  %v4258_v5 = vld [vmem:[%s9743_s9 + $0x980] sm:$0xff]  ;;  %v4259_v17 = vld [vmem:[%s9743_s9 + $0x988] sm:$0xff] }
 0x3d0   :  { %5880 = vmatpush3.bf16.msra.mxu1 %v8026_v44  ;;  %v4192_v44 = vld [vmem:[%s9743_s9 + $0x770] sm:$0xff]  ;;  %10082 = vst [vmem:[#allocation105_spill] sm:$0xff] %v8084_v21 }
 0x3d1   :  { %5882 = vmatprep.subr.bf16.mxu1 %v8035_v9  ;;  %10081 = vst [vmem:[#allocation104_spill] sm:$0xff] %v8073_v28  ;;  %v8093_v9 = vpack.c.bf16 %v4227_v40, %v4226_v61  ;;  %v8102_v52 = vpack.c.bf16 %v4193_v62, %v4192_v44  ;;  %v4229_v61 = vld [vmem:[%s9743_s9 + $0x898] sm:$0xff]  ;;  %v8111_v40 = vpack.c.bf16 %v4259_v17, %v4258_v5  ;;  %v4243_v44 = vld [vmem:[%s9743_s9 + $0x908] sm:$0xff]  ;;  %v8119_v62 = vmax.f32 %v421_v18, 0.0  ;;  %v4212_v18 = vld [vmem:[%s9743_s9 + $0x810] sm:$0xff] }
 0x3d2   :  { %5852 = vmatpush3.bf16.msra.mxu0 %v8044_v14  ;;  %v4228_v14 = vld [vmem:[%s9743_s9 + $0x890] sm:$0xff]  ;;  %v4261_v5 = vld [vmem:[%s9743_s9 + $0x998] sm:$0xff]  ;;  %v1106_v17 = vrot.slane %v7224_v15, 6 }
 0x3d3   :  { %5854 = vmatprep.subr.bf16.mxu0 %v8053_v41  ;;  %10083 = vst [vmem:[#allocation106_spill] sm:$0xff] %v8093_v9  ;;  %10084 = vst [vmem:[#allocation107_spill] sm:$0xff] %v8102_v52  ;;  %v4242_v41 = vld [vmem:[%s9743_s9 + $0x900] sm:$0xff]  ;;  %v8132_v34 = vpack.c.bf16 %v4229_v61, %v4228_v14  ;;  %v4231_v14 = vld [vmem:[%s9743_s9 + $0x8a8] sm:$0xff]  ;;  %v1214_v61 = vrot.slane %v7224_v15, 7 }
 0x3d4   :  { %5884 = vmatpush3.bf16.msra.mxu1 %v8062_v29  ;;  %10085 = vst [vmem:[#allocation108_spill] sm:$0xff] %v8111_v40  ;;  %v8122_v29 = vpack.c.bf16 %v4211_v10, %v4210_v32  ;;  %v4213_v32 = vld [vmem:[%s9743_s9 + $0x818] sm:$0xff]  ;;  %v8141_v10 = vpack.c.bf16 %v4243_v44, %v4242_v41  ;;  %v4244_v41 = vld [vmem:[%s9743_s9 + $0x910] sm:$0xff] }
 0x3d5   :  { %5886 = vmatprep.subr.bf16.mxu1 %v8073_v28  ;;  %v4260_v28 = vld [vmem:[%s9743_s9 + $0x990] sm:$0xff]  ;;  %10087 = vst [vmem:[#allocation110_spill] sm:$0xff] %v8132_v34  ;;  %v4245_v44 = vld [vmem:[%s9743_s9 + $0x918] sm:$0xff] }
 0x3d6   :  { %5856 = vmatpush3.bf16.msra.mxu0 %v8084_v21  ;;  %10086 = vst [vmem:[#allocation109_spill] sm:$0xff] %v8122_v29  ;;  %10088 = vst [vmem:[#allocation111_spill] sm:$0xff] %v8141_v10  ;;  %v4230_v21 = vld [vmem:[%s9743_s9 + $0x8a0] sm:$0xff] }
 0x3d7   :  { %5890 = vmatprep.subr.bf16.mxu0 %v8093_v9  ;;  %v8151_v9 = vpack.c.bf16 %v4261_v5, %v4260_v28  ;;  %v4262_v28 = vld [vmem:[%s9743_s9 + $0x9a0] sm:$0xff]  ;;  %v4263_v5 = vld [vmem:[%s9743_s9 + $0x9a8] sm:$0xff] }
 0x3d8   :  { %5888 = vmatpush3.bf16.msra.mxu1 %v8102_v52  ;;  %v8162_v52 = vpack.c.bf16 %v4213_v32, %v4212_v18  ;;  %v4215_v18 = vld [vmem:[%s9743_s9 + $0x828] sm:$0xff]  ;;  %v8180_v32 = vpack.c.bf16 %v4245_v44, %v4244_v41 }
 0x3d9   :  { %1175 = vmatmul.mubr.f32.vlgmr.msra.gmra.mrb[10].mxu0 %v1106_v17  ;;  %5922 = vmatprep.subr.bf16.mxu1 %v8111_v40  ;;  %10089 = vst [vmem:[#allocation112_spill] sm:$0xff] %v8151_v9  ;;  %v1429_v17 = vrot.slane %v8119_v62, 1  ;;  %v8171_v40 = vpack.c.bf16 %v4231_v14, %v4230_v21  ;;  %v4233_v21 = vld [vmem:[%s9743_s9 + $0x8b8] sm:$0xff]  ;;  %v8189_v14 = vpack.c.bf16 %v4263_v5, %v4262_v28  ;;  %v4247_v41 = vld [vmem:[%s9743_s9 + $0x928] sm:$0xff] }
 0x3da   :  { %5892 = vmatpush3.bf16.msra.mxu0 %v8122_v29  ;;  %1386 = vmatprep.mubr.f32.mxu0 %v8119_v62  ;;  %10090 = vst [vmem:[#allocation113_spill] sm:$0xff] %v8162_v52  ;;  %v4214_v29 = vld [vmem:[%s9743_s9 + $0x820] sm:$0xff]  ;;  %10092 = vst [vmem:[#allocation115_spill] sm:$0xff] %v8180_v32  ;;  %v4265_v28 = vld [vmem:[%s9743_s9 + $0x9b8] sm:$0xff] }
 0x3db   :  { %1283 = vmatmul.mubr.f32.vlgmr.msra.gmra.mrb[14].mxu1 %v1214_v61  ;;  %5894 = vmatprep.subr.bf16.mxu0 %v8132_v34  ;;  %10091 = vst [vmem:[#allocation114_spill] sm:$0xff] %v8171_v40  ;;  %v4232_v61 = vld [vmem:[%s9743_s9 + $0x8b0] sm:$0xff]  ;;  %10093 = vst [vmem:[#allocation116_spill] sm:$0xff] %v8189_v14  ;;  %v4246_v34 = vld [vmem:[%s9743_s9 + $0x920] sm:$0xff]  ;;  %v8198_v44 = vpack.c.bf16 %v4215_v18, %v4214_v29 }
 0x3dc   :  { %5924 = vmatpush3.bf16.msra.mxu1 %v8141_v10  ;;  %1496 = vmatprep.mubr.f32.mxu1 %v1429_v17  ;;  %v4264_v17 = vld [vmem:[%s9743_s9 + $0x9b0] sm:$0xff]  ;;  %v8207_v5 = vpack.c.bf16 %v4233_v21, %v4232_v61  ;;  %v4217_v29 = vld [vmem:[%s9743_s9 + $0x838] sm:$0xff]  ;;  %v8216_v18 = vpack.c.bf16 %v4247_v41, %v4246_v34  ;;  %v4235_v61 = vld [vmem:[%s9743_s9 + $0x8c8] sm:$0xff] }
 0x3dd   :  { %5926 = vmatprep.subr.bf16.mxu1 %v8151_v9  ;;  %10094 = vst [vmem:[#allocation117_spill] sm:$0xff] %v8198_v44  ;;  %v4216_v9 = vld [vmem:[%s9743_s9 + $0x830] sm:$0xff]  ;;  %v8225_v21 = vpack.c.bf16 %v4265_v28, %v4264_v17  ;;  %v4249_v34 = vld [vmem:[%s9743_s9 + $0x938] sm:$0xff]  ;;  %v4267_v17 = vld [vmem:[%s9743_s9 + $0x9c8] sm:$0xff] }
 0x3de   :  { %5896 = vmatpush3.bf16.msra.mxu0 %v8162_v52  ;;  %10095 = vst [vmem:[#allocation118_spill] sm:$0xff] %v8207_v5  ;;  %10096 = vst [vmem:[#allocation119_spill] sm:$0xff] %v8216_v18  ;;  %v4234_v52 = vld [vmem:[%s9743_s9 + $0x8c0] sm:$0xff]  ;;  %v8234_v41 = vpack.c.bf16 %v4217_v29, %v4216_v9  ;;  %v4219_v9 = vld [vmem:[%s9743_s9 + $0x848] sm:$0xff] }
 0x3df   :  { %5898 = vmatprep.subr.bf16.mxu0 %v8171_v40  ;;  %10097 = vst [vmem:[#allocation120_spill] sm:$0xff] %v8225_v21  ;;  %v4248_v40 = vld [vmem:[%s9743_s9 + $0x930] sm:$0xff]  ;;  %v8243_v28 = vpack.c.bf16 %v4235_v61, %v4234_v52  ;;  %v4237_v52 = vld [vmem:[%s9743_s9 + $0x8d8] sm:$0xff] }
 0x3e0   :  { %5928 = vmatpush3.bf16.msra.mxu1 %v8180_v32  ;;  %10098 = vst [vmem:[#allocation121_spill] sm:$0xff] %v8234_v41  ;;  %v4266_v32 = vld [vmem:[%s9743_s9 + $0x9c0] sm:$0xff]  ;;  %v8252_v29 = vpack.c.bf16 %v4249_v34, %v4248_v40  ;;  %v4251_v40 = vld [vmem:[%s9743_s9 + $0x948] sm:$0xff] }
 0x3e1   :  { %5930 = vmatprep.subr.bf16.mxu1 %v8189_v14  ;;  %10099 = vst [vmem:[#allocation122_spill] sm:$0xff] %v8243_v28  ;;  %v4218_v14 = vld [vmem:[%s9743_s9 + $0x840] sm:$0xff]  ;;  %v8261_v61 = vpack.c.bf16 %v4267_v17, %v4266_v32  ;;  %v4269_v32 = vld [vmem:[%s9743_s9 + $0x9d8] sm:$0xff] }
 0x3e2   :  { %5900 = vmatpush3.bf16.msra.mxu0 %v8198_v44  ;;  %10100 = vst [vmem:[#allocation123_spill] sm:$0xff] %v8252_v29  ;;  %v4236_v44 = vld [vmem:[%s9743_s9 + $0x8d0] sm:$0xff]  ;;  %v8270_v34 = vpack.c.bf16 %v4219_v9, %v4218_v14  ;;  %v4221_v14 = vld [vmem:[%s9743_s9 + $0x858] sm:$0xff] }
 0x3e3   :  { %5902 = vmatprep.subr.bf16.mxu0 %v8207_v5  ;;  %10101 = vst [vmem:[#allocation124_spill] sm:$0xff] %v8261_v61  ;;  %v4250_v5 = vld [vmem:[%s9743_s9 + $0x940] sm:$0xff]  ;;  %v8279_v17 = vpack.c.bf16 %v4237_v52, %v4236_v44  ;;  %v4239_v44 = vld [vmem:[%s9743_s9 + $0x8e8] sm:$0xff] }
 0x3e4   :  { %5932 = vmatpush3.bf16.msra.mxu1 %v8216_v18  ;;  %10102 = vst [vmem:[#allocation125_spill] sm:$0xff] %v8270_v34  ;;  %v4268_v18 = vld [vmem:[%s9743_s9 + $0x9d0] sm:$0xff]  ;;  %v8288_v9 = vpack.c.bf16 %v4251_v40, %v4250_v5  ;;  %v4253_v5 = vld [vmem:[%s9743_s9 + $0x958] sm:$0xff] }
 0x3e5   :  { %5934 = vmatprep.subr.bf16.mxu1 %v8225_v21  ;;  %10103 = vst [vmem:[#allocation126_spill] sm:$0xff] %v8279_v17  ;;  %v4220_v21 = vld [vmem:[%s9743_s9 + $0x850] sm:$0xff]  ;;  %v8297_v52 = vpack.c.bf16 %v4269_v32, %v4268_v18  ;;  %v4271_v18 = vld [vmem:[%s9743_s9 + $0x9e8] sm:$0xff] }
 0x3e6   :  { %5904 = vmatpush3.bf16.msra.mxu0 %v8234_v41  ;;  %10104 = vst [vmem:[#allocation127_spill] sm:$0xff] %v8288_v9  ;;  %v4238_v41 = vld [vmem:[%s9743_s9 + $0x8e0] sm:$0xff]  ;;  %v8306_v40 = vpack.c.bf16 %v4221_v14, %v4220_v21  ;;  %v4223_v21 = vld [vmem:[%s9743_s9 + $0x868] sm:$0xff] }
 0x3e7   :  { %5906 = vmatprep.subr.bf16.mxu0 %v8243_v28  ;;  %10105 = vst [vmem:[#allocation128_spill] sm:$0xff] %v8297_v52  ;;  %v4252_v28 = vld [vmem:[%s9743_s9 + $0x950] sm:$0xff]  ;;  %v8315_v32 = vpack.c.bf16 %v4239_v44, %v4238_v41  ;;  %v4241_v41 = vld [vmem:[%s9743_s9 + $0x8f8] sm:$0xff] }
 0x3e8   :  { %5936 = vmatpush3.bf16.msra.mxu1 %v8252_v29  ;;  %10106 = vst [vmem:[#allocation129_spill] sm:$0xff] %v8306_v40  ;;  %v4270_v29 = vld [vmem:[%s9743_s9 + $0x9e0] sm:$0xff]  ;;  %v8324_v14 = vpack.c.bf16 %v4253_v5, %v4252_v28  ;;  %v4255_v28 = vld [vmem:[%s9743_s9 + $0x968] sm:$0xff] }
 0x3e9   :  { %5938 = vmatprep.subr.bf16.mxu1 %v8261_v61  ;;  %10107 = vst [vmem:[#allocation130_spill] sm:$0xff] %v8315_v32  ;;  %v4222_v61 = vld [vmem:[%s9743_s9 + $0x860] sm:$0xff]  ;;  %v8333_v44 = vpack.c.bf16 %v4271_v18, %v4270_v29  ;;  %v4273_v29 = vld [vmem:[%s9743_s9 + $0x9f8] sm:$0xff] }
 0x3ea   :  { %5908 = vmatpush3.bf16.msra.mxu0 %v8270_v34  ;;  %10108 = vst [vmem:[#allocation131_spill] sm:$0xff] %v8324_v14  ;;  %v4240_v34 = vld [vmem:[%s9743_s9 + $0x8f0] sm:$0xff]  ;;  %v8342_v5 = vpack.c.bf16 %v4223_v21, %v4222_v61  ;;  %v4225_v61 = vld [vmem:[%s9743_s9 + $0x878] sm:$0xff] }
 0x3eb   :  { %5910 = vmatprep.subr.bf16.mxu0 %v8279_v17  ;;  %10109 = vst [vmem:[#allocation132_spill] sm:$0xff] %v8333_v44  ;;  %v4254_v17 = vld [vmem:[%s9743_s9 + $0x960] sm:$0xff]  ;;  %v8351_v18 = vpack.c.bf16 %v4241_v41, %v4240_v34  ;;  %v4291_v34 = vld [vmem:[%s9743_s9 + $0xa88] sm:$0xff]  ;;  %v419_v41 = vadd.f32 %v7237_v24, %v8070_v2 }
 0x3ec   :  { %5940 = vmatpush3.bf16.msra.mxu1 %v8288_v9  ;;  %10110 = vst [vmem:[#allocation133_spill] sm:$0xff] %v8342_v5  ;;  %v4272_v9 = vld [vmem:[%s9743_s9 + $0x9f0] sm:$0xff]  ;;  %v8360_v21 = vpack.c.bf16 %v4255_v28, %v4254_v17  ;;  %v4257_v28 = vld [vmem:[%s9743_s9 + $0x978] sm:$0xff]  ;;  %v4322_v24 = vld [vmem:[%s9743_s9 + $0xb80] sm:$0xff] }
 0x3ed   :  { %5942 = vmatprep.subr.bf16.mxu1 %v8297_v52  ;;  %10111 = vst [vmem:[#allocation134_spill] sm:$0xff] %v8351_v18  ;;  %v4224_v52 = vld [vmem:[%s9743_s9 + $0x870] sm:$0xff] }
 0x3ee   :  { %5912 = vmatpush3.bf16.msra.mxu0 %v8306_v40  ;;  %10112 = vst [vmem:[#allocation135_spill] sm:$0xff] %v8360_v21  ;;  %v4290_v40 = vld [vmem:[%s9743_s9 + $0xa80] sm:$0xff]  ;;  %v4256_v17 = vld [vmem:[%s9743_s9 + $0x970] sm:$0xff] }
 0x3ef   :  { %5914 = vmatprep.subr.bf16.mxu0 %v8315_v32  ;;  %v8371_v32 = vpack.c.bf16 %v4273_v29, %v4272_v9  ;;  %v4323_v9 = vld [vmem:[%s9743_s9 + $0xb88] sm:$0xff]  ;;  %v8389_v29 = vpack.c.bf16 %v4291_v34, %v4290_v40  ;;  %v4293_v40 = vld [vmem:[%s9743_s9 + $0xa98] sm:$0xff]  ;;  %v8406_v34 = vmax.f32 %v419_v41, 0.0  ;;  %v4324_v41 = vld [vmem:[%s9743_s9 + $0xb90] sm:$0xff] }
 0x3f0   :  { %5944 = vmatpush3.bf16.msra.mxu1 %v8324_v14  ;;  %v8380_v14 = vpack.c.bf16 %v4225_v61, %v4224_v52  ;;  %v4275_v52 = vld [vmem:[%s9743_s9 + $0xa08] sm:$0xff]  ;;  %v8398_v61 = vpack.c.bf16 %v4257_v28, %v4256_v17 }
 0x3f1   :  { %5946 = vmatprep.subr.bf16.mxu1 %v8333_v44  ;;  %10113 = vst [vmem:[#allocation136_spill] sm:$0xff] %v8371_v32  ;;  %10115 = vst [vmem:[#allocation138_spill] sm:$0xff] %v8389_v29  ;;  %v4274_v44 = vld [vmem:[%s9743_s9 + $0xa00] sm:$0xff]  ;;  %v4307_v17 = vld [vmem:[%s9743_s9 + $0xb08] sm:$0xff] }
 0x3f2   :  { %5916 = vmatpush3.bf16.msra.mxu0 %v8342_v5  ;;  %10114 = vst [vmem:[#allocation137_spill] sm:$0xff] %v8380_v14  ;;  %10116 = vst [vmem:[#allocation139_spill] sm:$0xff] %v8398_v61  ;;  %v4292_v5 = vld [vmem:[%s9743_s9 + $0xa90] sm:$0xff]  ;;  %v8418_v28 = vpack.c.bf16 %v4275_v52, %v4274_v44  ;;  %v4277_v44 = vld [vmem:[%s9743_s9 + $0xa18] sm:$0xff]  ;;  %v1537_v52 = vrot.slane %v8119_v62, 2 }
 0x3f3   :  { %5918 = vmatprep.subr.bf16.mxu0 %v8351_v18  ;;  %v8409_v18 = vpack.c.bf16 %v4323_v9, %v4322_v24  ;;  %v4325_v24 = vld [vmem:[%s9743_s9 + $0xb98] sm:$0xff]  ;;  %v8427_v9 = vpack.c.bf16 %v4293_v40, %v4292_v5  ;;  %v4295_v5 = vld [vmem:[%s9743_s9 + $0xaa8] sm:$0xff]  ;;  %v1428_v40 = vrot.slane %v8406_v34, 1 }
 0x3f4   :  { %5948 = vmatpush3.bf16.msra.mxu1 %v8360_v21  ;;  %v4306_v21 = vld [vmem:[%s9743_s9 + $0xb00] sm:$0xff]  ;;  %10118 = vst [vmem:[#allocation141_spill] sm:$0xff] %v8418_v28  ;;  %v8448_v10 = vpack.c.bf16 %v4325_v24, %v4324_v41  ;;  %v4327_v24 = vld [vmem:[%s9743_s9 + $0xba8] sm:$0xff] }
 0x3f5   :  { %5950 = vmatprep.subr.bf16.mxu1 %v8371_v32  ;;  %10117 = vst [vmem:[#allocation140_spill] sm:$0xff] %v8409_v18  ;;  %10119 = vst [vmem:[#allocation142_spill] sm:$0xff] %v8427_v9  ;;  %v4276_v32 = vld [vmem:[%s9743_s9 + $0xa10] sm:$0xff]  ;;  %v4326_v41 = vld [vmem:[%s9743_s9 + $0xba0] sm:$0xff] }
 0x3f6   :  { %5920 = vmatpush3.bf16.msra.mxu0 %v8380_v14  ;;  %v8437_v14 = vpack.c.bf16 %v4307_v17, %v4306_v21  ;;  %10121 = vst [vmem:[#allocation144_spill] sm:$0xff] %v8448_v10  ;;  %v4308_v21 = vld [vmem:[%s9743_s9 + $0xb10] sm:$0xff]  ;;  %v4309_v17 = vld [vmem:[%s9743_s9 + $0xb18] sm:$0xff]  ;;  %v8458_v4 = vpack.c.bf16 %v4277_v44, %v4276_v32  ;;  %v4279_v32 = vld [vmem:[%s9743_s9 + $0xa28] sm:$0xff] }
 0x3f7   :  { %5954 = vmatprep.subr.bf16.mxu0 %v8389_v29  ;;  %v4294_v29 = vld [vmem:[%s9743_s9 + $0xaa0] sm:$0xff]  ;;  %v8476_v44 = vpack.c.bf16 %v4309_v17, %v4308_v21  ;;  %v4328_v17 = vld [vmem:[%s9743_s9 + $0xbb0] sm:$0xff] }
 0x3f8   :  { %5952 = vmatpush3.bf16.msra.mxu1 %v8398_v61  ;;  %10120 = vst [vmem:[#allocation143_spill] sm:$0xff] %v8437_v14  ;;  %v1645_v61 = vrot.slane %v8119_v62, 3  ;;  %10122 = vst [vmem:[#allocation145_spill] sm:$0xff] %v8458_v4 }
 0x3f9   :  { %1387 = vmatmul.mubr.f32.vlgmr.msra.gmra.mrb[12].mxu0 %v8406_v34  ;;  %5986 = vmatprep.subr.bf16.mxu1 %v8409_v18  ;;  %v8467_v18 = vpack.c.bf16 %v4295_v5, %v4294_v29  ;;  %10124 = vst [vmem:[#allocation147_spill] sm:$0xff] %v8476_v44  ;;  %v4297_v29 = vld [vmem:[%s9743_s9 + $0xab8] sm:$0xff]  ;;  %v8485_v5 = vpack.c.bf16 %v4327_v24, %v4326_v41 }
 0x3fa   :  { %5956 = vmatpush3.bf16.msra.mxu0 %v8418_v28  ;;  %1604 = vmatprep.mubr.f32.mxu0 %v1537_v52  ;;  %v4278_v52 = vld [vmem:[%s9743_s9 + $0xa20] sm:$0xff]  ;;  %v4329_v41 = vld [vmem:[%s9743_s9 + $0xbb8] sm:$0xff] }
 0x3fb   :  { %1497 = vmatmul.mubr.f32.vlgmr.msra.gmra.mrb[16].mxu1 %v1428_v40  ;;  %5958 = vmatprep.subr.bf16.mxu0 %v8427_v9  ;;  %10123 = vst [vmem:[#allocation146_spill] sm:$0xff] %v8467_v18  ;;  %v4296_v40 = vld [vmem:[%s9743_s9 + $0xab0] sm:$0xff]  ;;  %10125 = vst [vmem:[#allocation148_spill] sm:$0xff] %v8485_v5  ;;  %v4310_v9 = vld [vmem:[%s9743_s9 + $0xb20] sm:$0xff]  ;;  %v8494_v21 = vpack.c.bf16 %v4279_v32, %v4278_v52 }
 0x3fc   :  { %5988 = vmatpush3.bf16.msra.mxu1 %v8437_v14  ;;  %1712 = vmatprep.mubr.f32.mxu1 %v1645_v61  ;;  %v4311_v61 = vld [vmem:[%s9743_s9 + $0xb28] sm:$0xff]  ;;  %v8503_v24 = vpack.c.bf16 %v4297_v29, %v4296_v40  ;;  %v4281_v52 = vld [vmem:[%s9743_s9 + $0xa38] sm:$0xff]  ;;  %v8521_v29 = vpack.c.bf16 %v4329_v41, %v4328_v17 }
 0x3fd   :  { %5990 = vmatprep.subr.bf16.mxu1 %v8448_v10  ;;  %10126 = vst [vmem:[#allocation149_spill] sm:$0xff] %v8494_v21  ;;  %v4280_v10 = vld [vmem:[%s9743_s9 + $0xa30] sm:$0xff]  ;;  %v8512_v32 = vpack.c.bf16 %v4311_v61, %v4310_v9  ;;  %v4299_v40 = vld [vmem:[%s9743_s9 + $0xac8] sm:$0xff]  ;;  %v4313_v9 = vld [vmem:[%s9743_s9 + $0xb38] sm:$0xff] }
 0x3fe   :  { %5960 = vmatpush3.bf16.msra.mxu0 %v8458_v4  ;;  %10127 = vst [vmem:[#allocation150_spill] sm:$0xff] %v8503_v24  ;;  %v4298_v4 = vld [vmem:[%s9743_s9 + $0xac0] sm:$0xff]  ;;  %10129 = vst [vmem:[#allocation152_spill] sm:$0xff] %v8521_v29  ;;  %v8530_v61 = vpack.c.bf16 %v4281_v52, %v4280_v10  ;;  %v4331_v17 = vld [vmem:[%s9743_s9 + $0xbc8] sm:$0xff] }
 0x3ff   :  { %5962 = vmatprep.subr.bf16.mxu0 %v8467_v18  ;;  %10128 = vst [vmem:[#allocation151_spill] sm:$0xff] %v8512_v32  ;;  %v4312_v18 = vld [vmem:[%s9743_s9 + $0xb30] sm:$0xff]  ;;  %v8539_v41 = vpack.c.bf16 %v4299_v40, %v4298_v4  ;;  %v4283_v10 = vld [vmem:[%s9743_s9 + $0xa48] sm:$0xff]  ;;  %v4301_v4 = vld [vmem:[%s9743_s9 + $0xad8] sm:$0xff] }
 0x400   :  { %5992 = vmatpush3.bf16.msra.mxu1 %v8476_v44  ;;  %10130 = vst [vmem:[#allocation153_spill] sm:$0xff] %v8530_v61  ;;  %v4330_v44 = vld [vmem:[%s9743_s9 + $0xbc0] sm:$0xff]  ;;  %v8548_v52 = vpack.c.bf16 %v4313_v9, %v4312_v18  ;;  %v4315_v18 = vld [vmem:[%s9743_s9 + $0xb48] sm:$0xff] }
 0x401   :  { %5994 = vmatprep.subr.bf16.mxu1 %v8485_v5  ;;  %10131 = vst [vmem:[#allocation154_spill] sm:$0xff] %v8539_v41  ;;  %v4282_v5 = vld [vmem:[%s9743_s9 + $0xa40] sm:$0xff]  ;;  %v8557_v40 = vpack.c.bf16 %v4331_v17, %v4330_v44  ;;  %v4333_v44 = vld [vmem:[%s9743_s9 + $0xbd8] sm:$0xff] }
 0x402   :  { %5964 = vmatpush3.bf16.msra.mxu0 %v8494_v21  ;;  %10132 = vst [vmem:[#allocation155_spill] sm:$0xff] %v8548_v52  ;;  %v4300_v21 = vld [vmem:[%s9743_s9 + $0xad0] sm:$0xff]  ;;  %v8566_v9 = vpack.c.bf16 %v4283_v10, %v4282_v5  ;;  %v4285_v5 = vld [vmem:[%s9743_s9 + $0xa58] sm:$0xff] }
 0x403   :  { %5966 = vmatprep.subr.bf16.mxu0 %v8503_v24  ;;  %10133 = vst [vmem:[#allocation156_spill] sm:$0xff] %v8557_v40  ;;  %v4314_v24 = vld [vmem:[%s9743_s9 + $0xb40] sm:$0xff]  ;;  %v8575_v17 = vpack.c.bf16 %v4301_v4, %v4300_v21  ;;  %v4303_v21 = vld [vmem:[%s9743_s9 + $0xae8] sm:$0xff] }
 0x404   :  { %5996 = vmatpush3.bf16.msra.mxu1 %v8512_v32  ;;  %10134 = vst [vmem:[#allocation157_spill] sm:$0xff] %v8566_v9  ;;  %v4332_v32 = vld [vmem:[%s9743_s9 + $0xbd0] sm:$0xff]  ;;  %v8584_v10 = vpack.c.bf16 %v4315_v18, %v4314_v24  ;;  %v4317_v24 = vld [vmem:[%s9743_s9 + $0xb58] sm:$0xff] }
 0x405   :  { %5998 = vmatprep.subr.bf16.mxu1 %v8521_v29  ;;  %10135 = vst [vmem:[#allocation158_spill] sm:$0xff] %v8575_v17  ;;  %v4284_v29 = vld [vmem:[%s9743_s9 + $0xa50] sm:$0xff]  ;;  %v8593_v4 = vpack.c.bf16 %v4333_v44, %v4332_v32  ;;  %v4335_v32 = vld [vmem:[%s9743_s9 + $0xbe8] sm:$0xff] }
 0x406   :  { %5968 = vmatpush3.bf16.msra.mxu0 %v8530_v61  ;;  %10136 = vst [vmem:[#allocation159_spill] sm:$0xff] %v8584_v10  ;;  %v4302_v61 = vld [vmem:[%s9743_s9 + $0xae0] sm:$0xff]  ;;  %v8602_v18 = vpack.c.bf16 %v4285_v5, %v4284_v29  ;;  %v4287_v29 = vld [vmem:[%s9743_s9 + $0xa68] sm:$0xff] }
 0x407   :  { %5970 = vmatprep.subr.bf16.mxu0 %v8539_v41  ;;  %10137 = vst [vmem:[#allocation160_spill] sm:$0xff] %v8593_v4  ;;  %v4316_v41 = vld [vmem:[%s9743_s9 + $0xb50] sm:$0xff]  ;;  %v8611_v44 = vpack.c.bf16 %v4303_v21, %v4302_v61  ;;  %v4305_v61 = vld [vmem:[%s9743_s9 + $0xaf8] sm:$0xff] }
 0x408   :  { %6000 = vmatpush3.bf16.msra.mxu1 %v8548_v52  ;;  %10138 = vst [vmem:[#allocation161_spill] sm:$0xff] %v8602_v18  ;;  %v4334_v52 = vld [vmem:[%s9743_s9 + $0xbe0] sm:$0xff]  ;;  %v8620_v5 = vpack.c.bf16 %v4317_v24, %v4316_v41  ;;  %v4319_v41 = vld [vmem:[%s9743_s9 + $0xb68] sm:$0xff] }
 0x409   :  { %6002 = vmatprep.subr.bf16.mxu1 %v8557_v40  ;;  %10139 = vst [vmem:[#allocation162_spill] sm:$0xff] %v8611_v44  ;;  %v4286_v40 = vld [vmem:[%s9743_s9 + $0xa60] sm:$0xff]  ;;  %v8629_v21 = vpack.c.bf16 %v4335_v32, %v4334_v52  ;;  %v4337_v52 = vld [vmem:[%s9743_s9 + $0xbf8] sm:$0xff] }
 0x40a   :  { %5972 = vmatpush3.bf16.msra.mxu0 %v8566_v9  ;;  %10140 = vst [vmem:[#allocation163_spill] sm:$0xff] %v8620_v5  ;;  %v4304_v9 = vld [vmem:[%s9743_s9 + $0xaf0] sm:$0xff]  ;;  %v8638_v24 = vpack.c.bf16 %v4287_v29, %v4286_v40  ;;  %v4289_v40 = vld [vmem:[%s9743_s9 + $0xa78] sm:$0xff] }
 0x40b   :  { %5974 = vmatprep.subr.bf16.mxu0 %v8575_v17  ;;  %10141 = vst [vmem:[#allocation164_spill] sm:$0xff] %v8629_v21  ;;  %v4318_v17 = vld [vmem:[%s9743_s9 + $0xb60] sm:$0xff]  ;;  %v8647_v32 = vpack.c.bf16 %v4305_v61, %v4304_v9  ;;  %v4355_v9 = vld [vmem:[%s9743_s9 + $0xc88] sm:$0xff] }
 0x40c   :  { %6004 = vmatpush3.bf16.msra.mxu1 %v8584_v10  ;;  %10142 = vst [vmem:[#allocation165_spill] sm:$0xff] %v8638_v24  ;;  %v4336_v10 = vld [vmem:[%s9743_s9 + $0xbf0] sm:$0xff]  ;;  %v8656_v29 = vpack.c.bf16 %v4319_v41, %v4318_v17  ;;  %v4321_v17 = vld [vmem:[%s9743_s9 + $0xb78] sm:$0xff] }
 0x40d   :  { %6006 = vmatprep.subr.bf16.mxu1 %v8593_v4  ;;  %10143 = vst [vmem:[#allocation166_spill] sm:$0xff] %v8647_v32  ;;  %v4288_v4 = vld [vmem:[%s9743_s9 + $0xa70] sm:$0xff]  ;;  %v8665_v61 = vpack.c.bf16 %v4337_v52, %v4336_v10  ;;  %v4387_v10 = vld [vmem:[%s9743_s9 + $0xd88] sm:$0xff] }
 0x40e   :  { %5976 = vmatpush3.bf16.msra.mxu0 %v8602_v18  ;;  %10144 = vst [vmem:[#allocation167_spill] sm:$0xff] %v8656_v29  ;;  %v4354_v18 = vld [vmem:[%s9743_s9 + $0xc80] sm:$0xff]  ;;  %v8674_v41 = vpack.c.bf16 %v4289_v40, %v4288_v4  ;;  %v4339_v4 = vld [vmem:[%s9743_s9 + $0xc08] sm:$0xff] }
 0x40f   :  { %5978 = vmatprep.subr.bf16.mxu0 %v8611_v44  ;;  %10145 = vst [vmem:[#allocation168_spill] sm:$0xff] %v8665_v61  ;;  %v4320_v44 = vld [vmem:[%s9743_s9 + $0xb70] sm:$0xff]  ;;  %v8683_v52 = vpack.c.bf16 %v4355_v9, %v4354_v18  ;;  %v4357_v18 = vld [vmem:[%s9743_s9 + $0xc98] sm:$0xff] }
 0x410   :  { %6008 = vmatpush3.bf16.msra.mxu1 %v8620_v5  ;;  %10146 = vst [vmem:[#allocation169_spill] sm:$0xff] %v8674_v41  ;;  %v4386_v5 = vld [vmem:[%s9743_s9 + $0xd80] sm:$0xff]  ;;  %v8692_v40 = vpack.c.bf16 %v4321_v17, %v4320_v44  ;;  %v4371_v44 = vld [vmem:[%s9743_s9 + $0xd08] sm:$0xff] }
 0x411   :  { %6010 = vmatprep.subr.bf16.mxu1 %v8629_v21  ;;  %10147 = vst [vmem:[#allocation170_spill] sm:$0xff] %v8683_v52  ;;  %v4338_v21 = vld [vmem:[%s9743_s9 + $0xc00] sm:$0xff]  ;;  %v8701_v9 = vpack.c.bf16 %v4387_v10, %v4386_v5  ;;  %v4389_v5 = vld [vmem:[%s9743_s9 + $0xd98] sm:$0xff]  ;;  %v1536_v10 = vrot.slane %v8406_v34, 2 }
 0x412   :  { %5980 = vmatpush3.bf16.msra.mxu0 %v8638_v24  ;;  %10148 = vst [vmem:[#allocation171_spill] sm:$0xff] %v8692_v40  ;;  %v4356_v24 = vld [vmem:[%s9743_s9 + $0xc90] sm:$0xff]  ;;  %v8710_v17 = vpack.c.bf16 %v4339_v4, %v4338_v21  ;;  %v4341_v21 = vld [vmem:[%s9743_s9 + $0xc18] sm:$0xff]  ;;  %v1753_v4 = vrot.slane %v8119_v62, 4 }
 0x413   :  { %5982 = vmatprep.subr.bf16.mxu0 %v8647_v32  ;;  %10149 = vst [vmem:[#allocation172_spill] sm:$0xff] %v8701_v9  ;;  %v4370_v32 = vld [vmem:[%s9743_s9 + $0xd00] sm:$0xff] }
 0x414   :  { %6012 = vmatpush3.bf16.msra.mxu1 %v8656_v29  ;;  %10150 = vst [vmem:[#allocation173_spill] sm:$0xff] %v8710_v17  ;;  %v4388_v29 = vld [vmem:[%s9743_s9 + $0xd90] sm:$0xff]  ;;  %v8730_v14 = vpack.c.bf16 %v4371_v44, %v4370_v32  ;;  %v4373_v44 = vld [vmem:[%s9743_s9 + $0xd18] sm:$0xff] }
 0x415   :  { %6014 = vmatprep.subr.bf16.mxu1 %v8665_v61  ;;  %v8720_v61 = vpack.c.bf16 %v4357_v18, %v4356_v24  ;;  %v4359_v24 = vld [vmem:[%s9743_s9 + $0xca8] sm:$0xff]  ;;  %v1644_v18 = vrot.slane %v8406_v34, 3  ;;  %v8740_v28 = vpack.c.bf16 %v4389_v5, %v4388_v29  ;;  %v4372_v32 = vld [vmem:[%s9743_s9 + $0xd10] sm:$0xff]  ;;  %v4390_v29 = vld [vmem:[%s9743_s9 + $0xda0] sm:$0xff] }
 0x416   :  { %5984 = vmatpush3.bf16.msra.mxu0 %v8674_v41  ;;  %v4340_v41 = vld [vmem:[%s9743_s9 + $0xc10] sm:$0xff]  ;;  %10152 = vst [vmem:[#allocation175_spill] sm:$0xff] %v8730_v14  ;;  %v4391_v5 = vld [vmem:[%s9743_s9 + $0xda8] sm:$0xff] }
 0x417   :  { %6018 = vmatprep.subr.bf16.mxu0 %v8683_v52  ;;  %10151 = vst [vmem:[#allocation174_spill] sm:$0xff] %v8720_v61  ;;  %v4358_v52 = vld [vmem:[%s9743_s9 + $0xca0] sm:$0xff]  ;;  %10153 = vst [vmem:[#allocation176_spill] sm:$0xff] %v8740_v28 }
 0x418   :  { %6016 = vmatpush3.bf16.msra.mxu1 %v8692_v40  ;;  %v1861_v40 = vrot.slane %v8119_v62, 5 }
 0x419   :  { %1605 = vmatmul.mubr.f32.vlgmr.msra.gmra.mrb[14].mxu0 %v1536_v10  ;;  %6050 = vmatprep.subr.bf16.mxu1 %v8701_v9  ;;  %v8750_v10 = vpack.c.bf16 %v4341_v21, %v4340_v41  ;;  %v8759_v9 = vpack.c.bf16 %v4359_v24, %v4358_v52  ;;  %v4343_v41 = vld [vmem:[%s9743_s9 + $0xc28] sm:$0xff]  ;;  %v8768_v21 = vpack.c.bf16 %v4373_v44, %v4372_v32  ;;  %v4361_v52 = vld [vmem:[%s9743_s9 + $0xcb8] sm:$0xff]  ;;  %v4392_v44 = vld [vmem:[%s9743_s9 + $0xdb0] sm:$0xff] }
 0x41a   :  { %6020 = vmatpush3.bf16.msra.mxu0 %v8710_v17  ;;  %1820 = vmatprep.mubr.f32.mxu0 %v1753_v4  ;;  %v4342_v4 = vld [vmem:[%s9743_s9 + $0xc20] sm:$0xff]  ;;  %v8777_v24 = vpack.c.bf16 %v4391_v5, %v4390_v29  ;;  %v4393_v29 = vld [vmem:[%s9743_s9 + $0xdb8] sm:$0xff] }
 0x41b   :  { %10154 = vst [vmem:[#allocation177_spill] sm:$0xff] %v8750_v10  ;;  %1713 = vmatmul.mubr.f32.vlgmr.msra.gmra.mrb[18].mxu1 %v1644_v18  ;;  %6022 = vmatprep.subr.bf16.mxu0 %v8720_v61  ;;  %10155 = vst [vmem:[#allocation178_spill] sm:$0xff] %v8759_v9  ;;  %v4360_v18 = vld [vmem:[%s9743_s9 + $0xcb0] sm:$0xff]  ;;  %v4374_v61 = vld [vmem:[%s9743_s9 + $0xd20] sm:$0xff]  ;;  %v8786_v32 = vpack.c.bf16 %v4343_v41, %v4342_v4 }
 0x41c   :  { %6052 = vmatpush3.bf16.msra.mxu1 %v8730_v14  ;;  %1928 = vmatprep.mubr.f32.mxu1 %v1861_v40  ;;  %10156 = vst [vmem:[#allocation179_spill] sm:$0xff] %v8768_v21  ;;  %10157 = vst [vmem:[#allocation180_spill] sm:$0xff] %v8777_v24  ;;  %v4375_v40 = vld [vmem:[%s9743_s9 + $0xd28] sm:$0xff]  ;;  %v8795_v5 = vpack.c.bf16 %v4361_v52, %v4360_v18  ;;  %v4345_v4 = vld [vmem:[%s9743_s9 + $0xc38] sm:$0xff]  ;;  %v8813_v52 = vpack.c.bf16 %v4393_v29, %v4392_v44 }
 0x41d   :  { %6054 = vmatprep.subr.bf16.mxu1 %v8740_v28  ;;  %10158 = vst [vmem:[#allocation181_spill] sm:$0xff] %v8786_v32  ;;  %v4344_v28 = vld [vmem:[%s9743_s9 + $0xc30] sm:$0xff]  ;;  %v8804_v41 = vpack.c.bf16 %v4375_v40, %v4374_v61  ;;  %v4363_v18 = vld [vmem:[%s9743_s9 + $0xcc8] sm:$0xff]  ;;  %v4377_v61 = vld [vmem:[%s9743_s9 + $0xd38] sm:$0xff] }
 0x41e   :  { %6024 = vmatpush3.bf16.msra.mxu0 %v8750_v10  ;;  %10159 = vst [vmem:[#allocation182_spill] sm:$0xff] %v8795_v5  ;;  %v4362_v10 = vld [vmem:[%s9743_s9 + $0xcc0] sm:$0xff]  ;;  %10161 = vst [vmem:[#allocation184_spill] sm:$0xff] %v8813_v52  ;;  %v8822_v40 = vpack.c.bf16 %v4345_v4, %v4344_v28  ;;  %v4395_v44 = vld [vmem:[%s9743_s9 + $0xdc8] sm:$0xff] }
 0x41f   :  { %6026 = vmatprep.subr.bf16.mxu0 %v8759_v9  ;;  %10160 = vst [vmem:[#allocation183_spill] sm:$0xff] %v8804_v41  ;;  %v4376_v9 = vld [vmem:[%s9743_s9 + $0xd30] sm:$0xff]  ;;  %v8831_v29 = vpack.c.bf16 %v4363_v18, %v4362_v10  ;;  %v4347_v28 = vld [vmem:[%s9743_s9 + $0xc48] sm:$0xff]  ;;  %v4365_v10 = vld [vmem:[%s9743_s9 + $0xcd8] sm:$0xff] }
 0x420   :  { %6056 = vmatpush3.bf16.msra.mxu1 %v8768_v21  ;;  %10162 = vst [vmem:[#allocation185_spill] sm:$0xff] %v8822_v40  ;;  %v4394_v21 = vld [vmem:[%s9743_s9 + $0xdc0] sm:$0xff]  ;;  %v8840_v4 = vpack.c.bf16 %v4377_v61, %v4376_v9  ;;  %v4379_v9 = vld [vmem:[%s9743_s9 + $0xd48] sm:$0xff] }
 0x421   :  { %6058 = vmatprep.subr.bf16.mxu1 %v8777_v24  ;;  %10163 = vst [vmem:[#allocation186_spill] sm:$0xff] %v8831_v29  ;;  %v4346_v24 = vld [vmem:[%s9743_s9 + $0xc40] sm:$0xff]  ;;  %v8849_v18 = vpack.c.bf16 %v4395_v44, %v4394_v21  ;;  %v4397_v21 = vld [vmem:[%s9743_s9 + $0xdd8] sm:$0xff] }
 0x422   :  { %6028 = vmatpush3.bf16.msra.mxu0 %v8786_v32  ;;  %10164 = vst [vmem:[#allocation187_spill] sm:$0xff] %v8840_v4  ;;  %v4364_v32 = vld [vmem:[%s9743_s9 + $0xcd0] sm:$0xff]  ;;  %v8858_v61 = vpack.c.bf16 %v4347_v28, %v4346_v24  ;;  %v4349_v24 = vld [vmem:[%s9743_s9 + $0xc58] sm:$0xff] }
 0x423   :  { %6030 = vmatprep.subr.bf16.mxu0 %v8795_v5  ;;  %10165 = vst [vmem:[#allocation188_spill] sm:$0xff] %v8849_v18  ;;  %v4378_v5 = vld [vmem:[%s9743_s9 + $0xd40] sm:$0xff]  ;;  %v8867_v44 = vpack.c.bf16 %v4365_v10, %v4364_v32  ;;  %v4367_v32 = vld [vmem:[%s9743_s9 + $0xce8] sm:$0xff] }
 0x424   :  { %6060 = vmatpush3.bf16.msra.mxu1 %v8804_v41  ;;  %10166 = vst [vmem:[#allocation189_spill] sm:$0xff] %v8858_v61  ;;  %v4396_v41 = vld [vmem:[%s9743_s9 + $0xdd0] sm:$0xff]  ;;  %v8876_v28 = vpack.c.bf16 %v4379_v9, %v4378_v5  ;;  %v4381_v5 = vld [vmem:[%s9743_s9 + $0xd58] sm:$0xff] }
 0x425   :  { %6062 = vmatprep.subr.bf16.mxu1 %v8813_v52  ;;  %10167 = vst [vmem:[#allocation190_spill] sm:$0xff] %v8867_v44  ;;  %v4348_v52 = vld [vmem:[%s9743_s9 + $0xc50] sm:$0xff]  ;;  %v8885_v10 = vpack.c.bf16 %v4397_v21, %v4396_v41  ;;  %v4399_v41 = vld [vmem:[%s9743_s9 + $0xde8] sm:$0xff] }
 0x426   :  { %6032 = vmatpush3.bf16.msra.mxu0 %v8822_v40  ;;  %10168 = vst [vmem:[#allocation191_spill] sm:$0xff] %v8876_v28  ;;  %v4366_v40 = vld [vmem:[%s9743_s9 + $0xce0] sm:$0xff]  ;;  %v8894_v9 = vpack.c.bf16 %v4349_v24, %v4348_v52  ;;  %v4351_v52 = vld [vmem:[%s9743_s9 + $0xc68] sm:$0xff] }
 0x427   :  { %6034 = vmatprep.subr.bf16.mxu0 %v8831_v29  ;;  %10169 = vst [vmem:[#allocation192_spill] sm:$0xff] %v8885_v10  ;;  %v4380_v29 = vld [vmem:[%s9743_s9 + $0xd50] sm:$0xff]  ;;  %v8903_v21 = vpack.c.bf16 %v4367_v32, %v4366_v40  ;;  %v4369_v40 = vld [vmem:[%s9743_s9 + $0xcf8] sm:$0xff] }
 0x428   :  { %6064 = vmatpush3.bf16.msra.mxu1 %v8840_v4  ;;  %10170 = vst [vmem:[#allocation193_spill] sm:$0xff] %v8894_v9  ;;  %v4398_v4 = vld [vmem:[%s9743_s9 + $0xde0] sm:$0xff]  ;;  %v8912_v24 = vpack.c.bf16 %v4381_v5, %v4380_v29  ;;  %v4383_v29 = vld [vmem:[%s9743_s9 + $0xd68] sm:$0xff] }
 0x429   :  { %6066 = vmatprep.subr.bf16.mxu1 %v8849_v18  ;;  %10171 = vst [vmem:[#allocation194_spill] sm:$0xff] %v8903_v21  ;;  %v4350_v18 = vld [vmem:[%s9743_s9 + $0xc60] sm:$0xff]  ;;  %v8921_v32 = vpack.c.bf16 %v4399_v41, %v4398_v4  ;;  %v4401_v4 = vld [vmem:[%s9743_s9 + $0xdf8] sm:$0xff] }
 0x42a   :  { %6036 = vmatpush3.bf16.msra.mxu0 %v8858_v61  ;;  %10172 = vst [vmem:[#allocation195_spill] sm:$0xff] %v8912_v24  ;;  %v4368_v61 = vld [vmem:[%s9743_s9 + $0xcf0] sm:$0xff]  ;;  %v8930_v5 = vpack.c.bf16 %v4351_v52, %v4350_v18  ;;  %v4353_v18 = vld [vmem:[%s9743_s9 + $0xc78] sm:$0xff] }
 0x42b   :  { %6038 = vmatprep.subr.bf16.mxu0 %v8867_v44  ;;  %10173 = vst [vmem:[#allocation196_spill] sm:$0xff] %v8921_v32  ;;  %v4382_v44 = vld [vmem:[%s9743_s9 + $0xd60] sm:$0xff]  ;;  %v8939_v41 = vpack.c.bf16 %v4369_v40, %v4368_v61  ;;  %v4419_v61 = vld [vmem:[%s9743_s9 + $0xe88] sm:$0xff] }
 0x42c   :  { %6068 = vmatpush3.bf16.msra.mxu1 %v8876_v28  ;;  %10174 = vst [vmem:[#allocation197_spill] sm:$0xff] %v8930_v5  ;;  %v4400_v28 = vld [vmem:[%s9743_s9 + $0xdf0] sm:$0xff]  ;;  %v8948_v52 = vpack.c.bf16 %v4383_v29, %v4382_v44  ;;  %v4385_v44 = vld [vmem:[%s9743_s9 + $0xd78] sm:$0xff] }
 0x42d   :  { %6070 = vmatprep.subr.bf16.mxu1 %v8885_v10  ;;  %10175 = vst [vmem:[#allocation198_spill] sm:$0xff] %v8939_v41  ;;  %v4352_v10 = vld [vmem:[%s9743_s9 + $0xc70] sm:$0xff]  ;;  %v8957_v40 = vpack.c.bf16 %v4401_v4, %v4400_v28  ;;  %v4451_v28 = vld [vmem:[%s9743_s9 + $0xf88] sm:$0xff] }
 0x42e   :  { %6040 = vmatpush3.bf16.msra.mxu0 %v8894_v9  ;;  %10176 = vst [vmem:[#allocation199_spill] sm:$0xff] %v8948_v52  ;;  %v4418_v9 = vld [vmem:[%s9743_s9 + $0xe80] sm:$0xff]  ;;  %v8966_v29 = vpack.c.bf16 %v4353_v18, %v4352_v10  ;;  %v4403_v10 = vld [vmem:[%s9743_s9 + $0xe08] sm:$0xff] }
 0x42f   :  { %6042 = vmatprep.subr.bf16.mxu0 %v8903_v21  ;;  %10177 = vst [vmem:[#allocation200_spill] sm:$0xff] %v8957_v40  ;;  %v4384_v21 = vld [vmem:[%s9743_s9 + $0xd70] sm:$0xff]  ;;  %v8975_v4 = vpack.c.bf16 %v4419_v61, %v4418_v9  ;;  %v4421_v9 = vld [vmem:[%s9743_s9 + $0xe98] sm:$0xff] }
 0x430   :  { %6072 = vmatpush3.bf16.msra.mxu1 %v8912_v24  ;;  %10178 = vst [vmem:[#allocation201_spill] sm:$0xff] %v8966_v29  ;;  %v4450_v24 = vld [vmem:[%s9743_s9 + $0xf80] sm:$0xff]  ;;  %v8984_v18 = vpack.c.bf16 %v4385_v44, %v4384_v21  ;;  %v4435_v21 = vld [vmem:[%s9743_s9 + $0xf08] sm:$0xff] }
 0x431   :  { %6074 = vmatprep.subr.bf16.mxu1 %v8921_v32  ;;  %10179 = vst [vmem:[#allocation202_spill] sm:$0xff] %v8975_v4  ;;  %v4402_v32 = vld [vmem:[%s9743_s9 + $0xe00] sm:$0xff]  ;;  %v8993_v61 = vpack.c.bf16 %v4451_v28, %v4450_v24  ;;  %v4453_v24 = vld [vmem:[%s9743_s9 + $0xf98] sm:$0xff]  ;;  %v1752_v28 = vrot.slane %v8406_v34, 4 }
 0x432   :  { %6044 = vmatpush3.bf16.msra.mxu0 %v8930_v5  ;;  %10180 = vst [vmem:[#allocation203_spill] sm:$0xff] %v8984_v18  ;;  %v4420_v5 = vld [vmem:[%s9743_s9 + $0xe90] sm:$0xff]  ;;  %v9002_v44 = vpack.c.bf16 %v4403_v10, %v4402_v32  ;;  %v4405_v32 = vld [vmem:[%s9743_s9 + $0xe18] sm:$0xff]  ;;  %v1969_v10 = vrot.slane %v8119_v62, 6 }
 0x433   :  { %6046 = vmatprep.subr.bf16.mxu0 %v8939_v41  ;;  %10181 = vst [vmem:[#allocation204_spill] sm:$0xff] %v8993_v61  ;;  %v4434_v41 = vld [vmem:[%s9743_s9 + $0xf00] sm:$0xff] }
 0x434   :  { %6076 = vmatpush3.bf16.msra.mxu1 %v8948_v52  ;;  %10182 = vst [vmem:[#allocation205_spill] sm:$0xff] %v9002_v44  ;;  %v4452_v52 = vld [vmem:[%s9743_s9 + $0xf90] sm:$0xff]  ;;  %v9022_v14 = vpack.c.bf16 %v4435_v21, %v4434_v41  ;;  %v4437_v21 = vld [vmem:[%s9743_s9 + $0xf18] sm:$0xff] }
 0x435   :  { %6078 = vmatprep.subr.bf16.mxu1 %v8957_v40  ;;  %v9012_v40 = vpack.c.bf16 %v4421_v9, %v4420_v5  ;;  %v4423_v5 = vld [vmem:[%s9743_s9 + $0xea8] sm:$0xff]  ;;  %v1860_v9 = vrot.slane %v8406_v34, 5  ;;  %v9032_v17 = vpack.c.bf16 %v4453_v24, %v4452_v52  ;;  %v4436_v41 = vld [vmem:[%s9743_s9 + $0xf10] sm:$0xff]  ;;  %v4454_v52 = vld [vmem:[%s9743_s9 + $0xfa0] sm:$0xff] }
 0x436   :  { %6048 = vmatpush3.bf16.msra.mxu0 %v8966_v29  ;;  %v4404_v29 = vld [vmem:[%s9743_s9 + $0xe10] sm:$0xff]  ;;  %10184 = vst [vmem:[#allocation207_spill] sm:$0xff] %v9022_v14  ;;  %v4455_v24 = vld [vmem:[%s9743_s9 + $0xfa8] sm:$0xff] }
 0x437   :  { %6082 = vmatprep.subr.bf16.mxu0 %v8975_v4  ;;  %10183 = vst [vmem:[#allocation206_spill] sm:$0xff] %v9012_v40  ;;  %v4422_v4 = vld [vmem:[%s9743_s9 + $0xea0] sm:$0xff]  ;;  %10185 = vst [vmem:[#allocation208_spill] sm:$0xff] %v9032_v17 }
 0x438   :  { %6080 = vmatpush3.bf16.msra.mxu1 %v8984_v18  ;;  %v2077_v18 = vrot.slane %v8119_v62, 7 }
 0x439   :  { %1821 = vmatmul.mubr.f32.vlgmr.msra.gmra.mrb[16].mxu0 %v1752_v28  ;;  %6114 = vmatprep.subr.bf16.mxu1 %v8993_v61  ;;  %v9042_v28 = vpack.c.bf16 %v4405_v32, %v4404_v29  ;;  %v9051_v61 = vpack.c.bf16 %v4423_v5, %v4422_v4  ;;  %v4407_v29 = vld [vmem:[%s9743_s9 + $0xe28] sm:$0xff]  ;;  %v9060_v32 = vpack.c.bf16 %v4437_v21, %v4436_v41  ;;  %v4425_v4 = vld [vmem:[%s9743_s9 + $0xeb8] sm:$0xff]  ;;  %v4456_v21 = vld [vmem:[%s9743_s9 + $0xfb0] sm:$0xff] }
 0x43a   :  { %6084 = vmatpush3.bf16.msra.mxu0 %v9002_v44  ;;  %2036 = vmatprep.mubr.f32.mxu0 %v1969_v10  ;;  %v4406_v10 = vld [vmem:[%s9743_s9 + $0xe20] sm:$0xff]  ;;  %v9069_v5 = vpack.c.bf16 %v4455_v24, %v4454_v52  ;;  %v4457_v52 = vld [vmem:[%s9743_s9 + $0xfb8] sm:$0xff] }
 0x43b   :  { %10186 = vst [vmem:[#allocation209_spill] sm:$0xff] %v9042_v28  ;;  %1929 = vmatmul.mubr.f32.vlgmr.msra.gmra.mrb[20].mxu1 %v1860_v9  ;;  %6086 = vmatprep.subr.bf16.mxu0 %v9012_v40  ;;  %10187 = vst [vmem:[#allocation210_spill] sm:$0xff] %v9051_v61  ;;  %v4424_v9 = vld [vmem:[%s9743_s9 + $0xeb0] sm:$0xff]  ;;  %v4438_v40 = vld [vmem:[%s9743_s9 + $0xf20] sm:$0xff]  ;;  %v9078_v41 = vpack.c.bf16 %v4407_v29, %v4406_v10 }
 0x43c   :  { %6116 = vmatpush3.bf16.msra.mxu1 %v9022_v14  ;;  %2144 = vmatprep.mubr.f32.mxu1 %v2077_v18  ;;  %10188 = vst [vmem:[#allocation211_spill] sm:$0xff] %v9060_v32  ;;  %10189 = vst [vmem:[#allocation212_spill] sm:$0xff] %v9069_v5  ;;  %v4439_v18 = vld [vmem:[%s9743_s9 + $0xf28] sm:$0xff]  ;;  %v9087_v24 = vpack.c.bf16 %v4425_v4, %v4424_v9  ;;  %v4409_v10 = vld [vmem:[%s9743_s9 + $0xe38] sm:$0xff]  ;;  %v9105_v4 = vpack.c.bf16 %v4457_v52, %v4456_v21 }
 0x43d   :  { %6118 = vmatprep.subr.bf16.mxu1 %v9032_v17  ;;  %10190 = vst [vmem:[#allocation213_spill] sm:$0xff] %v9078_v41  ;;  %v4408_v17 = vld [vmem:[%s9743_s9 + $0xe30] sm:$0xff]  ;;  %v9096_v29 = vpack.c.bf16 %v4439_v18, %v4438_v40  ;;  %v4427_v9 = vld [vmem:[%s9743_s9 + $0xec8] sm:$0xff]  ;;  %v4441_v40 = vld [vmem:[%s9743_s9 + $0xf38] sm:$0xff] }
 0x43e   :  { %6088 = vmatpush3.bf16.msra.mxu0 %v9042_v28  ;;  %10191 = vst [vmem:[#allocation214_spill] sm:$0xff] %v9087_v24  ;;  %v4426_v28 = vld [vmem:[%s9743_s9 + $0xec0] sm:$0xff]  ;;  %10193 = vst [vmem:[#allocation216_spill] sm:$0xff] %v9105_v4  ;;  %v9114_v18 = vpack.c.bf16 %v4409_v10, %v4408_v17  ;;  %v4459_v21 = vld [vmem:[%s9743_s9 + $0xfc8] sm:$0xff] }
 0x43f   :  { %6090 = vmatprep.subr.bf16.mxu0 %v9051_v61  ;;  %10192 = vst [vmem:[#allocation215_spill] sm:$0xff] %v9096_v29  ;;  %v4440_v61 = vld [vmem:[%s9743_s9 + $0xf30] sm:$0xff]  ;;  %v9123_v52 = vpack.c.bf16 %v4427_v9, %v4426_v28  ;;  %v4411_v17 = vld [vmem:[%s9743_s9 + $0xe48] sm:$0xff]  ;;  %v4429_v28 = vld [vmem:[%s9743_s9 + $0xed8] sm:$0xff] }
 0x440   :  { %6120 = vmatpush3.bf16.msra.mxu1 %v9060_v32  ;;  %10194 = vst [vmem:[#allocation217_spill] sm:$0xff] %v9114_v18  ;;  %v4458_v32 = vld [vmem:[%s9743_s9 + $0xfc0] sm:$0xff]  ;;  %v9132_v10 = vpack.c.bf16 %v4441_v40, %v4440_v61  ;;  %v4443_v61 = vld [vmem:[%s9743_s9 + $0xf48] sm:$0xff]  ;;  %v4432_v14 = vld [vmem:[%s9743_s9 + $0xef0] sm:$0xff] }
 0x441   :  { %6122 = vmatprep.subr.bf16.mxu1 %v9069_v5  ;;  %10195 = vst [vmem:[#allocation218_spill] sm:$0xff] %v9123_v52  ;;  %v4410_v5 = vld [vmem:[%s9743_s9 + $0xe40] sm:$0xff]  ;;  %v9141_v9 = vpack.c.bf16 %v4459_v21, %v4458_v32  ;;  %v4461_v32 = vld [vmem:[%s9743_s9 + $0xfd8] sm:$0xff] }
 0x442   :  { %6092 = vmatpush3.bf16.msra.mxu0 %v9078_v41  ;;  %10196 = vst [vmem:[#allocation219_spill] sm:$0xff] %v9132_v10  ;;  %v4428_v41 = vld [vmem:[%s9743_s9 + $0xed0] sm:$0xff]  ;;  %v9150_v40 = vpack.c.bf16 %v4411_v17, %v4410_v5  ;;  %v4413_v5 = vld [vmem:[%s9743_s9 + $0xe58] sm:$0xff] }
 0x443   :  { %6094 = vmatprep.subr.bf16.mxu0 %v9087_v24  ;;  %10197 = vst [vmem:[#allocation220_spill] sm:$0xff] %v9141_v9  ;;  %v4442_v24 = vld [vmem:[%s9743_s9 + $0xf40] sm:$0xff]  ;;  %v9159_v21 = vpack.c.bf16 %v4429_v28, %v4428_v41  ;;  %v4431_v41 = vld [vmem:[%s9743_s9 + $0xee8] sm:$0xff] }
 0x444   :  { %6124 = vmatpush3.bf16.msra.mxu1 %v9096_v29  ;;  %10198 = vst [vmem:[#allocation221_spill] sm:$0xff] %v9150_v40  ;;  %v4460_v29 = vld [vmem:[%s9743_s9 + $0xfd0] sm:$0xff]  ;;  %v9168_v17 = vpack.c.bf16 %v4443_v61, %v4442_v24  ;;  %v4445_v24 = vld [vmem:[%s9743_s9 + $0xf58] sm:$0xff] }
 0x445   :  { %6126 = vmatprep.subr.bf16.mxu1 %v9105_v4  ;;  %10199 = vst [vmem:[#allocation222_spill] sm:$0xff] %v9159_v21  ;;  %v4412_v4 = vld [vmem:[%s9743_s9 + $0xe50] sm:$0xff]  ;;  %v9177_v28 = vpack.c.bf16 %v4461_v32, %v4460_v29  ;;  %v4463_v29 = vld [vmem:[%s9743_s9 + $0xfe8] sm:$0xff] }
 0x446   :  { %6096 = vmatpush3.bf16.msra.mxu0 %v9114_v18  ;;  %10200 = vst [vmem:[#allocation223_spill] sm:$0xff] %v9168_v17  ;;  %v4430_v18 = vld [vmem:[%s9743_s9 + $0xee0] sm:$0xff]  ;;  %v9186_v61 = vpack.c.bf16 %v4413_v5, %v4412_v4  ;;  %v4415_v4 = vld [vmem:[%s9743_s9 + $0xe68] sm:$0xff] }
 0x447   :  { %6098 = vmatprep.subr.bf16.mxu0 %v9123_v52  ;;  %10201 = vst [vmem:[#allocation224_spill] sm:$0xff] %v9177_v28  ;;  %v4444_v52 = vld [vmem:[%s9743_s9 + $0xf50] sm:$0xff]  ;;  %v9195_v32 = vpack.c.bf16 %v4431_v41, %v4430_v18  ;;  %v4433_v18 = vld [vmem:[%s9743_s9 + $0xef8] sm:$0xff]  ;;  %v9215_v41 = vld [vmem:[%s9744_s10] sm:$0x1] }
 0x448   :  { %6128 = vmatpush3.bf16.msra.mxu1 %v9132_v10  ;;  %10202 = vst [vmem:[#allocation225_spill] sm:$0xff] %v9186_v61  ;;  %v4462_v10 = vld [vmem:[%s9743_s9 + $0xfe0] sm:$0xff]  ;;  %10205 = vst [vmem:[#allocation228_spill] sm:$0xff] %v9215_v41  ;;  %v9236_v25 = vpack.c.bf16 %v4433_v18, %v4432_v14  ;;  %v4448_v14 = vld [vmem:[%s9743_s9 + $0xf70] sm:$0xff] }
 0x449   :  { %6130 = vmatprep.subr.bf16.mxu1 %v9141_v9  ;;  %10203 = vst [vmem:[#allocation226_spill] sm:$0xff] %v9195_v32  ;;  %v4414_v9 = vld [vmem:[%s9743_s9 + $0xe60] sm:$0xff]  ;;  %v4449_v18 = vld [vmem:[%s9743_s9 + $0xf78] sm:$0xff] }
 0x44a   :  { %6100 = vmatpush3.bf16.msra.mxu0 %v9150_v40  ;;  %v9204_v40 = vpack.c.bf16 %v4445_v24, %v4444_v52  ;;  %v4446_v52 = vld [vmem:[%s9743_s9 + $0xf60] sm:$0xff]  ;;  %v4447_v24 = vld [vmem:[%s9743_s9 + $0xf68] sm:$0xff]  ;;  %v9227_v49 = vpack.c.bf16 %v4415_v4, %v4414_v9  ;;  %10208 = vst [vmem:[#allocation231_spill] sm:$0xff] %v9236_v25  ;;  %v4417_v9 = vld [vmem:[%s9743_s9 + $0xe78] sm:$0xff] }
 0x44b   :  { %6102 = vmatprep.subr.bf16.mxu0 %v9159_v21 }
 0x44c   :  { %6132 = vmatpush3.bf16.msra.mxu1 %v9168_v17  ;;  %v4509_v5 = vpop.f32.mrb[4].mxu0  ;;  %10204 = vst [vmem:[#allocation227_spill] sm:$0xff] %v9204_v40  ;;  %v9218_v17 = vpack.c.bf16 %v4463_v29, %v4462_v10  ;;  %10207 = vst [vmem:[#allocation230_spill] sm:$0xff] %v9227_v49  ;;  %v4465_v10 = vld [vmem:[%s9743_s9 + $0xff8] sm:$0xff] }
 0x44d   :  { %v4510_v21 = vpop.f32.mrb[5].mxu0  ;;  %6134 = vmatprep.subr.bf16.mxu1 %v9177_v28  ;;  %v4464_v28 = vld [vmem:[%s9743_s9 + $0xff0] sm:$0xff] }
 0x44e   :  { %10206 = vst [vmem:[#allocation229_spill] sm:$0xff] %v9218_v17  ;;  %v4511_v44 = vadd.f32 %v4510_v21, %v4509_v5  ;;  %6104 = vmatpush3.bf16.msra.mxu0 %v9186_v61  ;;  %v4544_v51 = vpop.f32.mrb[8].mxu1  ;;  %v4416_v21 = vld [vmem:[%s9743_s9 + $0xe70] sm:$0xff]  ;;  %v9246_v61 = vpack.c.bf16 %v4447_v24, %v4446_v52  ;;  %v1968_v24 = vrot.slane %v8406_v34, 6 }
 0x44f   :  { %v4545_v29 = vpop.f32.mrb[9].mxu1  ;;  %6106 = vmatprep.subr.bf16.mxu0 %v9195_v32  ;;  %v9249_v32 = vpack.c.bf16 %v4465_v10, %v4464_v28  ;;  %v9265_v28 = vpack.c.bf16 %v4449_v18, %v4448_v14  ;;  %v2076_v10 = vrot.slane %v8406_v34, 7 }
 0x450   :  { %v530_v4 = vadd.f32 %v4511_v44, %v9215_v41  ;;  %v4546_v5 = vadd.f32 %v4545_v29, %v4544_v51  ;;  %6136 = vmatpush3.bf16.msra.mxu1 %v9204_v40  ;;  %10209 = vst [vmem:[#allocation232_spill] sm:$0xff] %v9246_v61  ;;  %v9258_v51 = vpack.c.bf16 %v4417_v9, %v4416_v21  ;;  %v4467_v44 = vld [vmem:[%s9734_s0 + $0x8] sm:$0xff]  ;;  %v10213_v29 = vmov 0.0   ;;  %v6701_v21 = vld [vmem:[%s9735_s1] sm:$0xff] }
 0x451   :  { %6138 = vmatprep.subr.bf16.mxu1 %v9218_v17  ;;  %10210 = vst [vmem:[#allocation233_spill] sm:$0xff] %v9249_v32  ;;  %10212 = vst [vmem:[#allocation235_spill] sm:$0xff] %v9265_v28  ;;  %v2246_v52 = vcombine.high %v4467_v44, %v4467_v44 }
 0x452   :  { %v640_v2 = vadd.f32 %v4546_v5, %v530_v4  ;;  %6108 = vmatpush3.bf16.msra.mxu0 %v9227_v49  ;;  %10211 = vst [vmem:[#allocation234_spill] sm:$0xff] %v9258_v51 }
 0x453   :  { %6110 = vmatprep.subr.bf16.mxu0 %v9236_v25 }
 0x454   :  { %6140 = vmatpush3.bf16.msra.mxu1 %v9246_v61 }
 0x455   :  { %6142 = vmatprep.subr.bf16.mxu1 %v9249_v32 }
 0x456   :  { %6112 = vmatpush3.bf16.msra.mxu0 %v9258_v51 }
 0x458   :  { %6144 = vmatpush3.bf16.msra.mxu1 %v9265_v28 }
 0x459   :  { %2037 = vmatmul.mubr.f32.vlgmr.msra.gmra.mrb[18].mxu0 %v1968_v24  ;;  %4468 = vmatprep.subr.msk.mxu1 %vm62_vm0, %v2246_v52 }
 0x45a   :  { %5615 = vmatprep.mubr.msk.f32.mxu0 %vm6758_vm4, %v10213_v29 }
 0x45b   :  { %2145 = vmatmul.mubr.f32.vlgmr.msra.gmra.mrb[22].mxu1 %v2076_v10 }
 0x45c   :  { %4469 = vmatpush1.msk.msra.mxu1 %vm62_vm0, %v4467_v44  ;;  %2315 = vmatprep.mubr.f32.mxu1 %v10213_v29 }
 0x45f   :  { %4470 = vmatmul.mubr.msk.f32.vlgmr.msra.gmra.mrb[24].mxu1 %vm58_vm1, %v6701_v21 }
 0x460   :  { %2388 = vmatprep.mubr.f32.mxu1 %v10213_v29 }
 0x46c   :  { %v4579_v9 = vpop.f32.mrb[6].mxu0 }
 0x46d   :  { %v4580_v4 = vpop.f32.mrb[7].mxu0 }
 0x46e   :  { %v4581_v5 = vadd.f32 %v4580_v4, %v4579_v9  ;;  %v4614_v14 = vpop.f32.mrb[10].mxu1  ;;  %v9980_v4 = vmov 0.0|0.0  }
 0x46f   :  { %v4615_v18 = vpop.f32.mrb[11].mxu1  ;;  %6145 = vmatprep.subr.bf16.mxu0 %v9980_v4 }
 0x470   :  { %v748_v24 = vadd.f32 %v4581_v5, %v640_v2  ;;  %v4616_v52 = vadd.f32 %v4615_v18, %v4614_v14  ;;  %v2152_v2 = vld [vmem:[%s9745_s11] sm:$0xff] }
 0x472   :  { %v856_v10 = vadd.f32 %v4616_v52, %v748_v24 }
 0x48c   :  { %v4649_v28 = vpop.f32.mrb[8].mxu0 }
 0x48d   :  { %v4650_v44 = vpop.f32.mrb[9].mxu0 }
 0x48e   :  { %v4651_v51 = vadd.f32 %v4650_v44, %v4649_v28  ;;  %v4684_v32 = vpop.f32.mrb[12].mxu1 }
 0x48f   :  { %v4685_v61 = vpop.f32.mrb[13].mxu1 }
 0x490   :  { %v964_v25 = vadd.f32 %v4651_v51, %v856_v10  ;;  %v4686_v49 = vadd.f32 %v4685_v61, %v4684_v32  ;;  %v2153_v51 = vld [vmem:[%s9745_s11 + $0x8] sm:$0xff] }
 0x492   :  { %v1072_v17 = vadd.f32 %v4686_v49, %v964_v25  ;;  %v9287_v25 = vpack.c.bf16 %v2153_v51, %v2152_v2 }
 0x494   :  { %10214 = vst [vmem:[#allocation236_spill] sm:$0xff] %v9287_v25  ;;  %6147 = vmatpush3.bf16.msra.mxu0 %v9287_v25 }
 0x495   :  { %6148 = vmatprep.subr.bf16.mxu0 %v9980_v4 }
 0x4ac   :  { %v4719_v40 = vpop.f32.mrb[10].mxu0 }
 0x4ad   :  { %v4720_v21 = vpop.f32.mrb[11].mxu0 }
 0x4ae   :  { %v4721_v41 = vadd.f32 %v4720_v21, %v4719_v40  ;;  %v4754_v58 = vpop.f32.mrb[14].mxu1 }
 0x4af   :  { %v4755_v57 = vpop.f32.mrb[15].mxu1 }
 0x4b0   :  { %v1180_v43 = vadd.f32 %v4721_v41, %v1072_v17  ;;  %v4756_v9 = vadd.f32 %v4755_v57, %v4754_v58  ;;  %v2154_v57 = vld [vmem:[%s9745_s11 + $0x10] sm:$0xff]  ;;  %v2155_v58 = vld [vmem:[%s9745_s11 + $0x18] sm:$0xff] }
 0x4b1   :  { %v9297_v49 = vpack.c.bf16 %v2155_v58, %v2154_v57 }
 0x4b2   :  { %v1288_v61 = vadd.f32 %v4756_v9, %v1180_v43 }
 0x4b3   :  { %10215 = vst [vmem:[#allocation237_spill] sm:$0xff] %v9297_v49  ;;  %6150 = vmatpush3.bf16.msra.mxu0 %v9297_v49 }
 0x4cc   :  { %v4789_v43 = vpop.f32.mrb[12].mxu0 }
 0x4cd   :  { %v4790_v40 = vpop.f32.mrb[13].mxu0 }
 0x4ce   :  { %v4791_v17 = vadd.f32 %v4790_v40, %v4789_v43  ;;  %v4824_v32 = vpop.f32.mrb[16].mxu1 }
 0x4cf   :  { %v4825_v41 = vpop.f32.mrb[17].mxu1 }
 0x4d0   :  { %v1392_v28 = vadd.f32 %v4791_v17, %v1288_v61  ;;  %v4826_v5 = vadd.f32 %v4825_v41, %v4824_v32 }
 0x4d2   :  { %v1502_v14 = vadd.f32 %v4826_v5, %v1392_v28 }
 0x4ec   :  { %v4859_v18 = vpop.f32.mrb[14].mxu0 }
 0x4ed   :  { %v4860_v24 = vpop.f32.mrb[15].mxu0 }
 0x4ee   :  { %v4861_v52 = vadd.f32 %v4860_v24, %v4859_v18  ;;  %v4894_v10 = vpop.f32.mrb[18].mxu1 }
 0x4ef   :  { %v4895_v44 = vpop.f32.mrb[19].mxu1 }
 0x4f0   :  { %v1610_v21 = vadd.f32 %v4861_v52, %v1502_v14  ;;  %v4896_v9 = vadd.f32 %v4895_v44, %v4894_v10 }
 0x4f2   :  { %v1718_v2 = vadd.f32 %v4896_v9, %v1610_v21 }
 0x50c   :  { %v4929_v51 = vpop.f32.mrb[16].mxu0 }
 0x50d   :  { %v4930_v57 = vpop.f32.mrb[17].mxu0 }
 0x50e   :  { %v4931_v58 = vadd.f32 %v4930_v57, %v4929_v51  ;;  %v4964_v4 = vpop.f32.mrb[20].mxu1  ;;  %v3841_v51 = vmul.f32 %v7235_v22, %v7235_v22 }
 0x50f   :  { %v4965_v49 = vpop.f32.mrb[21].mxu1 }
 0x510   :  { %v1826_v25 = vadd.f32 %v4931_v58, %v1718_v2  ;;  %v4966_v43 = vadd.f32 %v4965_v49, %v4964_v4  ;;  %v3840_v2 = vmul.f32 %v7224_v15, %v7224_v15 }
 0x512   :  { %v1934_v40 = vadd.f32 %v4966_v43, %v1826_v25 }
 0x52c   :  { %v4999_v37 = vpop.f32.mrb[18].mxu0 }
 0x52d   :  { %v5000_v61 = vpop.f32.mrb[19].mxu0 }
 0x52e   :  { %v5001_v17 = vadd.f32 %v5000_v61, %v4999_v37  ;;  %v5034_v32 = vpop.f32.mrb[22].mxu1  ;;  %v6702_v37 = vld [vmem:[%s9737_s3] sm:$0xff] }
 0x52f   :  { %v5035_v41 = vpop.f32.mrb[23].mxu1 }
 0x530   :  { %v2042_v28 = vadd.f32 %v5001_v17, %v1934_v40  ;;  %v5036_v5 = vadd.f32 %v5035_v41, %v5034_v32  ;;  %v3844_v17 = vadd.f32 %v3841_v51, %v3840_v2  ;;  %v3842_v32 = vmul.f32 %v8406_v34, %v8406_v34  ;;  %v10224_v2 = vld [vmem:[#allocation15_spill] sm:$0xff]  ;;  %v10225_v51 = vld [vmem:[#allocation16_spill] sm:$0xff] }
 0x531   :  { %v3843_v41 = vmul.f32 %v8119_v62, %v8119_v62 }
 0x532   :  { %v2150_v18 = vadd.f32 %v5036_v5, %v2042_v28  ;;  %v2317_v24 = vpop.f32.mrb[24].mxu1 }
 0x533   :  { %v2318_v14 = vadd.f32 %v2317_v24, %v6857_v8  ;;  %v2319_v52 = vpop.f32.mrb[25].mxu1  ;;  %v6703_v24 = vld [vmem:[%s9739_s5] sm:$0xff] }
 0x534   :  { %v2151_v10 = vmax.f32 %v2150_v18, 0.0  ;;  %v2320_v44 = vadd.f32 %v2319_v52, %v6857_v8  ;;  %v9314_v8 = vld [vmem:[%s9746_s12] sm:$0x1]  ;;  %v3847_v18 = vadd.f32 %v3843_v41, %v3842_v32 }
 0x535   :  { %v2322_v4 = vmax.f32 %v2318_v14, 0.0  ;;  %v10228_v41 = vld [vmem:[#allocation19_spill] sm:$0xff] }
 0x536   :  { %v2323_v21 = vmax.f32 %v2320_v44, 0.0  ;;  %5616 = vmatmul.mubr.msk.f32.vlgmr.msra.gmra.mrb[20].mxu0 %vm2157_vm5, %v2151_v10  ;;  %v10221_v44 = vld [vmem:[#allocation12_spill] sm:$0xff] }
 0x537   :  { %2461 = vmatprep.mubr.f32.mxu0 %v10213_v29 }
 0x538   :  { %2324 = vmatprep.subr.mxu1 %v2323_v21 }
 0x539   :  { %2325 = vmatpush1.msra.mxu1 %v2322_v4 }
 0x53a   :  { %4471 = vmatmul.mubr.msk.f32.vlgmr.msra.gmra.mrb[26].mxu1 %vm147_vm2, %v6702_v37  ;;  %v10222_v37 = vld [vmem:[#allocation13_spill] sm:$0xff] }
 0x53b   :  { %2542 = vmatprep.mubr.f32.mxu1 %v10213_v29 }
 0x609   :  { %v2227_v25 = vpop.f32.mrb[20].mxu0 }
 0x60a   :  { %v9317_v49 = vadd.f32 %v2227_v25, %v9314_v8  ;;  %v5617_v9 = vpop.f32.mrb[21].mxu0  ;;  %v10223_v25 = vld [vmem:[#allocation14_spill] sm:$0xff] }
 0x60c   :  { %v2232_v57 = vsel %vm2231_vm6, %v9317_v49, -inf  ;;  %3943 = vst.msk [vmem:[#allocation2] sm:$0x1] %vm2231_vm6, %v9317_v49 }
 0x60d   :  { %v2390_v58 = vpop.f32.mrb[26].mxu1  ;;  %2233 = vmax.xlane.f32.xlu0 %v2232_v57 }
 0x60e   :  { %v2391_v43 = vadd.f32 %v2390_v58, %v6875_v19  ;;  %v2392_v40 = vpop.f32.mrb[27].mxu1 }
 0x60f   :  { %v2393_v61 = vadd.f32 %v2392_v40, %v6875_v19  ;;  %v6704_v19 = vld [vmem:[%s9739_s5 + $0x8] sm:$0xff] }
 0x610   :  { %v2395_v5 = vmax.f32 %v2391_v43, 0.0  ;;  %v10226_v40 = vld [vmem:[#allocation17_spill] sm:$0xff] }
 0x611   :  { %v2396_v28 = vmax.f32 %v2393_v61, 0.0  ;;  %3845 = vadd.xlane.f32.xlu0 %v3844_v17  ;;  %v10227_v61 = vld [vmem:[#allocation18_spill] sm:$0xff] }
 0x613   :  { %2397 = vmatprep.subr.mxu0 %v2396_v28 }
 0x614   :  { %2398 = vmatpush1.msra.mxu0 %v2395_v5 }
 0x615   :  { %4472 = vmatmul.mubr.msk.f32.vlgmr.msra.gmra.mrb[22].mxu0 %vm147_vm2, %v6703_v24  ;;  %3848 = vadd.xlane.f32.xlu0 %v3847_v18  ;;  %v10230_v24 = vld [vmem:[#allocation21_spill] sm:$0xff] }
 0x616   :  { %2467 = vmatprep.mubr.f32.mxu0 %v10213_v29  ;;  %6156 = vmatprep.subr.bf16.mxu0 %v6897_v31 }
 0x617   :  { %6158 = vmatpush3.bf16.msra.mxu0 %v6902_v33 }
 0x618   :  { %6160 = vmatprep.subr.bf16.mxu0 %v6918_v38 }
 0x619   :  { %4473 = vmatmul.mubr.msk.f32.gmra.mrb[24].mxu0 %vm147_vm2, %v6704_v19 }
 0x61b   :  { %6162 = vmatpush3.bf16.msra.mxu0 %v6920_v39 }
 0x61c   :  { %6164 = vmatprep.subr.bf16.mxu0 %v6929_v42 }
 0x61f   :  { %6166 = vmatpush3.bf16.msra.mxu0 %v6938_v45 }
 0x620   :  { %6168 = vmatprep.subr.bf16.mxu0 %v6947_v48 }
 0x623   :  { %6170 = vmatpush3.bf16.msra.mxu0 %v6962_v53 }
 0x624   :  { %6172 = vmatprep.subr.bf16.mxu0 %v6965_v54 }
 0x627   :  { %6174 = vmatpush3.bf16.msra.mxu0 %v6980_v59 }
 0x628   :  { %6176 = vmatprep.subr.bf16.mxu0 %v6983_v60 }
 0x62b   :  { %6178 = vmatpush3.bf16.msra.mxu0 %v6998_v1 }
 0x62c   :  { %6180 = vmatprep.subr.bf16.mxu0 %v7001_v3 }
 0x62f   :  { %6182 = vmatpush3.bf16.msra.mxu0 %v7010_v6 }
 0x630   :  { %6184 = vmatprep.subr.bf16.mxu0 %v7162_v26 }
 0x633   :  { %6186 = vmatpush3.bf16.msra.mxu0 %v7171_v30 }
 0x634   :  { %6220 = vmatprep.subr.bf16.mxu0 %v7198_v50 }
 0x6e8   :  { %v2463_v31 = vpop.f32.mrb[22].mxu0 }
 0x6e9   :  { %v2465_v33 = vpop.f32.mrb[23].mxu0  ;;  %v2464_v38 = vadd.f32 %v2463_v31, %v7014_v7  ;;  %v10231_v31 = vld [vmem:[#allocation22_spill] sm:$0xff] }
 0x6ea   :  { %v2466_v39 = vadd.f32 %v2465_v33, %v7014_v7  ;;  %v6705_v7 = vld [vmem:[%s9741_s7] sm:$0xff] }
 0x6eb   :  { %v2474_v54 = vmax.f32 %v2464_v38, 0.0  ;;  %v10232_v33 = vld [vmem:[#allocation23_spill] sm:$0xff]  ;;  %v10233_v38 = vld [vmem:[#allocation24_spill] sm:$0xff] }
 0x6ec   :  { %v2469_v42 = vpop.f32.mrb[24].mxu0  ;;  %v2475_v60 = vmax.f32 %v2466_v39, 0.0  ;;  %v10235_v39 = vld [vmem:[#allocation26_spill] sm:$0xff] }
 0x6ed   :  { %v2470_v45 = vadd.f32 %v2469_v42, %v7017_v12  ;;  %v2471_v48 = vpop.f32.mrb[25].mxu0  ;;  %v10237_v42 = vld [vmem:[#allocation28_spill] sm:$0xff] }
 0x6ee   :  { %v2472_v53 = vadd.f32 %v2471_v48, %v7017_v12  ;;  %v6706_v12 = vld [vmem:[%s9741_s7 + $0x8] sm:$0xff]  ;;  %v10239_v48 = vld [vmem:[#allocation30_spill] sm:$0xff]  ;;  %s6759_s7 = smov [#allocation2]  }
 0x6ef   :  { %v2476_v59 = vmax.f32 %v2470_v45, 0.0  ;;  %v10238_v45 = vld [vmem:[#allocation29_spill] sm:$0xff]  ;;  %s3956_s20 = sshll.u32 %s6759_s7, 4  ;;  %s3957_s20 = int_to_ptr.vmem [resolvable:$true] %s3956_s20 }
 0x6f0   :  { %v2477_v1 = vmax.f32 %v2472_v53, 0.0  ;;  %v10240_v53 = vld [vmem:[#allocation31_spill] sm:$0xff]  ;;  %s6707_s2 = scalar_lea.vmem %s3957_s20, 32  ;;  %p6712_p1 = scmp.lt.s32.totalorder %s3957_s20, %s3957_s20 }
 0x6f1   :  { %v6153_v3 = vpack.c.bf16 %v2476_v59, %v2474_v54  ;;  %v10241_v54 = vld [vmem:[#allocation32_spill] sm:$0xff]  ;;  %v10242_v59 = vld [vmem:[#allocation33_spill] sm:$0xff]  ;;  %p6708_p0 = scmp.ne.s32.totalorder %s3957_s20, %s6707_s2  ;;  %p6713_p2 = scmp.lt.s32.totalorder %s6707_s2, %s6707_s2 }
 0x6f2   :  { %v6151_v6 = vpack.c.bf16 %v2477_v1, %v2475_v60  ;;  %v10243_v60 = vld [vmem:[#allocation34_spill] sm:$0xff]  ;;  %v10244_v1 = vld [vmem:[#allocation35_spill] sm:$0xff] }
 0x6f3   :  { %p6714_p3 = por %p6713_p2, %p6712_p1 }
 0x6f4   :  { %6152 = vmatprep.subr.bf16.mxu1 %v6151_v6  ;;  %v10246_v6 = vld [vmem:[#allocation37_spill] sm:$0xff] }
 0x6f5   :  { %6154 = vmatpush1.bf16.msra.mxu1 %v6153_v3  ;;  %v10245_v3 = vld [vmem:[#allocation36_spill] sm:$0xff]  ;;  %p6715_p4 = pnand %p6714_p3, %p6708_p0 }
 0x6f6   :  { %6188 = vmatprep.subr.bf16.mxu1 %v7028_v27  ;;  %v10216_v27 = vld [vmem:[#allocation8_spill] sm:$0xff] }
 0x6f8   :  { %4474 = vmatmul.mubr.msk.f32.vlgmr.msra.gmra.mrb[28].mxu1 %vm339_vm3, %v6705_v7  ;;  %v10247_v7 = vld [vmem:[#allocation38_spill] sm:$0xff] }
 0x6f9   :  { %2548 = vmatprep.mubr.f32.mxu1 %v10213_v29  ;;  %6190 = vmatpush3.bf16.msra.mxu1 %v7045_v35  ;;  %v10217_v35 = vld [vmem:[#allocation9_spill] sm:$0xff] }
 0x6fa   :  { %6192 = vmatprep.subr.bf16.mxu1 %v7048_v36  ;;  %v10218_v36 = vld [vmem:[#allocation10_spill] sm:$0xff] }
 0x6fc   :  { %4475 = vmatmul.mubr.msk.f32.gmra.mrb[30].mxu1 %vm339_vm3, %v6706_v12  ;;  %v10248_v12 = vld [vmem:[#allocation39_spill] sm:$0xff] }
 0x6fd   :  { %6194 = vmatpush3.bf16.msra.mxu1 %v7068_v46 }
 0x6fe   :  { %6196 = vmatprep.subr.bf16.mxu1 %v7071_v47  ;;  %v10219_v47 = vld [vmem:[#allocation11_spill] sm:$0xff] }
 0x701   :  { %6198 = vmatpush3.bf16.msra.mxu1 %v7087_v55 }
 0x702   :  { %6200 = vmatprep.subr.bf16.mxu1 %v7090_v56 }
 0x705   :  { %6202 = vmatpush3.bf16.msra.mxu1 %v7105_v63 }
 0x706   :  { %6204 = vmatprep.subr.bf16.mxu1 %v7108_v0 }
 0x709   :  { %6206 = vmatpush3.bf16.msra.mxu1 %v7123_v11 }
 0x70a   :  { %6208 = vmatprep.subr.bf16.mxu1 %v7126_v13 }
 0x70d   :  { %6210 = vmatpush3.bf16.msra.mxu1 %v7135_v16  ;;  %v10220_v16 = vld [vmem:[#allocation103_spill] sm:$0xff] }
 0x70e   :  { %6212 = vmatprep.subr.bf16.mxu1 %v7145_v20 }
 0x711   :  { %6214 = vmatpush3.bf16.msra.mxu1 %v7153_v23 }
 0x712   :  { %6216 = vmatprep.subr.bf16.mxu1 %v10216_v27  ;;  %v10249_v27 = vld [vmem:[#allocation40_spill] sm:$0xff] }
 0x715   :  { %6218 = vmatpush3.bf16.msra.mxu1 %v10217_v35 }
 0x716   :  { %6252 = vmatprep.subr.bf16.mxu1 %v10218_v36  ;;  %v10250_v36 = vld [vmem:[#allocation41_spill] sm:$0xff] }
 0x7cb   :  { %v2544_v46 = vpop.f32.mrb[28].mxu1 }
 0x7cc   :  { %v2545_v55 = vadd.f32 %v2544_v46, %v10219_v47  ;;  %v2546_v56 = vpop.f32.mrb[29].mxu1  ;;  %v10251_v46 = vld [vmem:[#allocation42_spill] sm:$0xff] }
 0x7cd   :  { %v2547_v63 = vadd.f32 %v2546_v56, %v10219_v47  ;;  %v10252_v56 = vld [vmem:[#allocation43_spill] sm:$0xff] }
 0x7ce   :  { %v9391_v0 = vmax.f32 %v2545_v55, 0.0 }
 0x7cf   :  { %v9393_v11 = vmax.f32 %v2547_v63, 0.0  ;;  %v2550_v13 = vpop.f32.mrb[30].mxu1  ;;  %v10253_v63 = vld [vmem:[#allocation44_spill] sm:$0xff] }
 0x7d0   :  { %v2551_v20 = vadd.f32 %v2550_v13, %v10220_v16  ;;  %v2552_v23 = vpop.f32.mrb[31].mxu1  ;;  %v2632_v52 = vrot.slane %v9391_v0, 1  ;;  %v3865_v17 = vmul.f32 %v9391_v0, %v9391_v0  ;;  %v3894_v28 = vmul.f32 %v9391_v0, %v7224_v15  ;;  %v10234_v15 = vld [vmem:[#allocation25_spill] sm:$0xff] }
 0x7d1   :  { %v2553_v26 = vadd.f32 %v2552_v23, %v10220_v16  ;;  %2623 = vmatprep.mubr.f32.mxu0 %v9393_v11  ;;  %v2633_v30 = vrot.slane %v9393_v11, 1  ;;  %v2708_v50 = vrot.slane %v9393_v11, 2  ;;  %v2783_v21 = vrot.slane %v9393_v11, 3  ;;  %v10254_v16 = vld [vmem:[#allocation45_spill] sm:$0xff]  ;;  %v10256_v23 = vld [vmem:[#allocation47_spill] sm:$0xff] }
 0x7d2   :  { %v9400_v14 = vmax.f32 %v2551_v20, 0.0  ;;  %2624 = vmatmul.mubr.f32.vlgmr.msra.gmra.mrb[26].mxu0 %v9391_v0  ;;  %v3866_v32 = vmul.f32 %v9393_v11, %v9393_v11  ;;  %v2707_v35 = vrot.slane %v9391_v0, 2  ;;  %v2858_v47 = vrot.slane %v9393_v11, 4  ;;  %v10255_v20 = vld [vmem:[#allocation46_spill] sm:$0xff] }
 0x7d3   :  { %v9404_v10 = vmax.f32 %v2553_v26, 0.0  ;;  %6222 = vmatpush3.bf16.msra.mxu0 %v10221_v44  ;;  %2700 = vmatprep.mubr.f32.mxu1 %v2633_v30  ;;  %v2782_v55 = vrot.slane %v9391_v0, 3  ;;  %v2933_v13 = vrot.slane %v9393_v11, 5  ;;  %v10257_v26 = vld [vmem:[#allocation48_spill] sm:$0xff]  ;;  %v10258_v30 = vld [vmem:[#allocation49_spill] sm:$0xff] }
 0x7d4   :  { %2775 = vmatprep.mubr.f32.mxu0 %v2708_v50  ;;  %2701 = vmatmul.mubr.f32.vlgmr.msra.gmra.mrb[32].mxu1 %v2632_v52  ;;  %v3867_v4 = vmul.f32 %v9400_v14, %v9400_v14  ;;  %v3896_v58 = vmul.f32 %v9400_v14, %v8406_v34  ;;  %v3895_v34 = vmul.f32 %v9393_v11, %v7235_v22  ;;  %v10236_v22 = vld [vmem:[#allocation27_spill] sm:$0xff]  ;;  %v10259_v50 = vld [vmem:[#allocation50_spill] sm:$0xff]  ;;  %v10261_v44 = vld [vmem:[#allocation52_spill] sm:$0xff] }
 0x7d5   :  { %6254 = vmatpush3.bf16.msra.mxu1 %v10222_v37  ;;  %6224 = vmatprep.subr.bf16.mxu0 %v10223_v25  ;;  %v3868_v9 = vmul.f32 %v9404_v10, %v9404_v10  ;;  %v3897_v43 = vmul.f32 %v9404_v10, %v8119_v62  ;;  %v10229_v62 = vld [vmem:[#allocation20_spill] sm:$0xff]  ;;  %v9432_v18 = vadd.f32 %v3866_v32, %v3865_v17  ;;  %v10260_v52 = vld [vmem:[#allocation51_spill] sm:$0xff]  ;;  %v10274_v17 = vld [vmem:[#allocation65_spill] sm:$0xff] }
 0x7d6   :  { %2850 = vmatprep.mubr.f32.mxu1 %v2783_v21  ;;  %6256 = vmatprep.subr.bf16.mxu1 %v10224_v2  ;;  %v9435_v19 = vadd.f32 %v3895_v34, %v3894_v28  ;;  %v10262_v21 = vld [vmem:[#allocation53_spill] sm:$0xff]  ;;  %v10264_v37 = vld [vmem:[#allocation55_spill] sm:$0xff]  ;;  %v10265_v25 = vld [vmem:[#allocation56_spill] sm:$0xff] }
 0x7d7   :  { %6226 = vmatpush3.bf16.msra.mxu0 %v10225_v51  ;;  %v3872_v57 = vadd.f32 %v3868_v9, %v3867_v4  ;;  %v3901_v5 = vadd.f32 %v3897_v43, %v3896_v58  ;;  %v10263_v4 = vld [vmem:[#allocation54_spill] sm:$0xff]  ;;  %v10266_v9 = vld [vmem:[#allocation57_spill] sm:$0xff]  ;;  %v10268_v51 = vld [vmem:[#allocation59_spill] sm:$0xff] }
 0x7d8   :  { %6228 = vmatprep.subr.bf16.mxu0 %v10226_v40  ;;  %v10267_v2 = vld [vmem:[#allocation58_spill] sm:$0xff]  ;;  %v10270_v58 = vld [vmem:[#allocation61_spill] sm:$0xff]  ;;  %v10272_v40 = vld [vmem:[#allocation63_spill] sm:$0xff] }
 0x7d9   :  { %6258 = vmatpush3.bf16.msra.mxu1 %v10227_v61  ;;  %3873 = vadd.xlane.f32.xlu0 %v3872_v57  ;;  %v10269_v57 = vld [vmem:[#allocation60_spill] sm:$0xff]  ;;  %v10271_v43 = vld [vmem:[#allocation62_spill] sm:$0xff]  ;;  %v10278_v34 = vld [vmem:[#allocation69_spill] sm:$0xff] }
 0x7da   :  { %6260 = vmatprep.subr.bf16.mxu1 %v10228_v41  ;;  %v10273_v61 = vld [vmem:[#allocation64_spill] sm:$0xff]  ;;  %v10275_v32 = vld [vmem:[#allocation66_spill] sm:$0xff]  ;;  %v10276_v41 = vld [vmem:[#allocation67_spill] sm:$0xff] }
 0x7db   :  { %6230 = vmatpush3.bf16.msra.mxu0 %v10229_v62  ;;  %v10277_v28 = vld [vmem:[#allocation68_spill] sm:$0xff]  ;;  %v10279_v62 = vld [vmem:[#allocation70_spill] sm:$0xff] }
 0x7dc   :  { %6232 = vmatprep.subr.bf16.mxu0 %v10230_v24  ;;  %v10281_v24 = vld [vmem:[#allocation72_spill] sm:$0xff] }
 0x7dd   :  { %6262 = vmatpush3.bf16.msra.mxu1 %v10231_v31  ;;  %3902 = vadd.xlane.f32.xlu0 %v3901_v5  ;;  %v10280_v5 = vld [vmem:[#allocation71_spill] sm:$0xff]  ;;  %v2857_v31 = vrot.slane %v9391_v0, 4 }
 0x7de   :  { %6264 = vmatprep.subr.bf16.mxu1 %v10232_v33  ;;  %v10282_v33 = vld [vmem:[#allocation73_spill] sm:$0xff] }
 0x7df   :  { %6234 = vmatpush3.bf16.msra.mxu0 %v10233_v38  ;;  %v10283_v38 = vld [vmem:[#allocation74_spill] sm:$0xff] }
 0x7e0   :  { %6236 = vmatprep.subr.bf16.mxu0 %v10234_v15  ;;  %v3008_v15 = vrot.slane %v9393_v11, 6 }
 0x7e1   :  { %6266 = vmatpush3.bf16.msra.mxu1 %v10235_v39  ;;  %v2932_v39 = vrot.slane %v9391_v0, 5 }
 0x7e2   :  { %6268 = vmatprep.subr.bf16.mxu1 %v10236_v22  ;;  %v10284_v22 = vld [vmem:[#allocation75_spill] sm:$0xff] }
 0x7e3   :  { %6238 = vmatpush3.bf16.msra.mxu0 %v10237_v42  ;;  %v10285_v42 = vld [vmem:[#allocation76_spill] sm:$0xff] }
 0x7e4   :  { %6240 = vmatprep.subr.bf16.mxu0 %v10238_v45  ;;  %v3083_v45 = vrot.slane %v9393_v11, 7  ;;  %v10295_v11 = vld [vmem:[#allocation86_spill] sm:$0xff] }
 0x7e5   :  { %6270 = vmatpush3.bf16.msra.mxu1 %v10239_v48  ;;  %v10286_v48 = vld [vmem:[#allocation77_spill] sm:$0xff] }
 0x7e6   :  { %6272 = vmatprep.subr.bf16.mxu1 %v10240_v53  ;;  %v10287_v53 = vld [vmem:[#allocation78_spill] sm:$0xff] }
 0x7e7   :  { %6242 = vmatpush3.bf16.msra.mxu0 %v10241_v54  ;;  %v10288_v54 = vld [vmem:[#allocation79_spill] sm:$0xff] }
 0x7e8   :  { %6244 = vmatprep.subr.bf16.mxu0 %v10242_v59  ;;  %v10289_v59 = vld [vmem:[#allocation80_spill] sm:$0xff] }
 0x7e9   :  { %6274 = vmatpush3.bf16.msra.mxu1 %v10243_v60  ;;  %v10290_v60 = vld [vmem:[#allocation81_spill] sm:$0xff] }
 0x7ea   :  { %6276 = vmatprep.subr.bf16.mxu1 %v10244_v1  ;;  %v10291_v1 = vld [vmem:[#allocation82_spill] sm:$0xff] }
 0x7eb   :  { %6246 = vmatpush3.bf16.msra.mxu0 %v10245_v3  ;;  %v10292_v3 = vld [vmem:[#allocation83_spill] sm:$0xff] }
 0x7ec   :  { %6248 = vmatprep.subr.bf16.mxu0 %v10246_v6  ;;  %v10293_v6 = vld [vmem:[#allocation84_spill] sm:$0xff] }
 0x7ed   :  { %6278 = vmatpush3.bf16.msra.mxu1 %v10247_v7  ;;  %v10294_v7 = vld [vmem:[#allocation85_spill] sm:$0xff] }
 0x7ee   :  { %6280 = vmatprep.subr.bf16.mxu1 %v10248_v12  ;;  %v10296_v12 = vld [vmem:[#allocation87_spill] sm:$0xff] }
 0x7ef   :  { %6250 = vmatpush3.bf16.msra.mxu0 %v10249_v27  ;;  %v10297_v27 = vld [vmem:[#allocation88_spill] sm:$0xff] }
 0x7f0   :  { %6284 = vmatprep.subr.bf16.mxu0 %v10250_v36  ;;  %v10299_v36 = vld [vmem:[#allocation90_spill] sm:$0xff] }
 0x7f1   :  { %6282 = vmatpush3.bf16.msra.mxu1 %v10251_v46  ;;  %v10300_v46 = vld [vmem:[#allocation91_spill] sm:$0xff] }
 0x7f2   :  { %2776 = vmatmul.mubr.f32.vlgmr.msra.gmra.mrb[28].mxu0 %v2707_v35  ;;  %6316 = vmatprep.subr.bf16.mxu1 %v10252_v56  ;;  %v10298_v35 = vld [vmem:[#allocation89_spill] sm:$0xff]  ;;  %v10303_v56 = vld [vmem:[#allocation94_spill] sm:$0xff] }
 0x7f3   :  { %6286 = vmatpush3.bf16.msra.mxu0 %v10253_v63  ;;  %2925 = vmatprep.mubr.f32.mxu0 %v2858_v47  ;;  %v10301_v47 = vld [vmem:[#allocation92_spill] sm:$0xff]  ;;  %v10304_v63 = vld [vmem:[#allocation95_spill] sm:$0xff] }
 0x7f4   :  { %2851 = vmatmul.mubr.f32.vlgmr.msra.gmra.mrb[34].mxu1 %v2782_v55  ;;  %6288 = vmatprep.subr.bf16.mxu0 %v10254_v16  ;;  %v10302_v55 = vld [vmem:[#allocation93_spill] sm:$0xff] }
 0x7f5   :  { %6318 = vmatpush3.bf16.msra.mxu1 %v10255_v20  ;;  %3000 = vmatprep.mubr.f32.mxu1 %v2933_v13  ;;  %v10305_v13 = vld [vmem:[#allocation96_spill] sm:$0xff]  ;;  %v10306_v16 = vld [vmem:[#allocation97_spill] sm:$0xff]  ;;  %v10307_v20 = vld [vmem:[#allocation98_spill] sm:$0xff] }
 0x7f6   :  { %6320 = vmatprep.subr.bf16.mxu1 %v10256_v23  ;;  %v10308_v23 = vld [vmem:[#allocation99_spill] sm:$0xff] }
 0x7f7   :  { %6290 = vmatpush3.bf16.msra.mxu0 %v10257_v26  ;;  %v10309_v26 = vld [vmem:[#allocation100_spill] sm:$0xff] }
 0x7f8   :  { %6292 = vmatprep.subr.bf16.mxu0 %v10258_v30  ;;  %v10310_v30 = vld [vmem:[#allocation101_spill] sm:$0xff] }
 0x7f9   :  { %6322 = vmatpush3.bf16.msra.mxu1 %v10259_v50  ;;  %v10311_v50 = vld [vmem:[#allocation102_spill] sm:$0xff] }
 0x7fa   :  { %6324 = vmatprep.subr.bf16.mxu1 %v10260_v52  ;;  %v10312_v52 = vld [vmem:[#allocation104_spill] sm:$0xff] }
 0x7fb   :  { %6294 = vmatpush3.bf16.msra.mxu0 %v10261_v44  ;;  %v10313_v44 = vld [vmem:[#allocation105_spill] sm:$0xff] }
 0x7fc   :  { %6296 = vmatprep.subr.bf16.mxu0 %v10262_v21  ;;  %v3007_v21 = vrot.slane %v9391_v0, 6 }
 0x7fd   :  { %6326 = vmatpush3.bf16.msra.mxu1 %v10263_v4  ;;  %v10314_v4 = vld [vmem:[#allocation106_spill] sm:$0xff] }
 0x7fe   :  { %6328 = vmatprep.subr.bf16.mxu1 %v10264_v37  ;;  %v10315_v37 = vld [vmem:[#allocation107_spill] sm:$0xff] }
 0x7ff   :  { %6298 = vmatpush3.bf16.msra.mxu0 %v10265_v25  ;;  %v3082_v25 = vrot.slane %v9391_v0, 7  ;;  %v10323_v0 = vld [vmem:[#allocation115_spill] sm:$0xff] }
 0x800   :  { %6300 = vmatprep.subr.bf16.mxu0 %v10266_v9  ;;  %v10316_v9 = vld [vmem:[#allocation108_spill] sm:$0xff] }
 0x801   :  { %6330 = vmatpush3.bf16.msra.mxu1 %v10267_v2  ;;  %v10317_v2 = vld [vmem:[#allocation109_spill] sm:$0xff] }
 0x802   :  { %6332 = vmatprep.subr.bf16.mxu1 %v10268_v51  ;;  %v3231_v51 = vrot.slane %v9404_v10, 1 }
 0x803   :  { %6302 = vmatpush3.bf16.msra.mxu0 %v10269_v57  ;;  %v10318_v57 = vld [vmem:[#allocation110_spill] sm:$0xff] }
 0x804   :  { %6304 = vmatprep.subr.bf16.mxu0 %v10270_v58  ;;  %v10319_v58 = vld [vmem:[#allocation111_spill] sm:$0xff] }
 0x805   :  { %6334 = vmatpush3.bf16.msra.mxu1 %v10271_v43  ;;  %v10320_v43 = vld [vmem:[#allocation112_spill] sm:$0xff] }
 0x806   :  { %6336 = vmatprep.subr.bf16.mxu1 %v10272_v40  ;;  %v10321_v40 = vld [vmem:[#allocation113_spill] sm:$0xff] }
 0x807   :  { %6306 = vmatpush3.bf16.msra.mxu0 %v10273_v61  ;;  %v10322_v61 = vld [vmem:[#allocation114_spill] sm:$0xff] }
 0x808   :  { %6308 = vmatprep.subr.bf16.mxu0 %v10274_v17  ;;  %v10324_v17 = vld [vmem:[#allocation116_spill] sm:$0xff] }
 0x809   :  { %6338 = vmatpush3.bf16.msra.mxu1 %v10275_v32  ;;  %v10325_v32 = vld [vmem:[#allocation117_spill] sm:$0xff] }
 0x80a   :  { %6340 = vmatprep.subr.bf16.mxu1 %v10276_v41  ;;  %v10326_v41 = vld [vmem:[#allocation118_spill] sm:$0xff] }
 0x80b   :  { %6310 = vmatpush3.bf16.msra.mxu0 %v10277_v28  ;;  %v10327_v28 = vld [vmem:[#allocation119_spill] sm:$0xff] }
 0x80c   :  { %6312 = vmatprep.subr.bf16.mxu0 %v10278_v34  ;;  %v10328_v34 = vld [vmem:[#allocation120_spill] sm:$0xff] }
 0x80d   :  { %6342 = vmatpush3.bf16.msra.mxu1 %v10279_v62  ;;  %v10329_v62 = vld [vmem:[#allocation121_spill] sm:$0xff] }
 0x80e   :  { %6344 = vmatprep.subr.bf16.mxu1 %v10280_v5  ;;  %v10330_v5 = vld [vmem:[#allocation122_spill] sm:$0xff] }
 0x80f   :  { %6314 = vmatpush3.bf16.msra.mxu0 %v10281_v24  ;;  %v10331_v24 = vld [vmem:[#allocation123_spill] sm:$0xff] }
 0x810   :  { %6348 = vmatprep.subr.bf16.mxu0 %v10282_v33  ;;  %v10333_v33 = vld [vmem:[#allocation125_spill] sm:$0xff] }
 0x811   :  { %6346 = vmatpush3.bf16.msra.mxu1 %v10283_v38  ;;  %v10334_v38 = vld [vmem:[#allocation126_spill] sm:$0xff] }
 0x812   :  { %2926 = vmatmul.mubr.f32.vlgmr.msra.gmra.mrb[30].mxu0 %v2857_v31  ;;  %6380 = vmatprep.subr.bf16.mxu1 %v10284_v22  ;;  %v10332_v31 = vld [vmem:[#allocation124_spill] sm:$0xff]  ;;  %v10337_v22 = vld [vmem:[#allocation129_spill] sm:$0xff] }
 0x813   :  { %6350 = vmatpush3.bf16.msra.mxu0 %v10285_v42  ;;  %3075 = vmatprep.mubr.f32.mxu0 %v3008_v15  ;;  %v10335_v15 = vld [vmem:[#allocation127_spill] sm:$0xff]  ;;  %v10338_v42 = vld [vmem:[#allocation130_spill] sm:$0xff] }
 0x814   :  { %3001 = vmatmul.mubr.f32.vlgmr.msra.gmra.mrb[36].mxu1 %v2932_v39  ;;  %6352 = vmatprep.subr.bf16.mxu0 %v10286_v48  ;;  %v10336_v39 = vld [vmem:[#allocation128_spill] sm:$0xff] }
 0x815   :  { %6382 = vmatpush3.bf16.msra.mxu1 %v10287_v53  ;;  %3150 = vmatprep.mubr.f32.mxu1 %v3083_v45  ;;  %v10339_v45 = vld [vmem:[#allocation131_spill] sm:$0xff]  ;;  %v10340_v48 = vld [vmem:[#allocation132_spill] sm:$0xff]  ;;  %v10341_v53 = vld [vmem:[#allocation133_spill] sm:$0xff] }
 0x816   :  { %6384 = vmatprep.subr.bf16.mxu1 %v10288_v54  ;;  %v10342_v54 = vld [vmem:[#allocation134_spill] sm:$0xff] }
 0x817   :  { %6354 = vmatpush3.bf16.msra.mxu0 %v10289_v59  ;;  %v10343_v59 = vld [vmem:[#allocation135_spill] sm:$0xff] }
 0x818   :  { %6356 = vmatprep.subr.bf16.mxu0 %v10290_v60  ;;  %v10344_v60 = vld [vmem:[#allocation136_spill] sm:$0xff] }
 0x819   :  { %6386 = vmatpush3.bf16.msra.mxu1 %v10291_v1  ;;  %v10345_v1 = vld [vmem:[#allocation137_spill] sm:$0xff] }
 0x81a   :  { %6388 = vmatprep.subr.bf16.mxu1 %v10292_v3  ;;  %v10346_v3 = vld [vmem:[#allocation138_spill] sm:$0xff] }
 0x81b   :  { %6358 = vmatpush3.bf16.msra.mxu0 %v10293_v6  ;;  %v10347_v6 = vld [vmem:[#allocation139_spill] sm:$0xff] }
 0x81c   :  { %6360 = vmatprep.subr.bf16.mxu0 %v10294_v7  ;;  %v3306_v7 = vrot.slane %v9404_v10, 2 }
 0x81d   :  { %6390 = vmatpush3.bf16.msra.mxu1 %v10295_v11  ;;  %v3230_v11 = vrot.slane %v9400_v14, 1 }
 0x81e   :  { %6392 = vmatprep.subr.bf16.mxu1 %v10296_v12  ;;  %v10348_v12 = vld [vmem:[#allocation140_spill] sm:$0xff] }
 0x81f   :  { %6362 = vmatpush3.bf16.msra.mxu0 %v10297_v27  ;;  %v10349_v27 = vld [vmem:[#allocation141_spill] sm:$0xff] }
 0x820   :  { %6364 = vmatprep.subr.bf16.mxu0 %v10298_v35  ;;  %v3381_v35 = vrot.slane %v9404_v10, 3 }
 0x821   :  { %6394 = vmatpush3.bf16.msra.mxu1 %v10299_v36  ;;  %v10350_v36 = vld [vmem:[#allocation142_spill] sm:$0xff] }
 0x822   :  { %6396 = vmatprep.subr.bf16.mxu1 %v10300_v46  ;;  %v10351_v46 = vld [vmem:[#allocation143_spill] sm:$0xff] }
 0x823   :  { %6366 = vmatpush3.bf16.msra.mxu0 %v10301_v47  ;;  %v10352_v47 = vld [vmem:[#allocation144_spill] sm:$0xff] }
 0x824   :  { %6368 = vmatprep.subr.bf16.mxu0 %v10302_v55  ;;  %v10353_v55 = vld [vmem:[#allocation145_spill] sm:$0xff] }
 0x825   :  { %6398 = vmatpush3.bf16.msra.mxu1 %v10303_v56  ;;  %v10354_v56 = vld [vmem:[#allocation146_spill] sm:$0xff] }
 0x826   :  { %6400 = vmatprep.subr.bf16.mxu1 %v10304_v63  ;;  %v10355_v63 = vld [vmem:[#allocation147_spill] sm:$0xff] }
 0x827   :  { %6370 = vmatpush3.bf16.msra.mxu0 %v10305_v13  ;;  %v10356_v13 = vld [vmem:[#allocation148_spill] sm:$0xff] }
 0x828   :  { %6372 = vmatprep.subr.bf16.mxu0 %v10306_v16  ;;  %v10357_v16 = vld [vmem:[#allocation149_spill] sm:$0xff] }
 0x829   :  { %6402 = vmatpush3.bf16.msra.mxu1 %v10307_v20  ;;  %v10358_v20 = vld [vmem:[#allocation150_spill] sm:$0xff] }
 0x82a   :  { %6404 = vmatprep.subr.bf16.mxu1 %v10308_v23  ;;  %v10359_v23 = vld [vmem:[#allocation151_spill] sm:$0xff] }
 0x82b   :  { %6374 = vmatpush3.bf16.msra.mxu0 %v10309_v26  ;;  %v10360_v26 = vld [vmem:[#allocation152_spill] sm:$0xff] }
 0x82c   :  { %6376 = vmatprep.subr.bf16.mxu0 %v10310_v30  ;;  %v10361_v30 = vld [vmem:[#allocation153_spill] sm:$0xff] }
 0x82d   :  { %6406 = vmatpush3.bf16.msra.mxu1 %v10311_v50  ;;  %v10362_v50 = vld [vmem:[#allocation154_spill] sm:$0xff] }
 0x82e   :  { %6408 = vmatprep.subr.bf16.mxu1 %v10312_v52  ;;  %v10363_v52 = vld [vmem:[#allocation155_spill] sm:$0xff] }
 0x82f   :  { %6378 = vmatpush3.bf16.msra.mxu0 %v10313_v44  ;;  %v10364_v44 = vld [vmem:[#allocation156_spill] sm:$0xff] }
 0x830   :  { %6412 = vmatprep.subr.bf16.mxu0 %v10314_v4  ;;  %v10366_v4 = vld [vmem:[#allocation158_spill] sm:$0xff] }
 0x831   :  { %6410 = vmatpush3.bf16.msra.mxu1 %v10315_v37  ;;  %v10367_v37 = vld [vmem:[#allocation159_spill] sm:$0xff] }
 0x832   :  { %3076 = vmatmul.mubr.f32.vlgmr.msra.gmra.mrb[32].mxu0 %v3007_v21  ;;  %6444 = vmatprep.subr.bf16.mxu1 %v10316_v9  ;;  %v10365_v21 = vld [vmem:[#allocation157_spill] sm:$0xff] }
 0x833   :  { %6414 = vmatpush3.bf16.msra.mxu0 %v10317_v2  ;;  %3221 = vmatprep.mubr.f32.mxu0 %v9404_v10  ;;  %v10369_v9 = vld [vmem:[#allocation161_spill] sm:$0xff]  ;;  %v10370_v2 = vld [vmem:[#allocation162_spill] sm:$0xff] }
 0x834   :  { %3151 = vmatmul.mubr.f32.vlgmr.msra.gmra.mrb[38].mxu1 %v3082_v25  ;;  %6416 = vmatprep.subr.bf16.mxu0 %v10318_v57  ;;  %v10368_v25 = vld [vmem:[#allocation160_spill] sm:$0xff] }
 0x835   :  { %6446 = vmatpush3.bf16.msra.mxu1 %v10319_v58  ;;  %3298 = vmatprep.mubr.f32.mxu1 %v3231_v51  ;;  %v10371_v51 = vld [vmem:[#allocation163_spill] sm:$0xff]  ;;  %v10372_v57 = vld [vmem:[#allocation164_spill] sm:$0xff]  ;;  %v10373_v58 = vld [vmem:[#allocation165_spill] sm:$0xff] }
 0x836   :  { %6448 = vmatprep.subr.bf16.mxu1 %v10320_v43  ;;  %v10374_v43 = vld [vmem:[#allocation166_spill] sm:$0xff] }
 0x837   :  { %6418 = vmatpush3.bf16.msra.mxu0 %v10321_v40  ;;  %v10375_v40 = vld [vmem:[#allocation167_spill] sm:$0xff] }
 0x838   :  { %6420 = vmatprep.subr.bf16.mxu0 %v10322_v61  ;;  %v10376_v61 = vld [vmem:[#allocation168_spill] sm:$0xff] }
 0x839   :  { %6450 = vmatpush3.bf16.msra.mxu1 %v10323_v0  ;;  %v10377_v0 = vld [vmem:[#allocation169_spill] sm:$0xff] }
 0x83a   :  { %6452 = vmatprep.subr.bf16.mxu1 %v10324_v17  ;;  %v3305_v17 = vrot.slane %v9400_v14, 2 }
 0x83b   :  { %6422 = vmatpush3.bf16.msra.mxu0 %v10325_v32  ;;  %v10378_v32 = vld [vmem:[#allocation170_spill] sm:$0xff] }
 0x83c   :  { %6424 = vmatprep.subr.bf16.mxu0 %v10326_v41  ;;  %v10379_v41 = vld [vmem:[#allocation171_spill] sm:$0xff] }
 0x83d   :  { %6454 = vmatpush3.bf16.msra.mxu1 %v10327_v28  ;;  %v3456_v28 = vrot.slane %v9404_v10, 4 }
 0x83e   :  { %6456 = vmatprep.subr.bf16.mxu1 %v10328_v34  ;;  %v3380_v34 = vrot.slane %v9400_v14, 3 }
 0x83f   :  { %6426 = vmatpush3.bf16.msra.mxu0 %v10329_v62  ;;  %v10380_v62 = vld [vmem:[#allocation172_spill] sm:$0xff] }
 0x840   :  { %6428 = vmatprep.subr.bf16.mxu0 %v10330_v5  ;;  %v10381_v5 = vld [vmem:[#allocation173_spill] sm:$0xff] }
 0x841   :  { %6458 = vmatpush3.bf16.msra.mxu1 %v10331_v24  ;;  %v3531_v24 = vrot.slane %v9404_v10, 5 }
 0x842   :  { %6460 = vmatprep.subr.bf16.mxu1 %v10332_v31  ;;  %v10382_v31 = vld [vmem:[#allocation174_spill] sm:$0xff] }
 0x843   :  { %6430 = vmatpush3.bf16.msra.mxu0 %v10333_v33  ;;  %v10383_v33 = vld [vmem:[#allocation175_spill] sm:$0xff] }
 0x844   :  { %6432 = vmatprep.subr.bf16.mxu0 %v10334_v38  ;;  %v10384_v38 = vld [vmem:[#allocation176_spill] sm:$0xff] }
 0x845   :  { %6462 = vmatpush3.bf16.msra.mxu1 %v10335_v15  ;;  %v10385_v15 = vld [vmem:[#allocation177_spill] sm:$0xff] }
 0x846   :  { %6464 = vmatprep.subr.bf16.mxu1 %v10336_v39  ;;  %v10386_v39 = vld [vmem:[#allocation178_spill] sm:$0xff] }
 0x847   :  { %6434 = vmatpush3.bf16.msra.mxu0 %v10337_v22  ;;  %v10387_v22 = vld [vmem:[#allocation179_spill] sm:$0xff] }
 0x848   :  { %6436 = vmatprep.subr.bf16.mxu0 %v10338_v42  ;;  %v10388_v42 = vld [vmem:[#allocation180_spill] sm:$0xff] }
 0x849   :  { %6466 = vmatpush3.bf16.msra.mxu1 %v10339_v45  ;;  %v10389_v45 = vld [vmem:[#allocation181_spill] sm:$0xff] }
 0x84a   :  { %6468 = vmatprep.subr.bf16.mxu1 %v10340_v48  ;;  %v10390_v48 = vld [vmem:[#allocation182_spill] sm:$0xff] }
 0x84b   :  { %6438 = vmatpush3.bf16.msra.mxu0 %v10341_v53  ;;  %v10391_v53 = vld [vmem:[#allocation183_spill] sm:$0xff] }
 0x84c   :  { %6440 = vmatprep.subr.bf16.mxu0 %v10342_v54  ;;  %v10392_v54 = vld [vmem:[#allocation184_spill] sm:$0xff] }
 0x84d   :  { %6470 = vmatpush3.bf16.msra.mxu1 %v10343_v59  ;;  %v10393_v59 = vld [vmem:[#allocation185_spill] sm:$0xff] }
 0x84e   :  { %6472 = vmatprep.subr.bf16.mxu1 %v10344_v60  ;;  %v10394_v60 = vld [vmem:[#allocation186_spill] sm:$0xff] }
 0x84f   :  { %6442 = vmatpush3.bf16.msra.mxu0 %v10345_v1  ;;  %v10395_v1 = vld [vmem:[#allocation187_spill] sm:$0xff] }
 0x850   :  { %6476 = vmatprep.subr.bf16.mxu0 %v10346_v3  ;;  %v10396_v3 = vld [vmem:[#allocation188_spill] sm:$0xff] }
 0x851   :  { %6474 = vmatpush3.bf16.msra.mxu1 %v10347_v6  ;;  %v10397_v6 = vld [vmem:[#allocation189_spill] sm:$0xff] }
 0x852   :  { %3222 = vmatmul.mubr.f32.vlgmr.msra.gmra.mrb[34].mxu0 %v9400_v14  ;;  %6508 = vmatprep.subr.bf16.mxu1 %v10348_v12  ;;  %v10400_v12 = vld [vmem:[#allocation192_spill] sm:$0xff] }
 0x853   :  { %6478 = vmatpush3.bf16.msra.mxu0 %v10349_v27  ;;  %3373 = vmatprep.mubr.f32.mxu0 %v3306_v7  ;;  %v10398_v7 = vld [vmem:[#allocation190_spill] sm:$0xff]  ;;  %v10401_v27 = vld [vmem:[#allocation193_spill] sm:$0xff] }
 0x854   :  { %3299 = vmatmul.mubr.f32.vlgmr.msra.gmra.mrb[40].mxu1 %v3230_v11  ;;  %6480 = vmatprep.subr.bf16.mxu0 %v10350_v36  ;;  %v10399_v11 = vld [vmem:[#allocation191_spill] sm:$0xff] }
 0x855   :  { %6510 = vmatpush3.bf16.msra.mxu1 %v10351_v46  ;;  %3448 = vmatprep.mubr.f32.mxu1 %v3381_v35  ;;  %v10402_v35 = vld [vmem:[#allocation194_spill] sm:$0xff]  ;;  %v10403_v36 = vld [vmem:[#allocation195_spill] sm:$0xff]  ;;  %v10404_v46 = vld [vmem:[#allocation196_spill] sm:$0xff] }
 0x856   :  { %6512 = vmatprep.subr.bf16.mxu1 %v10352_v47  ;;  %v10405_v47 = vld [vmem:[#allocation197_spill] sm:$0xff] }
 0x857   :  { %6482 = vmatpush3.bf16.msra.mxu0 %v10353_v55  ;;  %v10406_v55 = vld [vmem:[#allocation198_spill] sm:$0xff] }
 0x858   :  { %6484 = vmatprep.subr.bf16.mxu0 %v10354_v56  ;;  %v10407_v56 = vld [vmem:[#allocation199_spill] sm:$0xff] }
 0x859   :  { %6514 = vmatpush3.bf16.msra.mxu1 %v10355_v63  ;;  %v10408_v63 = vld [vmem:[#allocation200_spill] sm:$0xff] }
 0x85a   :  { %6516 = vmatprep.subr.bf16.mxu1 %v10356_v13  ;;  %v10409_v13 = vld [vmem:[#allocation201_spill] sm:$0xff] }
 0x85b   :  { %6486 = vmatpush3.bf16.msra.mxu0 %v10357_v16  ;;  %v3455_v16 = vrot.slane %v9400_v14, 4 }
 0x85c   :  { %6488 = vmatprep.subr.bf16.mxu0 %v10358_v20  ;;  %v10410_v20 = vld [vmem:[#allocation202_spill] sm:$0xff] }
 0x85d   :  { %6518 = vmatpush3.bf16.msra.mxu1 %v10359_v23  ;;  %v10411_v23 = vld [vmem:[#allocation203_spill] sm:$0xff] }
 0x85e   :  { %6520 = vmatprep.subr.bf16.mxu1 %v10360_v26  ;;  %v3606_v26 = vrot.slane %v9404_v10, 6 }
 0x85f   :  { %6490 = vmatpush3.bf16.msra.mxu0 %v10361_v30  ;;  %v3530_v30 = vrot.slane %v9400_v14, 5 }
 0x860   :  { %6492 = vmatprep.subr.bf16.mxu0 %v10362_v50  ;;  %v10412_v50 = vld [vmem:[#allocation204_spill] sm:$0xff] }
 0x861   :  { %6522 = vmatpush3.bf16.msra.mxu1 %v10363_v52  ;;  %v10413_v52 = vld [vmem:[#allocation205_spill] sm:$0xff] }
 0x862   :  { %6524 = vmatprep.subr.bf16.mxu1 %v10364_v44  ;;  %v3681_v44 = vrot.slane %v9404_v10, 7  ;;  %v10423_v10 = vld [vmem:[#allocation215_spill] sm:$0xff] }
 0x863   :  { %6494 = vmatpush3.bf16.msra.mxu0 %v10365_v21  ;;  %v10414_v21 = vld [vmem:[#allocation206_spill] sm:$0xff] }
 0x864   :  { %6496 = vmatprep.subr.bf16.mxu0 %v10366_v4  ;;  %v10415_v4 = vld [vmem:[#allocation207_spill] sm:$0xff] }
 0x865   :  { %6526 = vmatpush3.bf16.msra.mxu1 %v10367_v37  ;;  %v10416_v37 = vld [vmem:[#allocation208_spill] sm:$0xff] }
 0x866   :  { %6528 = vmatprep.subr.bf16.mxu1 %v10368_v25  ;;  %v10417_v25 = vld [vmem:[#allocation209_spill] sm:$0xff] }
 0x867   :  { %6498 = vmatpush3.bf16.msra.mxu0 %v10369_v9  ;;  %v10418_v9 = vld [vmem:[#allocation210_spill] sm:$0xff] }
 0x868   :  { %6500 = vmatprep.subr.bf16.mxu0 %v10370_v2  ;;  %v10419_v2 = vld [vmem:[#allocation211_spill] sm:$0xff] }
 0x869   :  { %6530 = vmatpush3.bf16.msra.mxu1 %v10371_v51  ;;  %v10420_v51 = vld [vmem:[#allocation212_spill] sm:$0xff] }
 0x86a   :  { %6532 = vmatprep.subr.bf16.mxu1 %v10372_v57  ;;  %v10421_v57 = vld [vmem:[#allocation213_spill] sm:$0xff] }
 0x86b   :  { %6502 = vmatpush3.bf16.msra.mxu0 %v10373_v58  ;;  %v10422_v58 = vld [vmem:[#allocation214_spill] sm:$0xff] }
 0x86c   :  { %6504 = vmatprep.subr.bf16.mxu0 %v10374_v43  ;;  %v10424_v43 = vld [vmem:[#allocation216_spill] sm:$0xff] }
 0x86d   :  { %6534 = vmatpush3.bf16.msra.mxu1 %v10375_v40  ;;  %v10425_v40 = vld [vmem:[#allocation217_spill] sm:$0xff] }
 0x86e   :  { %6536 = vmatprep.subr.bf16.mxu1 %v10376_v61  ;;  %v10426_v61 = vld [vmem:[#allocation218_spill] sm:$0xff] }
 0x86f   :  { %6506 = vmatpush3.bf16.msra.mxu0 %v10377_v0  ;;  %v10427_v0 = vld [vmem:[#allocation219_spill] sm:$0xff] }
 0x870   :  { %6540 = vmatprep.subr.bf16.mxu0 %v10378_v32  ;;  %v10429_v32 = vld [vmem:[#allocation221_spill] sm:$0xff] }
 0x871   :  { %6538 = vmatpush3.bf16.msra.mxu1 %v10379_v41  ;;  %v10430_v41 = vld [vmem:[#allocation222_spill] sm:$0xff] }
 0x872   :  { %3374 = vmatmul.mubr.f32.vlgmr.msra.gmra.mrb[36].mxu0 %v3305_v17  ;;  %6572 = vmatprep.subr.bf16.mxu1 %v10380_v62  ;;  %v10428_v17 = vld [vmem:[#allocation220_spill] sm:$0xff] }
 0x873   :  { %6542 = vmatpush3.bf16.msra.mxu0 %v10381_v5  ;;  %3523 = vmatprep.mubr.f32.mxu0 %v3456_v28  ;;  %v10431_v28 = vld [vmem:[#allocation223_spill] sm:$0xff]  ;;  %v10432_v5 = vld [vmem:[#allocation224_spill] sm:$0xff] }
 0x874   :  { %3449 = vmatmul.mubr.f32.vlgmr.msra.gmra.mrb[42].mxu1 %v3380_v34  ;;  %6544 = vmatprep.subr.bf16.mxu0 %v10382_v31  ;;  %v10433_v31 = vld [vmem:[#allocation225_spill] sm:$0xff] }
 0x875   :  { %6574 = vmatpush3.bf16.msra.mxu1 %v10383_v33  ;;  %3598 = vmatprep.mubr.f32.mxu1 %v3531_v24 }
 0x876   :  { %6576 = vmatprep.subr.bf16.mxu1 %v10384_v38 }
 0x877   :  { %6546 = vmatpush3.bf16.msra.mxu0 %v10385_v15  ;;  %v10434_v15 = vld [vmem:[#allocation226_spill] sm:$0xff] }
 0x878   :  { %6548 = vmatprep.subr.bf16.mxu0 %v10386_v39  ;;  %v10435_v39 = vld [vmem:[#allocation228_spill] sm:$0xff] }
 0x879   :  { %6578 = vmatpush3.bf16.msra.mxu1 %v10387_v22 }
 0x87a   :  { %6580 = vmatprep.subr.bf16.mxu1 %v10388_v42 }
 0x87b   :  { %6550 = vmatpush3.bf16.msra.mxu0 %v10389_v45  ;;  %v10436_v45 = vld [vmem:[#allocation227_spill] sm:$0xff] }
 0x87c   :  { %6552 = vmatprep.subr.bf16.mxu0 %v10390_v48  ;;  %v10437_v48 = vld [vmem:[#allocation229_spill] sm:$0xff] }
 0x87d   :  { %6582 = vmatpush3.bf16.msra.mxu1 %v10391_v53 }
 0x87e   :  { %6584 = vmatprep.subr.bf16.mxu1 %v10392_v54  ;;  %v10438_v54 = vld [vmem:[#allocation230_spill] sm:$0xff] }
 0x87f   :  { %6554 = vmatpush3.bf16.msra.mxu0 %v10393_v59  ;;  %v10439_v59 = vld [vmem:[#allocation231_spill] sm:$0xff] }
 0x880   :  { %6556 = vmatprep.subr.bf16.mxu0 %v10394_v60  ;;  %v10440_v60 = vld [vmem:[#allocation232_spill] sm:$0xff] }
 0x881   :  { %6586 = vmatpush3.bf16.msra.mxu1 %v10395_v1  ;;  %v10441_v1 = vld [vmem:[#allocation233_spill] sm:$0xff] }
 0x882   :  { %6588 = vmatprep.subr.bf16.mxu1 %v10396_v3  ;;  %v10442_v3 = vld [vmem:[#allocation234_spill] sm:$0xff] }
 0x883   :  { %6558 = vmatpush3.bf16.msra.mxu0 %v10397_v6  ;;  %v3605_v6 = vrot.slane %v9400_v14, 6 }
 0x884   :  { %6560 = vmatprep.subr.bf16.mxu0 %v10398_v7  ;;  %v10443_v7 = vmov 0.0|0.0  }
 0x885   :  { %6590 = vmatpush3.bf16.msra.mxu1 %v10399_v11  ;;  %v10444_v11 = vld [vmem:[#allocation235_spill] sm:$0xff] }
 0x886   :  { %6592 = vmatprep.subr.bf16.mxu1 %v10400_v12  ;;  %v3680_v12 = vrot.slane %v9400_v14, 7 }
 0x887   :  { %6562 = vmatpush3.bf16.msra.mxu0 %v10401_v27  ;;  %v10445_v27 = vld [vmem:[#allocation236_spill] sm:$0xff] }
 0x888   :  { %6564 = vmatprep.subr.bf16.mxu0 %v10402_v35  ;;  %v10446_v35 = vld [vmem:[#allocation237_spill] sm:$0xff] }
 0x889   :  { %6594 = vmatpush3.bf16.msra.mxu1 %v10403_v36 }
 0x88a   :  { %6596 = vmatprep.subr.bf16.mxu1 %v10404_v46 }
 0x88b   :  { %6566 = vmatpush3.bf16.msra.mxu0 %v10405_v47 }
 0x88c   :  { %6568 = vmatprep.subr.bf16.mxu0 %v10406_v55 }
 0x88d   :  { %6598 = vmatpush3.bf16.msra.mxu1 %v10407_v56 }
 0x88e   :  { %6600 = vmatprep.subr.bf16.mxu1 %v10408_v63 }
 0x88f   :  { %6570 = vmatpush3.bf16.msra.mxu0 %v10409_v13 }
 0x890   :  { %6604 = vmatprep.subr.bf16.mxu0 %v10410_v20 }
 0x891   :  { %6602 = vmatpush3.bf16.msra.mxu1 %v10411_v23 }
 0x892   :  { %3524 = vmatmul.mubr.f32.vlgmr.msra.gmra.mrb[38].mxu0 %v3455_v16  ;;  %6636 = vmatprep.subr.bf16.mxu1 %v10412_v50 }
 0x893   :  { %6606 = vmatpush3.bf16.msra.mxu0 %v10413_v52  ;;  %3673 = vmatprep.mubr.f32.mxu0 %v3606_v26 }
 0x894   :  { %3599 = vmatmul.mubr.f32.vlgmr.msra.gmra.mrb[44].mxu1 %v3530_v30  ;;  %6608 = vmatprep.subr.bf16.mxu0 %v10414_v21 }
 0x895   :  { %6638 = vmatpush3.bf16.msra.mxu1 %v10415_v4  ;;  %3748 = vmatprep.mubr.f32.mxu1 %v3681_v44 }
 0x896   :  { %6640 = vmatprep.subr.bf16.mxu1 %v10416_v37 }
 0x897   :  { %6610 = vmatpush3.bf16.msra.mxu0 %v10417_v25 }
 0x898   :  { %6612 = vmatprep.subr.bf16.mxu0 %v10418_v9 }
 0x899   :  { %6642 = vmatpush3.bf16.msra.mxu1 %v10419_v2 }
 0x89a   :  { %6644 = vmatprep.subr.bf16.mxu1 %v10420_v51 }
 0x89b   :  { %6614 = vmatpush3.bf16.msra.mxu0 %v10421_v57 }
 0x89c   :  { %6616 = vmatprep.subr.bf16.mxu0 %v10422_v58 }
 0x89d   :  { %6646 = vmatpush3.bf16.msra.mxu1 %v10423_v10 }
 0x89e   :  { %6648 = vmatprep.subr.bf16.mxu1 %v10424_v43 }
 0x89f   :  { %6618 = vmatpush3.bf16.msra.mxu0 %v10425_v40 }
 0x8a0   :  { %6620 = vmatprep.subr.bf16.mxu0 %v10426_v61 }
 0x8a1   :  { %6650 = vmatpush3.bf16.msra.mxu1 %v10427_v0 }
 0x8a2   :  { %6652 = vmatprep.subr.bf16.mxu1 %v10428_v17 }
 0x8a3   :  { %6622 = vmatpush3.bf16.msra.mxu0 %v10429_v32 }
 0x8a4   :  { %6624 = vmatprep.subr.bf16.mxu0 %v10430_v41 }
 0x8a5   :  { %6654 = vmatpush3.bf16.msra.mxu1 %v10431_v28  ;;  %v5074_v34 = vpop.f32.mrb[26].mxu0 }
 0x8a6   :  { %v5075_v62 = vpop.f32.mrb[27].mxu0  ;;  %6656 = vmatprep.subr.bf16.mxu1 %v10432_v5 }
 0x8a7   :  { %v5076_v24 = vadd.f32 %v5075_v62, %v5074_v34  ;;  %6626 = vmatpush3.bf16.msra.mxu0 %v10433_v31  ;;  %v5109_v33 = vpop.f32.mrb[32].mxu1 }
 0x8a8   :  { %v5110_v38 = vpop.f32.mrb[33].mxu1  ;;  %6628 = vmatprep.subr.bf16.mxu0 %v10434_v15 }
 0x8a9   :  { %v2629_v22 = vadd.f32 %v5076_v24, %v10435_v39  ;;  %v5111_v42 = vadd.f32 %v5110_v38, %v5109_v33  ;;  %6658 = vmatpush3.bf16.msra.mxu1 %v10436_v45 }
 0x8aa   :  { %6660 = vmatprep.subr.bf16.mxu1 %v10437_v48 }
 0x8ab   :  { %v2706_v53 = vadd.f32 %v5111_v42, %v2629_v22  ;;  %6630 = vmatpush3.bf16.msra.mxu0 %v10438_v54 }
 0x8ac   :  { %6632 = vmatprep.subr.bf16.mxu0 %v10439_v59 }
 0x8ad   :  { %6662 = vmatpush3.bf16.msra.mxu1 %v10440_v60 }
 0x8ae   :  { %6664 = vmatprep.subr.bf16.mxu1 %v10441_v1 }
 0x8af   :  { %6634 = vmatpush3.bf16.msra.mxu0 %v10442_v3 }
 0x8b0   :  { %6667 = vmatprep.subr.bf16.mxu0 %v10443_v7 }
 0x8b1   :  { %6666 = vmatpush3.bf16.msra.mxu1 %v10444_v11 }
 0x8b2   :  { %3674 = vmatmul.mubr.f32.vlgmr.msra.gmra.mrb[40].mxu0 %v3605_v6 }
 0x8b3   :  { %6669 = vmatpush3.bf16.msra.mxu0 %v10445_v27  ;;  %5626 = vmatprep.mubr.msk.f32.mxu0 %vm6758_vm4, %v10213_v29 }
 0x8b4   :  { %3749 = vmatmul.mubr.f32.vlgmr.msra.gmra.mrb[46].mxu1 %v3680_v12  ;;  %6670 = vmatprep.subr.bf16.mxu0 %v10443_v7  ;;  %v2234_v12 = vpop.xlane.xlu0 %2233 }
 0x8b5   :  { %v2235_v27 = vsub.f32 %v9317_v49, %v2234_v12 }
 0x8b7   :  { %6672 = vmatpush3.bf16.msra.mxu0 %v10446_v35  ;;  %v2236_v35 = vmul.f32 1.442695, %v2235_v27 }
 0x8b9   :  { %6683 = vpow2.f32 %v2236_v35 }
 0x8c5   :  { %v5144_v36 = vpop.f32.mrb[28].mxu0 }
 0x8c6   :  { %v5145_v46 = vpop.f32.mrb[29].mxu0 }
 0x8c7   :  { %v5146_v47 = vadd.f32 %v5145_v46, %v5144_v36  ;;  %v5179_v55 = vpop.f32.mrb[34].mxu1 }
 0x8c8   :  { %v5180_v56 = vpop.f32.mrb[35].mxu1 }
 0x8c9   :  { %v2781_v63 = vadd.f32 %v5146_v47, %v2706_v53  ;;  %v5181_v13 = vadd.f32 %v5180_v56, %v5179_v55  ;;  %v9692_v56 = vpop.eup %6683 }
 0x8cb   :  { %v2856_v16 = vadd.f32 %v5181_v13, %v2781_v63  ;;  %v2238_v63 = vsel %vm2231_vm6, %v9692_v56, 0.0 }
 0x8e5   :  { %v5214_v20 = vpop.f32.mrb[30].mxu0 }
 0x8e6   :  { %v5215_v14 = vpop.f32.mrb[31].mxu0 }
 0x8e7   :  { %v5216_v23 = vadd.f32 %v5215_v14, %v5214_v20  ;;  %v5249_v26 = vpop.f32.mrb[36].mxu1 }
 0x8e8   :  { %v5250_v30 = vpop.f32.mrb[37].mxu1 }
 0x8e9   :  { %v2931_v50 = vadd.f32 %v5216_v23, %v2856_v16  ;;  %v5251_v29 = vadd.f32 %v5250_v30, %v5249_v26 }
 0x8eb   :  { %v3006_v52 = vadd.f32 %v5251_v29, %v2931_v50 }
 0x905   :  { %v5284_v44 = vpop.f32.mrb[32].mxu0 }
 0x906   :  { %v5285_v21 = vpop.f32.mrb[33].mxu0 }
 0x907   :  { %v5286_v4 = vadd.f32 %v5285_v21, %v5284_v44  ;;  %v5319_v37 = vpop.f32.mrb[38].mxu1 }
 0x908   :  { %v5320_v25 = vpop.f32.mrb[39].mxu1 }
 0x909   :  { %v3081_v9 = vadd.f32 %v5286_v4, %v3006_v52  ;;  %v5321_v2 = vadd.f32 %v5320_v25, %v5319_v37 }
 0x90b   :  { %v3156_v51 = vadd.f32 %v5321_v2, %v3081_v9 }
 0x925   :  { %v5354_v57 = vpop.f32.mrb[34].mxu0 }
 0x926   :  { %v5355_v58 = vpop.f32.mrb[35].mxu0 }
 0x927   :  { %v5356_v10 = vadd.f32 %v5355_v58, %v5354_v57  ;;  %v5389_v43 = vpop.f32.mrb[40].mxu1 }
 0x928   :  { %v5390_v40 = vpop.f32.mrb[41].mxu1 }
 0x929   :  { %v3227_v61 = vadd.f32 %v5356_v10, %v3156_v51  ;;  %v5391_v0 = vadd.f32 %v5390_v40, %v5389_v43 }
 0x92b   :  { %v3304_v17 = vadd.f32 %v5391_v0, %v3227_v61 }
 0x945   :  { %v5424_v32 = vpop.f32.mrb[36].mxu0 }
 0x946   :  { %v5425_v41 = vpop.f32.mrb[37].mxu0 }
 0x947   :  { %v5426_v28 = vadd.f32 %v5425_v41, %v5424_v32  ;;  %v5459_v34 = vpop.f32.mrb[42].mxu1 }
 0x948   :  { %v5460_v62 = vpop.f32.mrb[43].mxu1 }
 0x949   :  { %v3379_v5 = vadd.f32 %v5426_v28, %v3304_v17  ;;  %v5461_v24 = vadd.f32 %v5460_v62, %v5459_v34 }
 0x94b   :  { %v3454_v31 = vadd.f32 %v5461_v24, %v3379_v5 }
 0x965   :  { %v5494_v33 = vpop.f32.mrb[38].mxu0 }
 0x966   :  { %v5495_v38 = vpop.f32.mrb[39].mxu0 }
 0x967   :  { %v5496_v15 = vadd.f32 %v5495_v38, %v5494_v33  ;;  %v5529_v39 = vpop.f32.mrb[44].mxu1 }
 0x968   :  { %v5530_v22 = vpop.f32.mrb[45].mxu1 }
 0x969   :  { %v3529_v42 = vadd.f32 %v5496_v15, %v3454_v31  ;;  %v5531_v45 = vadd.f32 %v5530_v22, %v5529_v39 }
 0x96b   :  { %v3604_v48 = vadd.f32 %v5531_v45, %v3529_v42 }
 0x985   :  { %v5564_v53 = vpop.f32.mrb[40].mxu0 }
 0x986   :  { %v5565_v54 = vpop.f32.mrb[41].mxu0 }
 0x987   :  { %v5566_v59 = vadd.f32 %v5565_v54, %v5564_v53  ;;  %v5599_v60 = vpop.f32.mrb[46].mxu1 }
 0x988   :  { %v5600_v1 = vpop.f32.mrb[47].mxu1 }
 0x989   :  { %v3679_v3 = vadd.f32 %v5566_v59, %v3604_v48  ;;  %v5601_v6 = vadd.f32 %v5600_v1, %v5599_v60 }
 0x98b   :  { %v3754_v7 = vadd.f32 %v5601_v6, %v3679_v3 }
 0x98d   :  { %v3755_v11 = vmax.f32 %v3754_v7, 0.0 }
 0x98f   :  { %5627 = vmatmul.mubr.msk.f32.vlgmr.msra.gmra.mrb[42].mxu0 %vm2157_vm5, %v3755_v11 }
 0xa62   :  { %v3825_v36 = vpop.f32.mrb[42].mxu0 }
 0xa63   :  { %v9685_v46 = vadd.f32 %v3825_v36, %v9314_v8  ;;  %v5628_v47 = vpop.f32.mrb[43].mxu0 }
 0xa65   :  { %3947 = vst.msk [vmem:[#allocation2 + $0x1] sm:$0x1] %vm2231_vm6, %v9685_v46  ;;  %v3829_v55 = vsel %vm2231_vm6, %v9685_v46, -inf }
 0xa66   :  { %3830 = vmax.xlane.f32.xlu1 %v3829_v55 }
 0xa6a   :  { %3870 = vadd.xlane.f32.xlu1 %v9432_v18  ;;  %v3846_v18 = vpop.xlane.xlu0 %3845 }
 0xa6e   :  { %3899 = vadd.xlane.f32.xlu1 %v9435_v19  ;;  %v3849_v23 = vpop.xlane.xlu0 %3848 }
 0xa6f   :  { %v3850_v50 = vadd.f32 %v3849_v23, %v3846_v18 }
 0xa71   :  { %v3851_v52 = vrot.slane %v3850_v50, 4 }
 0xa72   :  { %2239 = vadd.xlane.f32.xlu1 %v2238_v63  ;;  %v3874_v30 = vpop.xlane.xlu0 %3873 }
 0xa73   :  { %v3852_v21 = vadd.f32 %v3851_v52, %v3850_v50 }
 0xa75   :  { %v3853_v37 = vrot.slane %v3852_v21, 2 }
 0xa76   :  { %v3903_v17 = vpop.xlane.xlu0 %3902 }
 0xa77   :  { %v3854_v9 = vadd.f32 %v3853_v37, %v3852_v21 }
 0xa79   :  { %v3855_v51 = vrot.slane %v3854_v9, 1 }
 0xa7b   :  { %v3856_v58 = vadd.f32 %v3855_v51, %v3854_v9 }
 0xa7d   :  { %vm3859_vm8 = vcmp.eq.f32.partialorder %v3856_v58, inf  ;;  %v3862_v62 = vand.u32 2147483648, %v3856_v58  ;;  %vm3861_vm10 = vcmp.eq.f32.partialorder %v3856_v58, 0.0 }
 0xaf3   :  { %v3831_v8 = vpop.xlane.xlu1 %3830 }
 0xaf4   :  { %v3832_v13 = vsub.f32 %v9685_v46, %v3831_v8 }
 0xaf6   :  { %v3833_v16 = vmul.f32 1.442695, %v3832_v13 }
 0xaf7   :  { %v3871_v26 = vpop.xlane.xlu1 %3870 }
 0xaf8   :  { %6685 = vpow2.f32 %v3833_v16  ;;  %v3875_v19 = vadd.f32 %v3874_v30, %v3871_v26 }
 0xafa   :  { %v3876_v29 = vrot.slane %v3875_v19, 4 }
 0xafb   :  { %v3900_v0 = vpop.xlane.xlu1 %3899 }
 0xafc   :  { %v3877_v44 = vadd.f32 %v3876_v29, %v3875_v19  ;;  %v3904_v34 = vadd.f32 %v3903_v17, %v3900_v0 }
 0xafe   :  { %v3878_v4 = vrot.slane %v3877_v44, 2  ;;  %v3905_v31 = vrot.slane %v3904_v34, 4 }
 0xaff   :  { %v2240_v48 = vpop.xlane.xlu1 %2239 }
 0xb00   :  { %v3879_v25 = vadd.f32 %v3878_v4, %v3877_v44  ;;  %v3906_v15 = vadd.f32 %v3905_v31, %v3904_v34 }
 0xb02   :  { %v9698_v20 = vpop.eup %6685  ;;  %v3880_v2 = vrot.slane %v3879_v25, 1  ;;  %v3907_v45 = vrot.slane %v3906_v15, 2 }
 0xb03   :  { %v3835_v14 = vsel %vm2231_vm6, %v9698_v20, 0.0 }
 0xb04   :  { %3836 = vadd.xlane.f32.xlu0 %v3835_v14  ;;  %v3881_v57 = vadd.f32 %v3880_v2, %v3879_v25  ;;  %v3908_v53 = vadd.f32 %v3907_v45, %v3906_v15 }
 0xb06   :  { %6687 = vrsqrt.f32 %v3881_v57  ;;  %vm3884_vm7 = vcmp.eq.f32.partialorder %v3881_v57, inf  ;;  %v3887_v28 = vand.u32 2147483648, %v3881_v57  ;;  %vm3886_vm9 = vcmp.eq.f32.partialorder %v3881_v57, 0.0 }
 0xb07   :  { %6689 = vrsqrt.f32 %v3856_v58  ;;  %v3909_v54 = vrot.slane %v3908_v53, 1 }
 0xb09   :  { %v3910_v3 = vadd.f32 %v3909_v54, %v3908_v53 }
 0xb10   :  { %v6688_v10 = vpop.eup %6687 }
 0xb11   :  { %v6690_v43 = vpop.eup %6689  ;;  %v3883_v40 = vmul.f32 %v6688_v10, %v3881_v57 }
 0xb12   :  { %v3858_v61 = vmul.f32 %v6690_v43, %v3856_v58 }
 0xb13   :  { %v3885_v32 = vsel %vm3884_vm7, %v3881_v57, %v3883_v40 }
 0xb14   :  { %v3860_v41 = vsel %vm3859_vm8, %v3856_v58, %v3858_v61  ;;  %v3888_v5 = vsel %vm3886_vm9, %v3887_v28, %v3885_v32 }
 0xb15   :  { %v3863_v24 = vsel %vm3861_vm10, %v3862_v62, %v3860_v41  ;;  %v3889_v33 = vmax.f32 %v3888_v5, 1e-12 }
 0xb16   :  { %v3864_v38 = vmax.f32 %v3863_v24, 1e-12 }
 0xb17   :  { %v3915_v42 = vmul.f32 %v3889_v33, %v3889_v33 }
 0xb18   :  { %v3911_v39 = vmul.f32 %v3889_v33, %v3864_v38  ;;  %v3890_v22 = vmul.f32 %v3864_v38, %v3864_v38 }
 0xb1a   :  { %6691 = vrcp.f32 %v3911_v39 }
 0xb1b   :  { %6693 = vrcp.f32 %v3890_v22 }
 0xb1c   :  { %6695 = vrcp.f32 %v3915_v42 }
 0xb1d   :  { %6697 = vrcp.f32 %v2240_v48 }
 0xb24   :  { %v6692_v60 = vpop.eup %6691 }
 0xb25   :  { %v6694_v1 = vpop.eup %6693  ;;  %v3913_v7 = vmul.f32 %v6692_v60, %v3910_v3 }
 0xb26   :  { %v6696_v6 = vpop.eup %6695  ;;  %v3892_v27 = vmul.f32 %v6694_v1, %v3856_v58 }
 0xb27   :  { %v6698_v11 = vpop.eup %6697  ;;  %v3917_v12 = vmul.f32 %v6696_v6, %v3881_v57  ;;  %v3914_v35 = vmax.f32 %v3913_v7, 0.0 }
 0xb28   :  { %v2242_v36 = vmul.f32 %v6698_v11, %v9692_v56  ;;  %v3893_v55 = vmax.f32 %v3892_v27, 0.0 }
 0xb29   :  { %v3918_v47 = vmax.f32 %v3917_v12, 0.0 }
 0xb2a   :  { %v3919_v13 = vadd.f32 %v3914_v35, %v3893_v55  ;;  %v3920_v16 = vmul.f32 %v3893_v55, %v2242_v36  ;;  %v3931_v18 = vmul.f32 %v3914_v35, %v2242_v36 }
 0xb2b   :  { %v3930_v14 = vadd.f32 %v3918_v47, %v3914_v35 }
 0xb2c   :  { %v3923_v29 = vmul.f32 %v3919_v13, %v2242_v36 }
 0xb91   :  { %v3837_v59 = vpop.xlane.xlu0 %3836 }
 0xb92   :  { %6699 = vrcp.f32 %v3837_v59 }
 0xb9c   :  { %v6700_v63 = vpop.eup %6699 }
 0xb9d   :  { %v3839_v8 = vmul.f32 %v6700_v63, %v9698_v20 }
 0xb9f   :  { %v3932_v23 = vmul.f32 %v3918_v47, %v3839_v8  ;;  %v3921_v26 = vmul.f32 %v3914_v35, %v3839_v8  ;;  %v3934_v19 = vmul.f32 %v3930_v14, %v3839_v8 }
 0xba1   :  { %v3933_v30 = vadd.f32 %v3932_v23, %v3931_v18  ;;  %v3922_v50 = vadd.f32 %v3921_v26, %v3920_v16 }
 0xba3   :  { %v3935_v52 = vsub.f32 %v3934_v19, %v3933_v30  ;;  %v3924_v44 = vsub.f32 %v3923_v29, %v3922_v50 }
 0xba5   :  { %v3936_v21 = vmul.f32 %v3935_v52, %v3839_v8  ;;  %v3925_v4 = vmul.f32 %v3924_v44, %v2242_v36 }
 0xba7   :  { %v3937_v56 = vsel %vm2231_vm6, %v3936_v21, 0.0  ;;  %v3926_v37 = vsel %vm2231_vm6, %v3925_v4, 0.0 }
 0xba8   :  { %3938 = vadd.xlane.f32.xlu0 %v3937_v56  ;;  %3927 = vadd.xlane.f32.xlu1 %v3926_v37 }
 0xba9   :  { %6718 = shalt.err (!%p6715_p4)
}
 0xbaa   :  { %s6719_s22 = scalar_lea.hbm %s9747_s13, 32 }
 0xbab   :  { %p6720_p5 = scmp.ne.s32.totalorder %s9747_s13, %s6719_s22  ;;  %p6723_p6 = scmp.lt.u32.totalorder %s6719_s22, %s9747_s13 }
 0xbad   :  { %p6725_p7 = pnand %p6723_p6, %p6720_p5 }
 0xbaf   :  { %6728 = shalt.err (!%p6725_p7)
}
 0xbb0   :  { %3959 = dma.vmem_to_hbm [thread:$0]  %s3957_s20, 32, %s9747_s13, [#allocation3]  }
 0xbb1   :  { %s6760_s26 = smov [#allocation4]  }
 0xbb2   :  { %s3966_s27 = sshll.u32 %s6760_s26, 4  ;;  %s3967_s27 = int_to_ptr.vmem [resolvable:$true] %s3966_s27 }
 0xbb3   :  { %s6729_s28 = scalar_lea.vmem %s3967_s27, 32  ;;  %p6734_p9 = scmp.lt.s32.totalorder %s3967_s27, %s3967_s27 }
 0xbb4   :  { %p6730_p8 = scmp.ne.s32.totalorder %s3967_s27, %s6729_s28  ;;  %p6735_p10 = scmp.lt.s32.totalorder %s6729_s28, %s6729_s28 }
 0xbb6   :  { %p6736_p11 = por %p6735_p10, %p6734_p9 }
 0xbb8   :  { %p6737_p12 = pnand %p6736_p11, %p6730_p8 }
 0xc35   :  { %v3939_v20 = vpop.xlane.xlu0 %3938  ;;  %v3928_v25 = vpop.xlane.xlu1 %3927 }
 0xc36   :  { %v3940_v9 = vadd.f32 %v3939_v20, %v3928_v25 }
 0xc38   :  { %v3942_v2 = vmul.f32 0.5, %v3940_v9 }
 0xc3a   :  { %v3944_v51 = vmul.f32 0.5, %v3942_v2 }
 0xc3c   :  { %v3945_v57 = vsub.f32 %v9317_v49, %v3944_v51  ;;  %v3948_v58 = vsub.f32 %v9685_v46, %v3944_v51 }
 0xc3e   :  { %3946 = vst.msk [vmem:[#allocation4] sm:$0x1] %vm2231_vm6, %v3945_v57  ;;  %3949 = vst.msk [vmem:[#allocation4 + $0x1] sm:$0x1] %vm2231_vm6, %v3948_v58 }
 0xc3f   :  { %6740 = shalt.err (!%p6737_p12)
}
 0xc40   :  { %s6741_s30 = scalar_lea.hbm %s9748_s14, 32 }
 0xc41   :  { %p6742_p13 = scmp.ne.s32.totalorder %s9748_s14, %s6741_s30  ;;  %p6745_p0 = scmp.lt.u32.totalorder %s6741_s30, %s9748_s14 }
 0xc43   :  { %p6747_p1 = pnand %p6745_p0, %p6742_p13 }
 0xc45   :  { %6750 = shalt.err (!%p6747_p1)
}
 0xc46   :  { %3969 = dma.vmem_to_hbm [thread:$0]  %s3967_s27, 32, %s9748_s14, [#allocation5]  }
 0xc47   :  { %6751 = dma.done.wait [#allocation3], 32  }
 0xc48   :  { %6752 = vsyncadd [#allocation3], 4294967264 }
 0xc49   :  { %6753 = dma.done.wait [#allocation5], 32  }
 0xc4a   :  { %6754 = vsyncadd [#allocation5], 4294967264 }
 0xc4b   :  { %3976 = vsyncpa [#allocation3], 1 }
 0xc4c   :  { %3977 = vsyncpa [#allocation5], 1 }

</bundles_post_ra>
